<compile_context>
chip_gen: v7x
topology: tpu7x:2x2x1
jax: 0.10.0
libtpu: 0.0.40
codegen_flags: <defaults>
</compile_context>

<pallas_src>
import functools
import math

import jax
import jax.numpy as jnp
from jax import lax
from jax.experimental import pallas as pl
from jax.experimental.pallas import tpu as pltpu


LN_EPS = 1e-5  # nn.LayerNorm default and GPT2 layer_norm_epsilon


# ----------------------------- helpers --------------------------------------

def _layernorm(y, g, b, eps=LN_EPS):
    mu = jnp.mean(y, axis=-1, keepdims=True)
    var = jnp.mean(jnp.square(y - mu), axis=-1, keepdims=True)
    return (y - mu) * lax.rsqrt(var + eps) * g + b


def _softmax_rows(s):
    s = s - jnp.max(s, axis=-1, keepdims=True)
    e = jnp.exp(s)
    return e * pl.reciprocal(jnp.sum(e, axis=-1, keepdims=True), approx=True)


# --------------------------- fused forward kernel ----------------------------
# Grid = (batch_blocks, n_layers).  Batch axis is "parallel" (megacore), the
# layer axis is "arbitrary" and carries the hidden state in a VMEM scratch.

def gpt2_kernel(x_ref, maskb_ref, wpe_ref, in_w_ref, in_vec_ref,
                wqkv_ref, bqkv_ref, wo_ref, wfc_ref, wpr_ref,
                ln_gb_ref, b_h_ref, b_fc_ref, fin_ref,
                o_ref, h_scr, *, n_heads):
    bt, seq, n_in = x_ref.shape
    hidden = wpe_ref.shape[-1]
    hd = hidden // n_heads
    half = hidden // 2
    m = bt * seq
    layer = pl.program_id(1)
    bf16 = jnp.bfloat16

    # ---- layer step 0: fused comb_proj/cont_embed + positional embedding ----
    @pl.when(layer == 0)
    def _init():
        x0 = x_ref[...].reshape(m, n_in)
        # block-diagonal weight: left half = comb_proj, right half = cont_embed
        y = jnp.dot(x0.astype(bf16), in_w_ref[...],
                    preferred_element_type=jnp.float32) + in_vec_ref[0:1, :]
        # grouped LayerNorm: independent stats over the comb / cont halves
        sel = (lax.broadcasted_iota(jnp.int32, (1, hidden), 1) < half
               ).astype(jnp.float32)
        selc = 1.0 - sel
        inv = 1.0 / half
        mu = (jnp.sum(y * sel, axis=-1, keepdims=True) * sel +
              jnp.sum(y * selc, axis=-1, keepdims=True) * selc) * inv
        d = y - mu
        var = (jnp.sum(d * d * sel, axis=-1, keepdims=True) * sel +
               jnp.sum(d * d * selc, axis=-1, keepdims=True) * selc) * inv
        y = d * lax.rsqrt(var + LN_EPS) * in_vec_ref[1:2, :] + in_vec_ref[2:3, :]
        h_scr[...] = y + wpe_ref[...]

    h = h_scr[...]                                             # (Bt*S, H)

    # additive attention bias (causal + padding), shared by all heads
    qi = lax.broadcasted_iota(jnp.int32, (seq, seq), 0)
    ki = lax.broadcasted_iota(jnp.int32, (seq, seq), 1)
    causal = (ki <= qi).reshape(1, seq, seq)
    attn_bias = jnp.where(causal, maskb_ref[...], -1e30)       # (Bt, S, S) f32

    # ---- this layer: causal self-attention (pre-norm) ----
    x = _layernorm(h, ln_gb_ref[0, 0:1, :], ln_gb_ref[0, 1:2, :])
    x16 = x.astype(bf16)
    att = jnp.zeros((m, hidden), jnp.float32)
    for hh in range(n_heads):        # small n_heads -> statically unrolled
        j = 3 * hh                   # [q, k, v] for head hh (scale folded in q)
        q = jnp.dot(x16, wqkv_ref[0, j + 0],
                    preferred_element_type=jnp.float32) + bqkv_ref[0, j + 0]
        k = jnp.dot(x16, wqkv_ref[0, j + 1],
                    preferred_element_type=jnp.float32) + bqkv_ref[0, j + 1]
        v = jnp.dot(x16, wqkv_ref[0, j + 2],
                    preferred_element_type=jnp.float32) + bqkv_ref[0, j + 2]
        q3 = q.reshape(bt, seq, hd).astype(bf16)
        k3 = k.reshape(bt, seq, hd).astype(bf16)
        v3 = v.reshape(bt, seq, hd).astype(bf16)
        s = jnp.einsum('bqd,bkd->bqk', q3, k3,
                       preferred_element_type=jnp.float32) + attn_bias
        p = _softmax_rows(s)                                   # f32 softmax
        ctx = jnp.einsum('bqk,bkd->bqd', p.astype(bf16), v3,
                         preferred_element_type=jnp.float32).reshape(m, hd)
        # per-head output projection accumulated into att -> no concat
        att = att + jnp.dot(ctx.astype(bf16),
                            wo_ref[0, hh * hd:(hh + 1) * hd, :],
                            preferred_element_type=jnp.float32)
    h = h + att + b_h_ref[0, 0:1, :]

    # ---- this layer: MLP (c_fc -> gelu_new -> c_proj) ----
    x = _layernorm(h, ln_gb_ref[0, 2:3, :], ln_gb_ref[0, 3:4, :])
    ff = jnp.dot(x.astype(bf16), wfc_ref[0],
                 preferred_element_type=jnp.float32) + b_fc_ref[0]
    ff = jax.nn.gelu(ff, approximate=True)        # GPT2 "gelu_new" (tanh)
    ff = jnp.dot(ff.astype(bf16), wpr_ref[0],
                 preferred_element_type=jnp.float32) + b_h_ref[0, 1:2, :]
    h = h + ff
    h_scr[...] = h

    # ---- last layer step: ln_f + fc(H->1) + sigmoid, lane-dense (Bt,1,S) ----
    @pl.when(layer == pl.num_programs(1) - 1)
    def _fin():
        hf = _layernorm(h, fin_ref[0:1, :], fin_ref[1:2, :])
        hf3 = hf.reshape(bt, seq, hidden)
        w3 = jnp.broadcast_to(fin_ref[2:3, :].reshape(1, 1, hidden),
                              (bt, 1, hidden))
        logit = jnp.einsum('boh,bsh->bos', w3, hf3,
                           preferred_element_type=jnp.float32)
        logit = logit + fin_ref[3:4, 0:1]          # fc bias (broadcast (1,1))
        o_ref[...] = jax.nn.sigmoid(logit)         # (Bt, 1, S): seq on lanes


# ------------------------------ full forward ---------------------------------

def _pick_batch_block(bsz, want):
    """Largest divisor of bsz that is sublane-friendly (multiple of 8, or the
    whole batch), <= want, and (if possible) leaves >=2 grid steps so v7x's
    two TensorCores both get work."""
    cands = [d for d in range(1, bsz + 1)
             if bsz % d == 0 and (d % 8 == 0 or d == bsz)]
    good = [d for d in cands if d <= want and bsz // d >= 2]
    if good:
        return max(good)
    small = [d for d in cands if d <= want]
    return max(small) if small else bsz


def gpt2_dkt_forward(packed, cate_inputs, cont_features, cfg, batch_block=8):
    test, question, tag, _correct, mask, interaction, big, _index = cate_inputs
    bsz, seq = interaction.shape
    hidden = cfg['hidden_dim']
    n_layers = cfg['n_layers']
    n_heads = cfg['n_heads']
    hd = hidden // n_heads
    inter = 4 * hidden

    # embedding gathers + feature concat: data-dependent, stay in plain JAX
    embeds = [jnp.take(packed['emb_interaction'], interaction, axis=0),
              jnp.take(packed['emb_test'], test, axis=0),
              jnp.take(packed['emb_question'], question, axis=0),
              jnp.take(packed['emb_big'], big, axis=0),
              jnp.take(packed['emb_tag'], tag, axis=0)]
    x_in = jnp.concatenate(embeds + [cont_features.astype(jnp.float32)], axis=2)
    n_in = x_in.shape[-1]

    # HF GPT2-style extended attention mask (added after the causal mask)
    mask_bias = ((1.0 - mask.astype(jnp.float32)) * -1e9).reshape(bsz, 1, seq)

    assert seq % 8 == 0, "seq must be a multiple of the sublane count (8)"
    bt = _pick_batch_block(bsz, batch_block)
    nb = bsz // bt
    wpe_t = jnp.tile(packed['wpe'][:seq], (bt, 1))             # (bt*seq, H)

    def const(shape):
        n = len(shape)
        return pl.BlockSpec(shape, lambda b, l: (0,) * n)

    def per_layer(shape):
        rest = len(shape) - 1
        return pl.BlockSpec((1,) + tuple(shape[1:]),
                            lambda b, l: (l,) + (0,) * rest)

    out = pl.pallas_call(
        functools.partial(gpt2_kernel, n_heads=n_heads),
        grid=(nb, n_layers),
        in_specs=[
            pl.BlockSpec((bt, seq, n_in), lambda b, l: (b, 0, 0)),
            pl.BlockSpec((bt, 1, seq), lambda b, l: (b, 0, 0)),
            const((bt * seq, hidden)),
            const((n_in, hidden)),
            const((3, hidden)),
            per_layer((n_layers, 3 * n_heads, hidden, hd)),
            per_layer((n_layers, 3 * n_heads, 1, hd)),
            per_layer((n_layers, hidden, hidden)),
            per_layer((n_layers, hidden, inter)),
            per_layer((n_layers, inter, hidden)),
            per_layer((n_layers, 4, hidden)),
            per_layer((n_layers, 2, hidden)),
            per_layer((n_layers, 1, inter)),
            const((4, hidden)),
        ],
        out_specs=pl.BlockSpec((bt, 1, seq), lambda b, l: (b, 0, 0)),
        out_shape=jax.ShapeDtypeStruct((bsz, 1, seq), jnp.float32),
        scratch_shapes=[pltpu.VMEM((bt * seq, hidden), jnp.float32)],
        compiler_params=pltpu.CompilerParams(
            dimension_semantics=("parallel", "arbitrary")),
    )(x_in, mask_bias, wpe_t,
      packed['in_w'], packed['in_vec'],
      packed['wqkv'], packed['bqkv'], packed['wo'],
      packed['w_fc'], packed['w_pr'],
      packed['ln_gb'], packed['b_h'], packed['b_fc'], packed['fin'])

    return out.reshape(bsz, seq)   # drop the unit dim (free metadata reshape)


# -------------------------- parameter construction ---------------------------
# init_params produces torch-equivalent math-layout weights (in_features,
# out_features / GPT2 Conv1D layout); pack_params converts them once into the
# packed, per-head-split, bf16 kernel layout (scale folded into Q).

def init_params(key, cfg):
    hd = cfg['hidden_dim']
    hd3 = hd // 3
    hd2 = hd // 2
    inter = 4 * hd
    L = cfg['n_layers']
    keys = iter(jax.random.split(key, 64))

    def nrm(shape, scale=0.05):
        return (scale * jax.random.normal(next(keys), shape)).astype(jnp.float32)

    return dict(
        emb_interaction=nrm((3, hd3)),
        emb_test=nrm((cfg['n_test'] + 1, hd3)),
        emb_question=nrm((cfg['n_questions'] + 1, hd3)),
        emb_tag=nrm((cfg['n_tag'] + 1, hd3)),
        emb_big=nrm((cfg['n_big_features'] + 1, hd3)),
        wpe=nrm((cfg['max_seq_len'], hd)),
        comb_w=nrm((hd3 * cfg['n_cate'], hd2)), comb_b=nrm((hd2,)),
        comb_g=jnp.ones((hd2,), jnp.float32),
        comb_beta=jnp.zeros((hd2,), jnp.float32),
        cont_w=nrm((cfg['n_cont'], hd2)), cont_b=nrm((hd2,)),
        cont_g=jnp.ones((hd2,), jnp.float32),
        cont_beta=jnp.zeros((hd2,), jnp.float32),
        ln1_g=jnp.ones((L, hd), jnp.float32), ln1_b=jnp.zeros((L, hd), jnp.float32),
        attn_w=nrm((L, hd, 3 * hd)), attn_b=nrm((L, 3 * hd)),
        aproj_w=nrm((L, hd, hd)), aproj_b=nrm((L, hd)),
        ln2_g=jnp.ones((L, hd), jnp.float32), ln2_b=jnp.zeros((L, hd), jnp.float32),
        mlp_fc_w=nrm((L, hd, inter)), mlp_fc_b=nrm((L, inter)),
        mlp_proj_w=nrm((L, inter, hd)), mlp_proj_b=nrm((L, hd)),
        lnf_g=jnp.ones((hd,), jnp.float32), lnf_b=jnp.zeros((hd,), jnp.float32),
        fc_w=nrm((hd,)), fc_b=nrm(()),
    )


def pack_params(p, cfg):
    H = cfg['hidden_dim']
    nh = cfg['n_heads']
    hd = H // nh
    L = cfg['n_layers']
    hd2 = H // 2
    inter = 4 * H
    n_cate_in = (H // 3) * cfg['n_cate']
    n_in = n_cate_in + cfg['n_cont']
    scale = 1.0 / math.sqrt(hd)
    bf = jnp.bfloat16

    # block-diagonal fused input projection (comb_proj | cont_embed)
    in_w = jnp.zeros((n_in, H), jnp.float32)
    in_w = in_w.at[:n_cate_in, :hd2].set(p['comb_w'])
    in_w = in_w.at[n_cate_in:, hd2:].set(p['cont_w'])
    in_vec = jnp.stack([jnp.concatenate([p['comb_b'], p['cont_b']]),
                        jnp.concatenate([p['comb_g'], p['cont_g']]),
                        jnp.concatenate([p['comb_beta'], p['cont_beta']])])

    # per-head split of c_attn with the 1/sqrt(hd) scale folded into Q
    aw = p['attn_w'].reshape(L, H, 3, nh, hd)
    aw = jnp.transpose(aw, (0, 3, 2, 1, 4))        # (L, nh, 3, H, hd)
    aw = aw.at[:, :, 0].multiply(scale)
    wqkv = aw.reshape(L, nh * 3, H, hd)
    ab = p['attn_b'].reshape(L, 3, nh, hd)
    ab = jnp.transpose(ab, (0, 2, 1, 3))           # (L, nh, 3, hd)
    ab = ab.at[:, :, 0].multiply(scale)
    bqkv = ab.reshape(L, nh * 3, 1, hd)

    ln_gb = jnp.stack([p['ln1_g'], p['ln1_b'], p['ln2_g'], p['ln2_b']], axis=1)
    b_h = jnp.stack([p['aproj_b'], p['mlp_proj_b']], axis=1)   # (L, 2, H)
    b_fc = p['mlp_fc_b'].reshape(L, 1, inter)
    fin = jnp.stack([p['lnf_g'], p['lnf_b'], p['fc_w'],
                     jnp.full((H,), p['fc_b'], jnp.float32)])  # (4, H)

    return dict(
        emb_interaction=p['emb_interaction'], emb_test=p['emb_test'],
        emb_question=p['emb_question'], emb_tag=p['emb_tag'],
        emb_big=p['emb_big'], wpe=p['wpe'],
        in_w=in_w.astype(bf), in_vec=in_vec,
        wqkv=wqkv.astype(bf), bqkv=bqkv,
        wo=p['aproj_w'].astype(bf),
        w_fc=p['mlp_fc_w'].astype(bf), w_pr=p['mlp_proj_w'].astype(bf),
        ln_gb=ln_gb, b_h=b_h, b_fc=b_fc, fin=fin)


# ----------------------------------- main ------------------------------------

if __name__ == "__main__":
    cfg = dict(hidden_dim=32, n_layers=2, n_heads=2,
               n_test=10, n_questions=20, n_tag=7,
               n_big_features=5, n_cate=5, n_cont=3,
               max_seq_len=8)
    B, S = 16, 8

    key = jax.random.PRNGKey(0)
    k_param, k_in = jax.random.split(key)
    params = init_params(k_param, cfg)
    packed = pack_params(params, cfg)

    ks = jax.random.split(k_in, 8)
    test = jax.random.randint(ks[0], (B, S), 0, cfg['n_test'] + 1)
    question = jax.random.randint(ks[1], (B, S), 0, cfg['n_questions'] + 1)
    tag = jax.random.randint(ks[2], (B, S), 0, cfg['n_tag'] + 1)
    correct = jax.random.randint(ks[3], (B, S), 0, 2)
    mask = jnp.concatenate([jnp.zeros((B, S // 2), jnp.int32),
                            jnp.ones((B, S - S // 2), jnp.int32)], axis=1)
    interaction = jax.random.randint(ks[4], (B, S), 0, 3)
    big = jax.random.randint(ks[5], (B, S), 0, cfg['n_big_features'] + 1)
    index = jnp.arange(B * S, dtype=jnp.int32).reshape(B, S)
    cont_features = jax.random.normal(ks[6], (B, S, cfg['n_cont']), jnp.float32)

    cate_inputs = (test, question, tag, correct, mask, interaction, big, index)
    # TODO(synk): training-mode dropout (RNG) is not implemented; eval-mode
    # (identity) semantics are used, matching model.eval() inference.
    preds = gpt2_dkt_forward(packed, cate_inputs, cont_features, cfg,
                             batch_block=8)
    preds = jax.block_until_ready(preds)
    assert preds.shape == (B, S), preds.shape
    assert bool(jnp.all(jnp.isfinite(preds)))
    print("KERNEL_OK")
</pallas_src>

<mosaic_0001>
module attributes {stable_mosaic.version = 11 : i64} {
  func.func @gpt2_kernel(%arg0: i32, %arg1: i32, %arg2: memref<8x8x53xf32, #tpu.memory_space<vmem>>, %arg3: memref<8x1x8xf32, #tpu.memory_space<vmem>>, %arg4: memref<64x32xf32, #tpu.memory_space<vmem>>, %arg5: memref<53x32xbf16, #tpu.memory_space<vmem>>, %arg6: memref<3x32xf32, #tpu.memory_space<vmem>>, %arg7: memref<1x6x32x16xbf16, #tpu.memory_space<vmem>>, %arg8: memref<1x6x1x16xf32, #tpu.memory_space<vmem>>, %arg9: memref<1x32x32xbf16, #tpu.memory_space<vmem>>, %arg10: memref<1x32x128xbf16, #tpu.memory_space<vmem>>, %arg11: memref<1x128x32xbf16, #tpu.memory_space<vmem>>, %arg12: memref<1x4x32xf32, #tpu.memory_space<vmem>>, %arg13: memref<1x2x32xf32, #tpu.memory_space<vmem>>, %arg14: memref<1x1x128xf32, #tpu.memory_space<vmem>>, %arg15: memref<4x32xf32, #tpu.memory_space<vmem>>, %arg16: memref<8x1x8xf32, #tpu.memory_space<vmem>>, %arg17: memref<64x32xf32, #tpu.memory_space<vmem>>) attributes {dimension_semantics = [#tpu.dimension_semantics<parallel>, #tpu.dimension_semantics<arbitrary>], iteration_bounds = array<i64: 2, 2>, scalar_prefetch = 0 : i64, scratch_operands = 1 : i64, tpu.core_type = #tpu.core_type<tc>, window_params = [{transform_indices = @transform_0, window_bounds = array<i64: 8, 8, 53>}, {transform_indices = @transform_1, window_bounds = array<i64: 8, 1, 8>}, {pipeline_mode = #tpu.pipeline_mode<synchronous>, transform_indices = @transform_2, window_bounds = array<i64: 64, 32>}, {pipeline_mode = #tpu.pipeline_mode<synchronous>, transform_indices = @transform_3, window_bounds = array<i64: 53, 32>}, {pipeline_mode = #tpu.pipeline_mode<synchronous>, transform_indices = @transform_4, window_bounds = array<i64: 3, 32>}, {transform_indices = @transform_5, window_bounds = array<i64: 1, 6, 32, 16>}, {transform_indices = @transform_6, window_bounds = array<i64: 1, 6, 1, 16>}, {transform_indices = @transform_7, window_bounds = array<i64: 1, 32, 32>}, {transform_indices = @transform_8, window_bounds = array<i64: 1, 32, 128>}, {transform_indices = @transform_9, window_bounds = array<i64: 1, 128, 32>}, {transform_indices = @transform_10, window_bounds = array<i64: 1, 4, 32>}, {transform_indices = @transform_11, window_bounds = array<i64: 1, 2, 32>}, {transform_indices = @transform_12, window_bounds = array<i64: 1, 1, 128>}, {pipeline_mode = #tpu.pipeline_mode<synchronous>, transform_indices = @transform_13, window_bounds = array<i64: 4, 32>}, {transform_indices = @transform_14, window_bounds = array<i64: 8, 1, 8>}]} {
    %c0_i32 = arith.constant 0 : i32
    %0 = arith.cmpi eq, %arg1, %c0_i32 : i32
    %1 = arith.extui %0 : i1 to i32
    %c0_i32_0 = arith.constant 0 : i32
    %2 = arith.cmpi ne, %1, %c0_i32_0 : i32
    scf.if %2 {
      %c0_116 = arith.constant 0 : index
      %c0_117 = arith.constant 0 : index
      %c0_118 = arith.constant 0 : index
      %202 = vector.load %arg2[%c0_116, %c0_117, %c0_118] : memref<8x8x53xf32, #tpu.memory_space<vmem>>, vector<8x8x53xf32>
      %203 = vector.shape_cast %202 : vector<8x8x53xf32> to vector<64x53xf32>
      %204 = arith.truncf %203 : vector<64x53xf32> to vector<64x53xbf16>
      %c0_119 = arith.constant 0 : index
      %c0_120 = arith.constant 0 : index
      %205 = vector.load %arg5[%c0_119, %c0_120] : memref<53x32xbf16, #tpu.memory_space<vmem>>, vector<53x32xbf16>
      %cst_121 = arith.constant dense<0.000000e+00> : vector<64x32xf32>
      %206 = tpu.matmul %204, %205, %cst_121 {dimension_numbers = #tpu.dot_dimension_numbers<[1], [0], [0], [1], [0, 0, 1, 1], [], []>} : vector<64x53xbf16>, vector<53x32xbf16>, vector<64x32xf32> -> vector<64x32xf32>
      %c0_122 = arith.constant 0 : index
      %c0_123 = arith.constant 0 : index
      %207 = vector.load %arg6[%c0_122, %c0_123] : memref<3x32xf32, #tpu.memory_space<vmem>>, vector<1x32xf32>
      %208 = vector.broadcast %207 : vector<1x32xf32> to vector<64x32xf32>
      %209 = arith.addf %206, %208 : vector<64x32xf32>
      %210 = tpu.iota {dimensions = array<i32: 1>} : vector<1x32xi32>
      %c16_i32 = arith.constant 16 : i32
      %211 = vector.broadcast %c16_i32 : i32 to vector<1x32xi32>
      %212 = arith.cmpi slt, %210, %211 : vector<1x32xi32>
      %213 = arith.extui %212 : vector<1x32xi1> to vector<1x32xi32>
      %214 = arith.sitofp %213 : vector<1x32xi32> to vector<1x32xf32>
      %cst_124 = arith.constant 1.000000e+00 : f32
      %215 = vector.broadcast %cst_124 : f32 to vector<1x32xf32>
      %216 = arith.subf %215, %214 : vector<1x32xf32>
      %217 = vector.broadcast %214 : vector<1x32xf32> to vector<64x32xf32>
      %218 = arith.mulf %209, %217 : vector<64x32xf32>
      %cst_125 = arith.constant dense<0.000000e+00> : vector<64xf32>
      %219 = vector.multi_reduction <add>, %218, %cst_125 [1] : vector<64x32xf32> to vector<64xf32>
      %220 = vector.shape_cast %219 : vector<64xf32> to vector<64x1xf32>
      %221 = vector.broadcast %220 : vector<64x1xf32> to vector<64x32xf32>
      %222 = vector.broadcast %214 : vector<1x32xf32> to vector<64x32xf32>
      %223 = arith.mulf %221, %222 : vector<64x32xf32>
      %224 = vector.broadcast %216 : vector<1x32xf32> to vector<64x32xf32>
      %225 = arith.mulf %209, %224 : vector<64x32xf32>
      %cst_126 = arith.constant dense<0.000000e+00> : vector<64xf32>
      %226 = vector.multi_reduction <add>, %225, %cst_126 [1] : vector<64x32xf32> to vector<64xf32>
      %227 = vector.shape_cast %226 : vector<64xf32> to vector<64x1xf32>
      %228 = vector.broadcast %227 : vector<64x1xf32> to vector<64x32xf32>
      %229 = vector.broadcast %216 : vector<1x32xf32> to vector<64x32xf32>
      %230 = arith.mulf %228, %229 : vector<64x32xf32>
      %231 = arith.addf %223, %230 : vector<64x32xf32>
      %cst_127 = arith.constant 6.250000e-02 : f32
      %232 = vector.broadcast %cst_127 : f32 to vector<64x32xf32>
      %233 = arith.mulf %231, %232 : vector<64x32xf32>
      %234 = arith.subf %209, %233 : vector<64x32xf32>
      %235 = arith.mulf %234, %234 : vector<64x32xf32>
      %236 = vector.broadcast %214 : vector<1x32xf32> to vector<64x32xf32>
      %237 = arith.mulf %235, %236 : vector<64x32xf32>
      %cst_128 = arith.constant dense<0.000000e+00> : vector<64xf32>
      %238 = vector.multi_reduction <add>, %237, %cst_128 [1] : vector<64x32xf32> to vector<64xf32>
      %239 = vector.shape_cast %238 : vector<64xf32> to vector<64x1xf32>
      %240 = vector.broadcast %239 : vector<64x1xf32> to vector<64x32xf32>
      %241 = vector.broadcast %214 : vector<1x32xf32> to vector<64x32xf32>
      %242 = arith.mulf %240, %241 : vector<64x32xf32>
      %243 = arith.mulf %234, %234 : vector<64x32xf32>
      %244 = vector.broadcast %216 : vector<1x32xf32> to vector<64x32xf32>
      %245 = arith.mulf %243, %244 : vector<64x32xf32>
      %cst_129 = arith.constant dense<0.000000e+00> : vector<64xf32>
      %246 = vector.multi_reduction <add>, %245, %cst_129 [1] : vector<64x32xf32> to vector<64xf32>
      %247 = vector.shape_cast %246 : vector<64xf32> to vector<64x1xf32>
      %248 = vector.broadcast %247 : vector<64x1xf32> to vector<64x32xf32>
      %249 = vector.broadcast %216 : vector<1x32xf32> to vector<64x32xf32>
      %250 = arith.mulf %248, %249 : vector<64x32xf32>
      %251 = arith.addf %242, %250 : vector<64x32xf32>
      %cst_130 = arith.constant 6.250000e-02 : f32
      %252 = vector.broadcast %cst_130 : f32 to vector<64x32xf32>
      %253 = arith.mulf %251, %252 : vector<64x32xf32>
      %cst_131 = arith.constant 9.99999974E-6 : f32
      %254 = vector.broadcast %cst_131 : f32 to vector<64x32xf32>
      %255 = arith.addf %253, %254 : vector<64x32xf32>
      %256 = math.rsqrt %255 : vector<64x32xf32>
      %257 = arith.mulf %234, %256 : vector<64x32xf32>
      %c1_132 = arith.constant 1 : index
      %c0_133 = arith.constant 0 : index
      %258 = vector.load %arg6[%c1_132, %c0_133] : memref<3x32xf32, #tpu.memory_space<vmem>>, vector<1x32xf32>
      %259 = vector.broadcast %258 : vector<1x32xf32> to vector<64x32xf32>
      %260 = arith.mulf %257, %259 : vector<64x32xf32>
      %c2_134 = arith.constant 2 : index
      %c0_135 = arith.constant 0 : index
      %261 = vector.load %arg6[%c2_134, %c0_135] : memref<3x32xf32, #tpu.memory_space<vmem>>, vector<1x32xf32>
      %262 = vector.broadcast %261 : vector<1x32xf32> to vector<64x32xf32>
      %263 = arith.addf %260, %262 : vector<64x32xf32>
      %c0_136 = arith.constant 0 : index
      %c0_137 = arith.constant 0 : index
      %264 = vector.load %arg4[%c0_136, %c0_137] : memref<64x32xf32, #tpu.memory_space<vmem>>, vector<64x32xf32>
      %265 = arith.addf %263, %264 : vector<64x32xf32>
      %c0_138 = arith.constant 0 : index
      %c0_139 = arith.constant 0 : index
      %266 = vector.load %arg17[%c0_138, %c0_139] : memref<64x32xf32, #tpu.memory_space<vmem>>, vector<64x32xf32>
      tpu.vector_store %arg17[%c0_138, %c0_139], %265 {strides = array<i32>} : memref<64x32xf32, #tpu.memory_space<vmem>>, vector<64x32xf32>,
    } else {
    }
    %c0 = arith.constant 0 : index
    %c0_1 = arith.constant 0 : index
    %3 = vector.load %arg17[%c0, %c0_1] : memref<64x32xf32, #tpu.memory_space<vmem>>, vector<64x32xf32>
    %4 = tpu.iota {dimensions = array<i32: 0>} : vector<8x8xi32>
    %5 = tpu.iota {dimensions = array<i32: 1>} : vector<8x8xi32>
    %6 = arith.cmpi sle, %5, %4 : vector<8x8xi32>
    %7 = vector.shape_cast %6 : vector<8x8xi1> to vector<1x8x8xi1>
    %c0_2 = arith.constant 0 : index
    %c0_3 = arith.constant 0 : index
    %c0_4 = arith.constant 0 : index
    %8 = vector.load %arg3[%c0_2, %c0_3, %c0_4] : memref<8x1x8xf32, #tpu.memory_space<vmem>>, vector<8x1x8xf32>
    %cst = arith.constant -1.000000e+30 : f32
    %9 = vector.shape_cast %7 : vector<1x8x8xi1> to vector<1x8x8xi1>
    %10 = vector.broadcast %9 : vector<1x8x8xi1> to vector<8x8x8xi1>
    %11 = vector.shape_cast %8 : vector<8x1x8xf32> to vector<8x1x8xf32>
    %12 = vector.broadcast %11 : vector<8x1x8xf32> to vector<8x8x8xf32>
    %13 = vector.broadcast %cst : f32 to vector<8x8x8xf32>
    %14 = arith.select %10, %12, %13 : vector<8x8x8xi1>, vector<8x8x8xf32>
    %c0_5 = arith.constant 0 : index
    %c0_6 = arith.constant 0 : index
    %c0_7 = arith.constant 0 : index
    %15 = vector.load %arg12[%c0_5, %c0_6, %c0_7] : memref<1x4x32xf32, #tpu.memory_space<vmem>>, vector<1x1x32xf32>
    %16 = vector.shape_cast %15 : vector<1x1x32xf32> to vector<1x32xf32>
    %c0_8 = arith.constant 0 : index
    %c1 = arith.constant 1 : index
    %c0_9 = arith.constant 0 : index
    %17 = vector.load %arg12[%c0_8, %c1, %c0_9] : memref<1x4x32xf32, #tpu.memory_space<vmem>>, vector<1x1x32xf32>
    %18 = vector.shape_cast %17 : vector<1x1x32xf32> to vector<1x32xf32>
    %cst_10 = arith.constant dense<0.000000e+00> : vector<64xf32>
    %19 = vector.multi_reduction <add>, %3, %cst_10 [1] : vector<64x32xf32> to vector<64xf32>
    %20 = vector.shape_cast %19 : vector<64xf32> to vector<64x1xf32>
    %cst_11 = arith.constant 3.200000e+01 : f32
    %21 = vector.broadcast %cst_11 : f32 to vector<64x1xf32>
    %22 = arith.divf %20, %21 : vector<64x1xf32>
    %23 = vector.broadcast %22 : vector<64x1xf32> to vector<64x32xf32>
    %24 = arith.subf %3, %23 : vector<64x32xf32>
    %25 = arith.mulf %24, %24 : vector<64x32xf32>
    %cst_12 = arith.constant dense<0.000000e+00> : vector<64xf32>
    %26 = vector.multi_reduction <add>, %25, %cst_12 [1] : vector<64x32xf32> to vector<64xf32>
    %27 = vector.shape_cast %26 : vector<64xf32> to vector<64x1xf32>
    %cst_13 = arith.constant 3.200000e+01 : f32
    %28 = vector.broadcast %cst_13 : f32 to vector<64x1xf32>
    %29 = arith.divf %27, %28 : vector<64x1xf32>
    %30 = vector.broadcast %22 : vector<64x1xf32> to vector<64x32xf32>
    %31 = arith.subf %3, %30 : vector<64x32xf32>
    %cst_14 = arith.constant 9.99999974E-6 : f32
    %32 = vector.broadcast %cst_14 : f32 to vector<64x1xf32>
    %33 = arith.addf %29, %32 : vector<64x1xf32>
    %34 = math.rsqrt %33 : vector<64x1xf32>
    %35 = vector.broadcast %34 : vector<64x1xf32> to vector<64x32xf32>
    %36 = arith.mulf %31, %35 : vector<64x32xf32>
    %37 = vector.broadcast %16 : vector<1x32xf32> to vector<64x32xf32>
    %38 = arith.mulf %36, %37 : vector<64x32xf32>
    %39 = vector.broadcast %18 : vector<1x32xf32> to vector<64x32xf32>
    %40 = arith.addf %38, %39 : vector<64x32xf32>
    %41 = arith.truncf %40 : vector<64x32xf32> to vector<64x32xbf16>
    %cst_15 = arith.constant 0.000000e+00 : f32
    %42 = vector.broadcast %cst_15 : f32 to vector<64x32xf32>
    %c0_16 = arith.constant 0 : index
    %c0_17 = arith.constant 0 : index
    %c0_18 = arith.constant 0 : index
    %c0_19 = arith.constant 0 : index
    %43 = vector.load %arg7[%c0_16, %c0_17, %c0_18, %c0_19] : memref<1x6x32x16xbf16, #tpu.memory_space<vmem>>, vector<1x1x32x16xbf16>
    %44 = vector.shape_cast %43 : vector<1x1x32x16xbf16> to vector<32x16xbf16>
    %cst_20 = arith.constant dense<0.000000e+00> : vector<64x16xf32>
    %45 = tpu.matmul %41, %44, %cst_20 {dimension_numbers = #tpu.dot_dimension_numbers<[1], [0], [0], [1], [0, 0, 1, 1], [], []>} : vector<64x32xbf16>, vector<32x16xbf16>, vector<64x16xf32> -> vector<64x16xf32>
    %c0_21 = arith.constant 0 : index
    %c0_22 = arith.constant 0 : index
    %c0_23 = arith.constant 0 : index
    %c0_24 = arith.constant 0 : index
    %46 = vector.load %arg8[%c0_21, %c0_22, %c0_23, %c0_24] : memref<1x6x1x16xf32, #tpu.memory_space<vmem>>, vector<1x1x1x16xf32>
    %47 = vector.shape_cast %46 : vector<1x1x1x16xf32> to vector<1x16xf32>
    %48 = vector.broadcast %47 : vector<1x16xf32> to vector<64x16xf32>
    %49 = arith.addf %45, %48 : vector<64x16xf32>
    %c0_25 = arith.constant 0 : index
    %c1_26 = arith.constant 1 : index
    %c0_27 = arith.constant 0 : index
    %c0_28 = arith.constant 0 : index
    %50 = vector.load %arg7[%c0_25, %c1_26, %c0_27, %c0_28] : memref<1x6x32x16xbf16, #tpu.memory_space<vmem>>, vector<1x1x32x16xbf16>
    %51 = vector.shape_cast %50 : vector<1x1x32x16xbf16> to vector<32x16xbf16>
    %cst_29 = arith.constant dense<0.000000e+00> : vector<64x16xf32>
    %52 = tpu.matmul %41, %51, %cst_29 {dimension_numbers = #tpu.dot_dimension_numbers<[1], [0], [0], [1], [0, 0, 1, 1], [], []>} : vector<64x32xbf16>, vector<32x16xbf16>, vector<64x16xf32> -> vector<64x16xf32>
    %c0_30 = arith.constant 0 : index
    %c1_31 = arith.constant 1 : index
    %c0_32 = arith.constant 0 : index
    %c0_33 = arith.constant 0 : index
    %53 = vector.load %arg8[%c0_30, %c1_31, %c0_32, %c0_33] : memref<1x6x1x16xf32, #tpu.memory_space<vmem>>, vector<1x1x1x16xf32>
    %54 = vector.shape_cast %53 : vector<1x1x1x16xf32> to vector<1x16xf32>
    %55 = vector.broadcast %54 : vector<1x16xf32> to vector<64x16xf32>
    %56 = arith.addf %52, %55 : vector<64x16xf32>
    %c0_34 = arith.constant 0 : index
    %c2 = arith.constant 2 : index
    %c0_35 = arith.constant 0 : index
    %c0_36 = arith.constant 0 : index
    %57 = vector.load %arg7[%c0_34, %c2, %c0_35, %c0_36] : memref<1x6x32x16xbf16, #tpu.memory_space<vmem>>, vector<1x1x32x16xbf16>
    %58 = vector.shape_cast %57 : vector<1x1x32x16xbf16> to vector<32x16xbf16>
    %cst_37 = arith.constant dense<0.000000e+00> : vector<64x16xf32>
    %59 = tpu.matmul %41, %58, %cst_37 {dimension_numbers = #tpu.dot_dimension_numbers<[1], [0], [0], [1], [0, 0, 1, 1], [], []>} : vector<64x32xbf16>, vector<32x16xbf16>, vector<64x16xf32> -> vector<64x16xf32>
    %c0_38 = arith.constant 0 : index
    %c2_39 = arith.constant 2 : index
    %c0_40 = arith.constant 0 : index
    %c0_41 = arith.constant 0 : index
    %60 = vector.load %arg8[%c0_38, %c2_39, %c0_40, %c0_41] : memref<1x6x1x16xf32, #tpu.memory_space<vmem>>, vector<1x1x1x16xf32>
    %61 = vector.shape_cast %60 : vector<1x1x1x16xf32> to vector<1x16xf32>
    %62 = vector.broadcast %61 : vector<1x16xf32> to vector<64x16xf32>
    %63 = arith.addf %59, %62 : vector<64x16xf32>
    %64 = vector.shape_cast %49 : vector<64x16xf32> to vector<8x8x16xf32>
    %65 = arith.truncf %64 : vector<8x8x16xf32> to vector<8x8x16xbf16>
    %66 = vector.shape_cast %56 : vector<64x16xf32> to vector<8x8x16xf32>
    %67 = arith.truncf %66 : vector<8x8x16xf32> to vector<8x8x16xbf16>
    %68 = vector.shape_cast %63 : vector<64x16xf32> to vector<8x8x16xf32>
    %69 = arith.truncf %68 : vector<8x8x16xf32> to vector<8x8x16xbf16>
    "tpu.trace_start"() <{level = 10 : i32, message = "bqd,bkd->bqk"}> : () -> ()
    %cst_42 = arith.constant dense<0.000000e+00> : vector<8x8x8xf32>
    %70 = tpu.matmul %65, %67, %cst_42 {dimension_numbers = #tpu.dot_dimension_numbers<[2], [2], [1], [1], [0, 0, 0, 1, 1, 1], [0], [0]>} : vector<8x8x16xbf16>, vector<8x8x16xbf16>, vector<8x8x8xf32> -> vector<8x8x8xf32>
    "tpu.trace_stop"() : () -> ()
    %71 = arith.addf %70, %14 : vector<8x8x8xf32>
    %cst_43 = arith.constant dense<0xFF800000> : vector<8x8xf32>
    %72 = vector.multi_reduction <maximumf>, %71, %cst_43 [2] : vector<8x8x8xf32> to vector<8x8xf32>
    %73 = vector.shape_cast %72 : vector<8x8xf32> to vector<8x8x1xf32>
    %74 = vector.broadcast %73 : vector<8x8x1xf32> to vector<8x8x8xf32>
    %75 = arith.subf %71, %74 : vector<8x8x8xf32>
    %76 = math.exp %75 : vector<8x8x8xf32>
    %cst_44 = arith.constant dense<0.000000e+00> : vector<8x8xf32>
    %77 = vector.multi_reduction <add>, %76, %cst_44 [2] : vector<8x8x8xf32> to vector<8x8xf32>
    %78 = vector.shape_cast %77 : vector<8x8xf32> to vector<8x8x1xf32>
    %79 = tpu.reciprocal %78 {approx = true} : vector<8x8x1xf32> -> vector<8x8x1xf32>
    %80 = vector.broadcast %79 : vector<8x8x1xf32> to vector<8x8x8xf32>
    %81 = arith.mulf %76, %80 : vector<8x8x8xf32>
    %82 = arith.truncf %81 : vector<8x8x8xf32> to vector<8x8x8xbf16>
    "tpu.trace_start"() <{level = 10 : i32, message = "bqk,bkd->bqd"}> : () -> ()
    %cst_45 = arith.constant dense<0.000000e+00> : vector<8x8x16xf32>
    %83 = tpu.matmul %82, %69, %cst_45 {dimension_numbers = #tpu.dot_dimension_numbers<[2], [1], [1], [2], [0, 0, 0, 1, 1, 2], [0], [0]>} : vector<8x8x8xbf16>, vector<8x8x16xbf16>, vector<8x8x16xf32> -> vector<8x8x16xf32>
    "tpu.trace_stop"() : () -> ()
    %84 = vector.shape_cast %83 : vector<8x8x16xf32> to vector<64x16xf32>
    %85 = arith.truncf %84 : vector<64x16xf32> to vector<64x16xbf16>
    %c0_46 = arith.constant 0 : index
    %c0_47 = arith.constant 0 : index
    %c0_48 = arith.constant 0 : index
    %86 = vector.load %arg9[%c0_46, %c0_47, %c0_48] : memref<1x32x32xbf16, #tpu.memory_space<vmem>>, vector<1x16x32xbf16>
    %87 = vector.shape_cast %86 : vector<1x16x32xbf16> to vector<16x32xbf16>
    %cst_49 = arith.constant dense<0.000000e+00> : vector<64x32xf32>
    %88 = tpu.matmul %85, %87, %cst_49 {dimension_numbers = #tpu.dot_dimension_numbers<[1], [0], [0], [1], [0, 0, 1, 1], [], []>} : vector<64x16xbf16>, vector<16x32xbf16>, vector<64x32xf32> -> vector<64x32xf32>
    %89 = arith.addf %42, %88 : vector<64x32xf32>
    %c0_50 = arith.constant 0 : index
    %c3 = arith.constant 3 : index
    %c0_51 = arith.constant 0 : index
    %c0_52 = arith.constant 0 : index
    %90 = vector.load %arg7[%c0_50, %c3, %c0_51, %c0_52] : memref<1x6x32x16xbf16, #tpu.memory_space<vmem>>, vector<1x1x32x16xbf16>
    %91 = vector.shape_cast %90 : vector<1x1x32x16xbf16> to vector<32x16xbf16>
    %cst_53 = arith.constant dense<0.000000e+00> : vector<64x16xf32>
    %92 = tpu.matmul %41, %91, %cst_53 {dimension_numbers = #tpu.dot_dimension_numbers<[1], [0], [0], [1], [0, 0, 1, 1], [], []>} : vector<64x32xbf16>, vector<32x16xbf16>, vector<64x16xf32> -> vector<64x16xf32>
    %c0_54 = arith.constant 0 : index
    %c3_55 = arith.constant 3 : index
    %c0_56 = arith.constant 0 : index
    %c0_57 = arith.constant 0 : index
    %93 = vector.load %arg8[%c0_54, %c3_55, %c0_56, %c0_57] : memref<1x6x1x16xf32, #tpu.memory_space<vmem>>, vector<1x1x1x16xf32>
    %94 = vector.shape_cast %93 : vector<1x1x1x16xf32> to vector<1x16xf32>
    %95 = vector.broadcast %94 : vector<1x16xf32> to vector<64x16xf32>
    %96 = arith.addf %92, %95 : vector<64x16xf32>
    %c0_58 = arith.constant 0 : index
    %c4 = arith.constant 4 : index
    %c0_59 = arith.constant 0 : index
    %c0_60 = arith.constant 0 : index
    %97 = vector.load %arg7[%c0_58, %c4, %c0_59, %c0_60] : memref<1x6x32x16xbf16, #tpu.memory_space<vmem>>, vector<1x1x32x16xbf16>
    %98 = vector.shape_cast %97 : vector<1x1x32x16xbf16> to vector<32x16xbf16>
    %cst_61 = arith.constant dense<0.000000e+00> : vector<64x16xf32>
    %99 = tpu.matmul %41, %98, %cst_61 {dimension_numbers = #tpu.dot_dimension_numbers<[1], [0], [0], [1], [0, 0, 1, 1], [], []>} : vector<64x32xbf16>, vector<32x16xbf16>, vector<64x16xf32> -> vector<64x16xf32>
    %c0_62 = arith.constant 0 : index
    %c4_63 = arith.constant 4 : index
    %c0_64 = arith.constant 0 : index
    %c0_65 = arith.constant 0 : index
    %100 = vector.load %arg8[%c0_62, %c4_63, %c0_64, %c0_65] : memref<1x6x1x16xf32, #tpu.memory_space<vmem>>, vector<1x1x1x16xf32>
    %101 = vector.shape_cast %100 : vector<1x1x1x16xf32> to vector<1x16xf32>
    %102 = vector.broadcast %101 : vector<1x16xf32> to vector<64x16xf32>
    %103 = arith.addf %99, %102 : vector<64x16xf32>
    %c0_66 = arith.constant 0 : index
    %c5 = arith.constant 5 : index
    %c0_67 = arith.constant 0 : index
    %c0_68 = arith.constant 0 : index
    %104 = vector.load %arg7[%c0_66, %c5, %c0_67, %c0_68] : memref<1x6x32x16xbf16, #tpu.memory_space<vmem>>, vector<1x1x32x16xbf16>
    %105 = vector.shape_cast %104 : vector<1x1x32x16xbf16> to vector<32x16xbf16>
    %cst_69 = arith.constant dense<0.000000e+00> : vector<64x16xf32>
    %106 = tpu.matmul %41, %105, %cst_69 {dimension_numbers = #tpu.dot_dimension_numbers<[1], [0], [0], [1], [0, 0, 1, 1], [], []>} : vector<64x32xbf16>, vector<32x16xbf16>, vector<64x16xf32> -> vector<64x16xf32>
    %c0_70 = arith.constant 0 : index
    %c5_71 = arith.constant 5 : index
    %c0_72 = arith.constant 0 : index
    %c0_73 = arith.constant 0 : index
    %107 = vector.load %arg8[%c0_70, %c5_71, %c0_72, %c0_73] : memref<1x6x1x16xf32, #tpu.memory_space<vmem>>, vector<1x1x1x16xf32>
    %108 = vector.shape_cast %107 : vector<1x1x1x16xf32> to vector<1x16xf32>
    %109 = vector.broadcast %108 : vector<1x16xf32> to vector<64x16xf32>
    %110 = arith.addf %106, %109 : vector<64x16xf32>
    %111 = vector.shape_cast %96 : vector<64x16xf32> to vector<8x8x16xf32>
    %112 = arith.truncf %111 : vector<8x8x16xf32> to vector<8x8x16xbf16>
    %113 = vector.shape_cast %103 : vector<64x16xf32> to vector<8x8x16xf32>
    %114 = arith.truncf %113 : vector<8x8x16xf32> to vector<8x8x16xbf16>
    %115 = vector.shape_cast %110 : vector<64x16xf32> to vector<8x8x16xf32>
    %116 = arith.truncf %115 : vector<8x8x16xf32> to vector<8x8x16xbf16>
    "tpu.trace_start"() <{level = 10 : i32, message = "bqd,bkd->bqk"}> : () -> ()
    %cst_74 = arith.constant dense<0.000000e+00> : vector<8x8x8xf32>
    %117 = tpu.matmul %112, %114, %cst_74 {dimension_numbers = #tpu.dot_dimension_numbers<[2], [2], [1], [1], [0, 0, 0, 1, 1, 1], [0], [0]>} : vector<8x8x16xbf16>, vector<8x8x16xbf16>, vector<8x8x8xf32> -> vector<8x8x8xf32>
    "tpu.trace_stop"() : () -> ()
    %118 = arith.addf %117, %14 : vector<8x8x8xf32>
    %cst_75 = arith.constant dense<0xFF800000> : vector<8x8xf32>
    %119 = vector.multi_reduction <maximumf>, %118, %cst_75 [2] : vector<8x8x8xf32> to vector<8x8xf32>
    %120 = vector.shape_cast %119 : vector<8x8xf32> to vector<8x8x1xf32>
    %121 = vector.broadcast %120 : vector<8x8x1xf32> to vector<8x8x8xf32>
    %122 = arith.subf %118, %121 : vector<8x8x8xf32>
    %123 = math.exp %122 : vector<8x8x8xf32>
    %cst_76 = arith.constant dense<0.000000e+00> : vector<8x8xf32>
    %124 = vector.multi_reduction <add>, %123, %cst_76 [2] : vector<8x8x8xf32> to vector<8x8xf32>
    %125 = vector.shape_cast %124 : vector<8x8xf32> to vector<8x8x1xf32>
    %126 = tpu.reciprocal %125 {approx = true} : vector<8x8x1xf32> -> vector<8x8x1xf32>
    %127 = vector.broadcast %126 : vector<8x8x1xf32> to vector<8x8x8xf32>
    %128 = arith.mulf %123, %127 : vector<8x8x8xf32>
    %129 = arith.truncf %128 : vector<8x8x8xf32> to vector<8x8x8xbf16>
    "tpu.trace_start"() <{level = 10 : i32, message = "bqk,bkd->bqd"}> : () -> ()
    %cst_77 = arith.constant dense<0.000000e+00> : vector<8x8x16xf32>
    %130 = tpu.matmul %129, %116, %cst_77 {dimension_numbers = #tpu.dot_dimension_numbers<[2], [1], [1], [2], [0, 0, 0, 1, 1, 2], [0], [0]>} : vector<8x8x8xbf16>, vector<8x8x16xbf16>, vector<8x8x16xf32> -> vector<8x8x16xf32>
    "tpu.trace_stop"() : () -> ()
    %131 = vector.shape_cast %130 : vector<8x8x16xf32> to vector<64x16xf32>
    %132 = arith.truncf %131 : vector<64x16xf32> to vector<64x16xbf16>
    %c0_78 = arith.constant 0 : index
    %c16 = arith.constant 16 : index
    %c0_79 = arith.constant 0 : index
    %133 = vector.load %arg9[%c0_78, %c16, %c0_79] : memref<1x32x32xbf16, #tpu.memory_space<vmem>>, vector<1x16x32xbf16>
    %134 = vector.shape_cast %133 : vector<1x16x32xbf16> to vector<16x32xbf16>
    %cst_80 = arith.constant dense<0.000000e+00> : vector<64x32xf32>
    %135 = tpu.matmul %132, %134, %cst_80 {dimension_numbers = #tpu.dot_dimension_numbers<[1], [0], [0], [1], [0, 0, 1, 1], [], []>} : vector<64x16xbf16>, vector<16x32xbf16>, vector<64x32xf32> -> vector<64x32xf32>
    %136 = arith.addf %89, %135 : vector<64x32xf32>
    %137 = arith.addf %3, %136 : vector<64x32xf32>
    %c0_81 = arith.constant 0 : index
    %c0_82 = arith.constant 0 : index
    %c0_83 = arith.constant 0 : index
    %138 = vector.load %arg13[%c0_81, %c0_82, %c0_83] : memref<1x2x32xf32, #tpu.memory_space<vmem>>, vector<1x1x32xf32>
    %139 = vector.shape_cast %138 : vector<1x1x32xf32> to vector<1x32xf32>
    %140 = vector.broadcast %139 : vector<1x32xf32> to vector<64x32xf32>
    %141 = arith.addf %137, %140 : vector<64x32xf32>
    %c0_84 = arith.constant 0 : index
    %c2_85 = arith.constant 2 : index
    %c0_86 = arith.constant 0 : index
    %142 = vector.load %arg12[%c0_84, %c2_85, %c0_86] : memref<1x4x32xf32, #tpu.memory_space<vmem>>, vector<1x1x32xf32>
    %143 = vector.shape_cast %142 : vector<1x1x32xf32> to vector<1x32xf32>
    %c0_87 = arith.constant 0 : index
    %c3_88 = arith.constant 3 : index
    %c0_89 = arith.constant 0 : index
    %144 = vector.load %arg12[%c0_87, %c3_88, %c0_89] : memref<1x4x32xf32, #tpu.memory_space<vmem>>, vector<1x1x32xf32>
    %145 = vector.shape_cast %144 : vector<1x1x32xf32> to vector<1x32xf32>
    %cst_90 = arith.constant dense<0.000000e+00> : vector<64xf32>
    %146 = vector.multi_reduction <add>, %141, %cst_90 [1] : vector<64x32xf32> to vector<64xf32>
    %147 = vector.shape_cast %146 : vector<64xf32> to vector<64x1xf32>
    %cst_91 = arith.constant 3.200000e+01 : f32
    %148 = vector.broadcast %cst_91 : f32 to vector<64x1xf32>
    %149 = arith.divf %147, %148 : vector<64x1xf32>
    %150 = vector.broadcast %149 : vector<64x1xf32> to vector<64x32xf32>
    %151 = arith.subf %141, %150 : vector<64x32xf32>
    %152 = arith.mulf %151, %151 : vector<64x32xf32>
    %cst_92 = arith.constant dense<0.000000e+00> : vector<64xf32>
    %153 = vector.multi_reduction <add>, %152, %cst_92 [1] : vector<64x32xf32> to vector<64xf32>
    %154 = vector.shape_cast %153 : vector<64xf32> to vector<64x1xf32>
    %cst_93 = arith.constant 3.200000e+01 : f32
    %155 = vector.broadcast %cst_93 : f32 to vector<64x1xf32>
    %156 = arith.divf %154, %155 : vector<64x1xf32>
    %157 = vector.broadcast %149 : vector<64x1xf32> to vector<64x32xf32>
    %158 = arith.subf %141, %157 : vector<64x32xf32>
    %cst_94 = arith.constant 9.99999974E-6 : f32
    %159 = vector.broadcast %cst_94 : f32 to vector<64x1xf32>
    %160 = arith.addf %156, %159 : vector<64x1xf32>
    %161 = math.rsqrt %160 : vector<64x1xf32>
    %162 = vector.broadcast %161 : vector<64x1xf32> to vector<64x32xf32>
    %163 = arith.mulf %158, %162 : vector<64x32xf32>
    %164 = vector.broadcast %143 : vector<1x32xf32> to vector<64x32xf32>
    %165 = arith.mulf %163, %164 : vector<64x32xf32>
    %166 = vector.broadcast %145 : vector<1x32xf32> to vector<64x32xf32>
    %167 = arith.addf %165, %166 : vector<64x32xf32>
    %168 = arith.truncf %167 : vector<64x32xf32> to vector<64x32xbf16>
    %c0_95 = arith.constant 0 : index
    %c0_96 = arith.constant 0 : index
    %c0_97 = arith.constant 0 : index
    %169 = vector.load %arg10[%c0_95, %c0_96, %c0_97] : memref<1x32x128xbf16, #tpu.memory_space<vmem>>, vector<1x32x128xbf16>
    %170 = vector.shape_cast %169 : vector<1x32x128xbf16> to vector<32x128xbf16>
    %cst_98 = arith.constant dense<0.000000e+00> : vector<64x128xf32>
    %171 = tpu.matmul %168, %170, %cst_98 {dimension_numbers = #tpu.dot_dimension_numbers<[1], [0], [0], [1], [0, 0, 1, 1], [], []>} : vector<64x32xbf16>, vector<32x128xbf16>, vector<64x128xf32> -> vector<64x128xf32>
    %c0_99 = arith.constant 0 : index
    %c0_100 = arith.constant 0 : index
    %c0_101 = arith.constant 0 : index
    %172 = vector.load %arg14[%c0_99, %c0_100, %c0_101] : memref<1x1x128xf32, #tpu.memory_space<vmem>>, vector<1x1x128xf32>
    %173 = vector.shape_cast %172 : vector<1x1x128xf32> to vector<1x128xf32>
    %174 = vector.broadcast %173 : vector<1x128xf32> to vector<64x128xf32>
    %175 = arith.addf %171, %174 : vector<64x128xf32>
    %176 = arith.mulf %175, %175 : vector<64x128xf32>
    %177 = arith.mulf %175, %176 : vector<64x128xf32>
    %cst_102 = arith.constant 4.471500e-02 : f32
    %178 = vector.broadcast %cst_102 : f32 to vector<64x128xf32>
    %179 = arith.mulf %178, %177 : vector<64x128xf32>
    %180 = arith.addf %175, %179 : vector<64x128xf32>
    %cst_103 = arith.constant 0.797884583 : f32
    %181 = vector.broadcast %cst_103 : f32 to vector<64x128xf32>
    %182 = arith.mulf %181, %180 : vector<64x128xf32>
    %183 = math.tanh %182 : vector<64x128xf32>
    %cst_104 = arith.constant 1.000000e+00 : f32
    %184 = vector.broadcast %cst_104 : f32 to vector<64x128xf32>
    %185 = arith.addf %184, %183 : vector<64x128xf32>
    %cst_105 = arith.constant 5.000000e-01 : f32
    %186 = vector.broadcast %cst_105 : f32 to vector<64x128xf32>
    %187 = arith.mulf %186, %185 : vector<64x128xf32>
    %188 = arith.mulf %175, %187 : vector<64x128xf32>
    %189 = arith.truncf %188 : vector<64x128xf32> to vector<64x128xbf16>
    %c0_106 = arith.constant 0 : index
    %c0_107 = arith.constant 0 : index
    %c0_108 = arith.constant 0 : index
    %190 = vector.load %arg11[%c0_106, %c0_107, %c0_108] : memref<1x128x32xbf16, #tpu.memory_space<vmem>>, vector<1x128x32xbf16>
    %191 = vector.shape_cast %190 : vector<1x128x32xbf16> to vector<128x32xbf16>
    %cst_109 = arith.constant dense<0.000000e+00> : vector<64x32xf32>
    %192 = tpu.matmul %189, %191, %cst_109 {dimension_numbers = #tpu.dot_dimension_numbers<[1], [0], [0], [1], [0, 0, 1, 1], [], []>} : vector<64x128xbf16>, vector<128x32xbf16>, vector<64x32xf32> -> vector<64x32xf32>
    %c0_110 = arith.constant 0 : index
    %c1_111 = arith.constant 1 : index
    %c0_112 = arith.constant 0 : index
    %193 = vector.load %arg13[%c0_110, %c1_111, %c0_112] : memref<1x2x32xf32, #tpu.memory_space<vmem>>, vector<1x1x32xf32>
    %194 = vector.shape_cast %193 : vector<1x1x32xf32> to vector<1x32xf32>
    %195 = vector.broadcast %194 : vector<1x32xf32> to vector<64x32xf32>
    %196 = arith.addf %192, %195 : vector<64x32xf32>
    %197 = arith.addf %141, %196 : vector<64x32xf32>
    %c0_113 = arith.constant 0 : index
    %c0_114 = arith.constant 0 : index
    %198 = vector.load %arg17[%c0_113, %c0_114] : memref<64x32xf32, #tpu.memory_space<vmem>>, vector<64x32xf32>
    tpu.vector_store %arg17[%c0_113, %c0_114], %197 {strides = array<i32>} : memref<64x32xf32, #tpu.memory_space<vmem>>, vector<64x32xf32>,
    %c1_i32 = arith.constant 1 : i32
    %199 = arith.cmpi eq, %arg1, %c1_i32 : i32
    %200 = arith.extui %199 : i1 to i32
    %c0_i32_115 = arith.constant 0 : i32
    %201 = arith.cmpi ne, %200, %c0_i32_115 : i32
    scf.if %201 {
      %c0_116 = arith.constant 0 : index
      %c0_117 = arith.constant 0 : index
      %202 = vector.load %arg15[%c0_116, %c0_117] : memref<4x32xf32, #tpu.memory_space<vmem>>, vector<1x32xf32>
      %c1_118 = arith.constant 1 : index
      %c0_119 = arith.constant 0 : index
      %203 = vector.load %arg15[%c1_118, %c0_119] : memref<4x32xf32, #tpu.memory_space<vmem>>, vector<1x32xf32>
      %cst_120 = arith.constant dense<0.000000e+00> : vector<64xf32>
      %204 = vector.multi_reduction <add>, %197, %cst_120 [1] : vector<64x32xf32> to vector<64xf32>
      %205 = vector.shape_cast %204 : vector<64xf32> to vector<64x1xf32>
      %cst_121 = arith.constant 3.200000e+01 : f32
      %206 = vector.broadcast %cst_121 : f32 to vector<64x1xf32>
      %207 = arith.divf %205, %206 : vector<64x1xf32>
      %208 = vector.broadcast %207 : vector<64x1xf32> to vector<64x32xf32>
      %209 = arith.subf %197, %208 : vector<64x32xf32>
      %210 = arith.mulf %209, %209 : vector<64x32xf32>
      %cst_122 = arith.constant dense<0.000000e+00> : vector<64xf32>
      %211 = vector.multi_reduction <add>, %210, %cst_122 [1] : vector<64x32xf32> to vector<64xf32>
      %212 = vector.shape_cast %211 : vector<64xf32> to vector<64x1xf32>
      %cst_123 = arith.constant 3.200000e+01 : f32
      %213 = vector.broadcast %cst_123 : f32 to vector<64x1xf32>
      %214 = arith.divf %212, %213 : vector<64x1xf32>
      %215 = vector.broadcast %207 : vector<64x1xf32> to vector<64x32xf32>
      %216 = arith.subf %197, %215 : vector<64x32xf32>
      %cst_124 = arith.constant 9.99999974E-6 : f32
      %217 = vector.broadcast %cst_124 : f32 to vector<64x1xf32>
      %218 = arith.addf %214, %217 : vector<64x1xf32>
      %219 = math.rsqrt %218 : vector<64x1xf32>
      %220 = vector.broadcast %219 : vector<64x1xf32> to vector<64x32xf32>
      %221 = arith.mulf %216, %220 : vector<64x32xf32>
      %222 = vector.broadcast %202 : vector<1x32xf32> to vector<64x32xf32>
      %223 = arith.mulf %221, %222 : vector<64x32xf32>
      %224 = vector.broadcast %203 : vector<1x32xf32> to vector<64x32xf32>
      %225 = arith.addf %223, %224 : vector<64x32xf32>
      %226 = vector.shape_cast %225 : vector<64x32xf32> to vector<8x8x32xf32>
      %c2_125 = arith.constant 2 : index
      %c0_126 = arith.constant 0 : index
      %227 = vector.load %arg15[%c2_125, %c0_126] : memref<4x32xf32, #tpu.memory_space<vmem>>, vector<1x32xf32>
      %228 = vector.shape_cast %227 : vector<1x32xf32> to vector<1x1x32xf32>
      %229 = vector.shape_cast %228 : vector<1x1x32xf32> to vector<1x1x32xf32>
      %230 = vector.broadcast %229 : vector<1x1x32xf32> to vector<8x1x32xf32>
      "tpu.trace_start"() <{level = 10 : i32, message = "boh,bsh->bos"}> : () -> ()
      %cst_127 = arith.constant dense<0.000000e+00> : vector<8x1x8xf32>
      %231 = tpu.matmul %230, %226, %cst_127 {dimension_numbers = #tpu.dot_dimension_numbers<[2], [2], [1], [1], [0, 0, 0, 1, 1, 1], [0], [0]>} : vector<8x1x32xf32>, vector<8x8x32xf32>, vector<8x1x8xf32> -> vector<8x1x8xf32>
      "tpu.trace_stop"() : () -> ()
      %c3_128 = arith.constant 3 : index
      %c0_129 = arith.constant 0 : index
      %232 = vector.load %arg15[%c3_128, %c0_129] : memref<4x32xf32, #tpu.memory_space<vmem>>, vector<1x1xf32>
      %233 = vector.shape_cast %232 : vector<1x1xf32> to vector<1x1x1xf32>
      %234 = vector.broadcast %233 : vector<1x1x1xf32> to vector<8x1x8xf32>
      %235 = arith.addf %231, %234 : vector<8x1x8xf32>
      %236 = arith.negf %235 : vector<8x1x8xf32>
      %237 = math.exp %236 : vector<8x1x8xf32>
      %cst_130 = arith.constant 1.000000e+00 : f32
      %238 = vector.broadcast %cst_130 : f32 to vector<8x1x8xf32>
      %239 = arith.addf %238, %237 : vector<8x1x8xf32>
      %240 = arith.divf %238, %239 : vector<8x1x8xf32>
      %c0_131 = arith.constant 0 : index
      %c0_132 = arith.constant 0 : index
      %c0_133 = arith.constant 0 : index
      %241 = vector.load %arg16[%c0_131, %c0_132, %c0_133] : memref<8x1x8xf32, #tpu.memory_space<vmem>>, vector<8x1x8xf32>
      tpu.vector_store %arg16[%c0_131, %c0_132, %c0_133], %240 {strides = array<i32>} : memref<8x1x8xf32, #tpu.memory_space<vmem>>, vector<8x1x8xf32>,
    } else {
    }
    return
  }
  func.func @transform_0(%arg0: i32, %arg1: i32) -> (i32, i32, i32) {
    %c0_i32 = arith.constant 0 : i32
    %c0_i32_0 = arith.constant 0 : i32
    %c0_i32_1 = arith.constant 0 : i32
    return %arg0, %c0_i32, %c0_i32_0 : i32, i32, i32
  }
  func.func @transform_1(%arg0: i32, %arg1: i32) -> (i32, i32, i32) {
    %c0_i32 = arith.constant 0 : i32
    %c0_i32_0 = arith.constant 0 : i32
    %c0_i32_1 = arith.constant 0 : i32
    return %arg0, %c0_i32, %c0_i32_0 : i32, i32, i32
  }
  func.func @transform_2(%arg0: i32, %arg1: i32) -> (i32, i32) {
    %c0_i32 = arith.constant 0 : i32
    %c0_i32_0 = arith.constant 0 : i32
    %c0_i32_1 = arith.constant 0 : i32
    return %c0_i32, %c0_i32_0 : i32, i32
  }
  func.func @transform_3(%arg0: i32, %arg1: i32) -> (i32, i32) {
    %c0_i32 = arith.constant 0 : i32
    %c0_i32_0 = arith.constant 0 : i32
    %c0_i32_1 = arith.constant 0 : i32
    return %c0_i32, %c0_i32_0 : i32, i32
  }
  func.func @transform_4(%arg0: i32, %arg1: i32) -> (i32, i32) {
    %c0_i32 = arith.constant 0 : i32
    %c0_i32_0 = arith.constant 0 : i32
    %c0_i32_1 = arith.constant 0 : i32
    return %c0_i32, %c0_i32_0 : i32, i32
  }
  func.func @transform_5(%arg0: i32, %arg1: i32) -> (i32, i32, i32, i32) {
    %c0_i32 = arith.constant 0 : i32
    %c0_i32_0 = arith.constant 0 : i32
    %c0_i32_1 = arith.constant 0 : i32
    %c0_i32_2 = arith.constant 0 : i32
    return %arg1, %c0_i32, %c0_i32_0, %c0_i32_1 : i32, i32, i32, i32
  }
  func.func @transform_6(%arg0: i32, %arg1: i32) -> (i32, i32, i32, i32) {
    %c0_i32 = arith.constant 0 : i32
    %c0_i32_0 = arith.constant 0 : i32
    %c0_i32_1 = arith.constant 0 : i32
    %c0_i32_2 = arith.constant 0 : i32
    return %arg1, %c0_i32, %c0_i32_0, %c0_i32_1 : i32, i32, i32, i32
  }
  func.func @transform_7(%arg0: i32, %arg1: i32) -> (i32, i32, i32) {
    %c0_i32 = arith.constant 0 : i32
    %c0_i32_0 = arith.constant 0 : i32
    %c0_i32_1 = arith.constant 0 : i32
    return %arg1, %c0_i32, %c0_i32_0 : i32, i32, i32
  }
  func.func @transform_8(%arg0: i32, %arg1: i32) -> (i32, i32, i32) {
    %c0_i32 = arith.constant 0 : i32
    %c0_i32_0 = arith.constant 0 : i32
    %c0_i32_1 = arith.constant 0 : i32
    return %arg1, %c0_i32, %c0_i32_0 : i32, i32, i32
  }
  func.func @transform_9(%arg0: i32, %arg1: i32) -> (i32, i32, i32) {
    %c0_i32 = arith.constant 0 : i32
    %c0_i32_0 = arith.constant 0 : i32
    %c0_i32_1 = arith.constant 0 : i32
    return %arg1, %c0_i32, %c0_i32_0 : i32, i32, i32
  }
  func.func @transform_10(%arg0: i32, %arg1: i32) -> (i32, i32, i32) {
    %c0_i32 = arith.constant 0 : i32
    %c0_i32_0 = arith.constant 0 : i32
    %c0_i32_1 = arith.constant 0 : i32
    return %arg1, %c0_i32, %c0_i32_0 : i32, i32, i32
  }
  func.func @transform_11(%arg0: i32, %arg1: i32) -> (i32, i32, i32) {
    %c0_i32 = arith.constant 0 : i32
    %c0_i32_0 = arith.constant 0 : i32
    %c0_i32_1 = arith.constant 0 : i32
    return %arg1, %c0_i32, %c0_i32_0 : i32, i32, i32
  }
  func.func @transform_12(%arg0: i32, %arg1: i32) -> (i32, i32, i32) {
    %c0_i32 = arith.constant 0 : i32
    %c0_i32_0 = arith.constant 0 : i32
    %c0_i32_1 = arith.constant 0 : i32
    return %arg1, %c0_i32, %c0_i32_0 : i32, i32, i32
  }
  func.func @transform_13(%arg0: i32, %arg1: i32) -> (i32, i32) {
    %c0_i32 = arith.constant 0 : i32
    %c0_i32_0 = arith.constant 0 : i32
    %c0_i32_1 = arith.constant 0 : i32
    return %c0_i32, %c0_i32_0 : i32, i32
  }
  func.func @transform_14(%arg0: i32, %arg1: i32) -> (i32, i32, i32) {
    %c0_i32 = arith.constant 0 : i32
    %c0_i32_0 = arith.constant 0 : i32
    %c0_i32_1 = arith.constant 0 : i32
    return %arg0, %c0_i32, %c0_i32_0 : i32, i32, i32
  }
}

</mosaic_0001>

<bundles_post_ra>
// kernel: tpu_custom_call.1
= control target key start
LH: loop header
LB: loop body
LE: loop exit
PB: predicated region body
PF: predicated region fallthrough
CT: control target
= control target key end

     0   :  { %s6290_s29 = smov 0   ;;  %s6292_s30 = smov 0   ;;  %s7602_s0 = inlined_call_operand.vmem [shape: f32[16,8,53], index: 0, kind: input, shape index: {}]   ;;  %s7603_s1 = inlined_call_operand.vmem [shape: f32[16,1,8], index: 1, kind: input, shape index: {}]   ;;  %s7604_s2 = inlined_call_operand.vmem [shape: f32[64,32], index: 2, kind: input, shape index: {}]   ;;  %s7605_s3 = inlined_call_operand.vmem [shape: bf16[53,32], index: 3, kind: input, shape index: {}]   ;;  %s7606_s4 = inlined_call_operand.vmem [shape: f32[3,32], index: 4, kind: input, shape index: {}]   ;;  %s7607_s5 = inlined_call_operand.vmem [shape: bf16[2,6,32,16], index: 5, kind: input, shape index: {}]   ;;  %s7608_s6 = inlined_call_operand.vmem [shape: f32[2,6,1,16], index: 6, kind: input, shape index: {}]   ;;  %s7609_s7 = inlined_call_operand.vmem [shape: bf16[2,32,32], index: 7, kind: input, shape index: {}]   ;;  %s7610_s8 = inlined_call_operand.vmem [shape: bf16[2,32,128], index: 8, kind: input, shape index: {}]   ;;  %s7611_s9 = inlined_call_operand.vmem [shape: bf16[2,128,32], index: 9, kind: input, shape index: {}]   ;;  %s7612_s10 = inlined_call_operand.vmem [shape: f32[2,4,32], index: 10, kind: input, shape index: {}]   ;;  %s7613_s11 = inlined_call_operand.vmem [shape: f32[2,2,32], index: 11, kind: input, shape index: {}]   ;;  %s7614_s12 = inlined_call_operand.vmem [shape: f32[2,1,128], index: 12, kind: input, shape index: {}]   ;;  %s7615_s13 = inlined_call_operand.vmem [shape: f32[4,32], index: 13, kind: input, shape index: {}]   ;;  %s7616_s14 = inlined_call_operand.vmem [shape: f32[16,1,8], index: 14, kind: output, shape index: {}]  }
   0x1   :  { %7624 = sst [smem:[#allocation8_spill]] %s7602_s0  ;;  %s6294_s15 = smov 0  }
   0x2   :  { %7625 = sst [smem:[#allocation9_spill]] %s7603_s1  ;;  %s6296_s16 = smov 0  }
   0x3   :  { %7626 = sst [smem:[#allocation10_spill]] %s7604_s2  ;;  %s6298_s17 = smov 0  }
   0x4   :  { %7627 = sst [smem:[#allocation11_spill]] %s7605_s3 }
   0x5   :  { %7628 = sst [smem:[#allocation12_spill]] %s7606_s4 }
   0x6   :  { %7629 = sst [smem:[#allocation13_spill]] %s7607_s5 }
   0x7   :  { %7630 = sst [smem:[#allocation14_spill]] %s7608_s6 }
   0x8   :  { %7631 = sst [smem:[#allocation15_spill]] %s7609_s7 }
   0x9   :  { %7632 = sst [smem:[#allocation16_spill]] %s7615_s13 }
   0xa LB: > { %7633 = sst [smem:[#allocation3_spill]] %s6198_s15  ;;  %s33_s18 = sadd.s32 1, %s6198_s15  ;;  %s6206_s17 = sphi %s6298_s17, %s24_s17   ;;  %s6202_s16 = sphi %s6296_s16, %s7654_s16   ;;  %s6198_s15 = sphi %s6294_s15, %s7653_s15   ;;  %s6194_s30 = sphi %s6292_s30, %s7652_s30   ;;  %s6190_s29 = sphi %s6290_s29, %s7651_s29  }
   0xb   : > { %7634 = sst [smem:[#allocation4_spill]] %s6202_s16  ;;  %s36_s19 = sadd.s32 1, %s6202_s16 }
   0xc   : > { %7635 = sst [smem:[#allocation5_spill]] %s6206_s17  ;;  %p34_p0 = scmp.ge.s32.totalorder %s33_s18, 2 }
   0xd   : > { %p5161_p1 = scmp.ge.s32.totalorder %s6206_s17, 1  ;;  %p510_p2 = scmp.lt.s32.totalorder %s6206_s17, 5 }
   0xe   : > { %s7656_s18 = smov (%p34_p0, %s33_s18), 0  ;;  %s7658_s19 = smov (!%p34_p0, %s36_s19), %s6202_s16 }
   0xf   : > { %7636 = sst [smem:[#allocation6_spill]] %s7656_s18  ;;  %p511_p3 = pnand %p5161_p1, %p510_p2 }
  0x10   : > { %p38_p4 = scmp.ge.s32.totalorder %s7658_s19, 2  ;;  %s5162_s20 = sshll.u32 (!%p511_p3), %s6194_s30, 3 }
  0x11   : > { %514 = sbr.rel (%p511_p3) target bundleno = 4369 (0x1111), region = 76  ;;  %p605_p5 = scmp.lt.s32.totalorder (!%p511_p3), %s6190_s29, 1 }
  0x12   : > { %s7660_s19 = smov (%p38_p4, %s7658_s19), 0  ;;  %p595_p6 = scmp.lt.s32.totalorder (!%p511_p3), %s5162_s20, 15 }
  0x13   : > { %7637 = sst [smem:[#allocation7_spill]] %s7660_s19  ;;  %s7638_s1 = sld [smem:[#allocation9_spill]] (!%p511_p3) }
  0x14   : > { %s7639_s0 = sld [smem:[#allocation8_spill]] (!%p511_p3)  ;;  %s7640_s5 = sld [smem:[#allocation13_spill]] (!%p511_p3) }
  0x15   : > { %s7641_s7 = sld [smem:[#allocation15_spill]] (!%p511_p3)  ;;  %s7642_s6 = sld [smem:[#allocation14_spill]] (!%p511_p3) }
  0x16   : > { %p5175_p7 = scmp.ne.s32.totalorder (!%p511_p3), %s6190_s29, 0 }
  0x18   : > { %s6324_s21 = scalar_select %p605_p5, %s6190_s29, 1 }
  0x19   : > { %s7662_s20 = smov (!%p595_p6, %s5162_s20), 15  ;;  %s7643_s18 = sld [smem:[#allocation11_spill]] (!%p5175_p7)  ;;  %vm708_vm0 = vcmask (!%p5175_p7), 1041408   ;;  %vm709_vm1 = vcmask (!%p5175_p7), 1042432   ;;  %v6208_v4 = vmov (!%p5175_p7), 65535   ;;  %vm695_vm2 = vcmask (!%p5175_p7), 433152  }
  0x1a   : > { %s5906_s22 = smul.u32 96, %s6324_s21  ;;  %s5355_s23 = sshll.u32 %s6324_s21, 4  ;;  %v710_v5 = vsel (!%p5175_p7), %vm708_vm0, 4294967295, %v6208_v4  ;;  %v780_v20 = vlaneseq (!%p5175_p7)  ;;  %v6209_v23 = vmov (!%p5175_p7), 0.0   ;;  %vm794_vm4 = vcmask (!%p5175_p7), 261120  }
  0x1b   : > { %s5163_s24 = sshll.u32 %s7662_s20, 3  ;;  %s6331_s27 = scalar_lea.vmem %s7638_s1, %s7662_s20  ;;  %v711_v9 = vsel (!%p5175_p7), %vm709_vm1, %v710_v5, 0 }
  0x1c   : > { %s6336_s19 = scalar_lea.vmem %s7639_s0, %s5163_s24  ;;  %s6341_s15 = scalar_lea.vmem %s7640_s5, %s5906_s22  ;;  %v781_v21 = vand.u32 (!%p5175_p7), 127, %v780_v20 }
  0x1d   : > { %s5907_s17 = smul.u32 6, %s6324_s21  ;;  %s6347_s4 = scalar_lea.vmem %s7641_s7, %s5355_s23  ;;  %v650_v6 = vld [vmem:[%s6336_s19] sm:$0xff] (!%p5175_p7)  ;;  %v651_v7 = vld [vmem:[%s6336_s19 + $0x8] sm:$0xff] (!%p5175_p7)  ;;  %v652_v14 = vld [vmem:[%s6336_s19 + $0x10] sm:$0xff] (!%p5175_p7) }
  0x1e   : > { %s6352_s26 = scalar_lea.vmem %s7610_s8, %s5355_s23  ;;  %s5357_s1 = sshll.u32 %s6324_s21, 6  ;;  %v654_v8 = vld [vmem:[%s6336_s19 + $0x20] sm:$0xff] (!%p5175_p7)  ;;  %v658_v10 = vpack.c.bf16 (!%p5175_p7), %v651_v7, %v650_v6  ;;  %v655_v11 = vld [vmem:[%s6336_s19 + $0x28] sm:$0xff] (!%p5175_p7)  ;;  %v653_v15 = vld [vmem:[%s6336_s19 + $0x18] sm:$0xff] (!%p5175_p7)  ;;  %vm782_vm3 = vcmp.lt.s32.totalorder (!%p5175_p7), %v781_v21, 16 }
  0x1f   : > { %s6358_s30 = scalar_lea.vmem %s7642_s6, %s5907_s17  ;;  %s6363_s22 = scalar_lea.vmem %s7611_s9, %s5357_s1  ;;  %v5955_v0 = vld [vmem:[%s7643_s18] sm:$0xff] (!%p5175_p7)   ;;  %v5956_v1 = vld [vmem:[%s7643_s18 + $0x8] sm:$0xff] (!%p5175_p7)   ;;  %v5957_v2 = vld [vmem:[%s7643_s18 + $0x10] sm:$0xff] (!%p5175_p7)   ;;  %v660_v12 = vpack.c.bf16 (!%p5175_p7), %v655_v11, %v654_v8  ;;  %v659_v18 = vpack.c.bf16 (!%p5175_p7), %v653_v15, %v652_v14  ;;  %v6414_v24 = vsel (!%p5175_p7), %vm782_vm3, 1.0, %v6209_v23 }
  0x20   : > { %s5172_s0 = sshll.u32 %s6324_s21, 2  ;;  %s5173_s2 = sshll.u32 %s6324_s21, 1  ;;  %5510 = vmatprep.subr.bf16.mxu0 (!%p5175_p7), %v5955_v0  ;;  %5886 = vmatprep.subr.bf16.mxu1 (!%p5175_p7), %v5955_v0  ;;  %v5958_v3 = vld [vmem:[%s7643_s18 + $0x18] ss:$0 sps:$4 sm:$0x77] (!%p5175_p7)   ;;  %v656_v16 = vld [vmem:[%s6336_s19 + $0x30] sm:$0xff] (!%p5175_p7) }
  0x21   : > { %s6370_s7 = scalar_lea.vmem %s7612_s10, %s5172_s0  ;;  %s6375_s25 = scalar_lea.vmem %s7613_s11, %s5173_s2  ;;  %5511 = vmatpush3.bf16.msra.mxu0 (!%p5175_p7), %v5955_v0  ;;  %5890 = vmatpush3.bf16.msra.mxu1 (!%p5175_p7), %v5955_v0  ;;  %v713_v13 = vand.u32 (!%p5175_p7), %v5958_v3, %v711_v9  ;;  %v657_v17 = vld [vmem:[%s6336_s19 + $0x38] sm:$0xff] (!%p5175_p7)  ;;  %v6421_v31 = vsub.f32 (!%p5175_p7), 1.0, %v6414_v24 }
  0x22   : > { %s639_s24 = scalar_lea.vmem %s7614_s12, %s6324_s21  ;;  %s6384_s1 = scalar_lea.vmem %s7616_s14, %s7662_s20  ;;  %5512 = vmatprep.subr.bf16.mxu0 (!%p5175_p7), %v5956_v1  ;;  %5887 = vmatprep.subr.bf16.mxu1 (!%p5175_p7), %v5956_v1  ;;  %v661_v19 = vpack.c.bf16 (!%p5175_p7), %v657_v17, %v656_v16 }
  0x23   : > { %649 = sbr.rel (%p5175_p7) target bundleno = 644 (0x284), region = 80  ;;  %5518 = vmatprep.mubr.msk.bf16.mxu0 (!%p5175_p7), %vm695_vm2, %v658_v10  ;;  %5522 = vmatprep.mubr.msk.bf16.mxu1 (!%p5175_p7), %vm695_vm2, %v660_v12  ;;  %s7644_s16 = sld [smem:[#allocation12_spill]] (!%p5175_p7) }
  0x24   : > { %s7646_s3 = sld [smem:[#allocation10_spill]] (!%p5175_p7) }
  0x25   : > { %5513 = vmatpush3.bf16.msra.mxu0 (!%p5175_p7), %v5956_v1  ;;  %5891 = vmatpush3.bf16.msra.mxu1 (!%p5175_p7), %v5956_v1 }
  0x26   : > { %5514 = vmatprep.subr.bf16.mxu0 (!%p5175_p7), %v5957_v2  ;;  %5888 = vmatprep.subr.bf16.mxu1 (!%p5175_p7), %v5957_v2 }
  0x29   : > { %5515 = vmatpush3.bf16.msra.mxu0 (!%p5175_p7), %v5957_v2  ;;  %5892 = vmatpush3.bf16.msra.mxu1 (!%p5175_p7), %v5957_v2  ;;  %s7645_s5 = smov (!%p5175_p7), %s7644_s16  ;;  %v5176_v22 = vld [vmem:[%s7644_s16] ss:$0 sm:$0xff] (!%p5175_p7) }
  0x2a   : > { %5516 = vmatprep.subr.bf16.mxu0 %v713_v13  ;;  %5889 = vmatprep.subr.bf16.mxu1 %v713_v13 }
  0x2d   : > { %5517 = vmatpush3.bf16.msra.mxu0 %v713_v13  ;;  %5893 = vmatpush3.bf16.msra.mxu1 %v713_v13 }
  0x30   : > { %5519 = vmatmul.mubr.msk.bf16.vlgmr.msra.gmra.mrb[0].mxu0 %vm695_vm2, %v659_v18  ;;  %5523 = vmatmul.mubr.msk.bf16.vlgmr.msra.gmra.mrb[0].mxu1 %vm695_vm2, %v661_v19 }
 0x103   : > { %v5520_v25 = vpop.f32.mrb[0].mxu0  ;;  %v5524_v26 = vpop.f32.mrb[0].mxu1 }
 0x104   : > { %v6416_v27 = vadd.f32 %v5520_v25, %v5176_v22  ;;  %v6418_v28 = vadd.f32 %v5524_v26, %v5176_v22  ;;  %v749_v29 = vpop.f32.mrb[1].mxu0  ;;  %v765_v30 = vpop.f32.mrb[1].mxu1 }
 0x105   : > { %v5521_v32 = vpop.f32.mrb[2].mxu0  ;;  %v5525_v33 = vpop.f32.mrb[2].mxu1  ;;  %v6429_v39 = vadd.f32 %v5176_v22, %v749_v29  ;;  %v6439_v45 = vadd.f32 %v5176_v22, %v765_v30 }
 0x106   : > { %v6423_v34 = vadd.f32 %v5521_v32, %v5176_v22  ;;  %v752_v35 = vpop.f32.mrb[3].mxu0  ;;  %v768_v36 = vpop.f32.mrb[3].mxu1  ;;  %v792_v37 = vmul.f32 %v6414_v24, %v6418_v28  ;;  %v788_v38 = vmul.f32 %v6414_v24, %v6416_v27  ;;  %v6431_v40 = vadd.f32 %v5525_v33, %v5176_v22 }
 0x107   : > { %v829_v43 = vmul.f32 %v6421_v31, %v6416_v27  ;;  %v786_v49 = vmul.f32 %v6414_v24, %v6429_v39  ;;  %v6447_v50 = vadd.f32 %v5176_v22, %v768_v36  ;;  %v790_v54 = vmul.f32 %v6414_v24, %v6439_v45 }
 0x108   : > { %v813_v41 = vsel %vm794_vm4, %v792_v37, 0.0  ;;  %v801_v42 = vsel %vm794_vm4, %v788_v38, 0.0  ;;  %v789_v44 = vmul.f32 %v6414_v24, %v6423_v34  ;;  %v793_v48 = vmul.f32 %v6414_v24, %v6431_v40 }
 0x109   : > { %814 = vadd.xlane.f32.xlu0 %v813_v41  ;;  %802 = vadd.xlane.f32.xlu1 %v801_v42  ;;  %v841_v46 = vsel %vm794_vm4, %v829_v43, 0.0  ;;  %v795_v52 = vsel %vm794_vm4, %v786_v49, 0.0  ;;  %v830_v53 = vmul.f32 %v6421_v31, %v6423_v34  ;;  %v6455_v55 = vadd.f32 %v5176_v22, %v752_v35 }
 0x10a   : > { %v804_v47 = vsel %vm794_vm4, %v789_v44, 0.0  ;;  %v816_v51 = vsel %vm794_vm4, %v793_v48, 0.0  ;;  %v807_v57 = vsel %vm794_vm4, %v790_v54, 0.0  ;;  %v791_v58 = vmul.f32 %v6414_v24, %v6447_v50 }
 0x10b   : > { %v844_v56 = vsel %vm794_vm4, %v830_v53, 0.0  ;;  %v827_v59 = vmul.f32 %v6421_v31, %v6429_v39  ;;  %v828_v62 = vmul.f32 %v6421_v31, %v6455_v55  ;;  %v831_v63 = vmul.f32 %v6421_v31, %v6439_v45 }
 0x10c   : > { %v810_v60 = vsel %vm794_vm4, %v791_v58, 0.0  ;;  %v832_v2 = vmul.f32 %v6421_v31, %v6447_v50  ;;  %v787_v3 = vmul.f32 %v6414_v24, %v6455_v55  ;;  %v834_v6 = vmul.f32 %v6421_v31, %v6431_v40 }
 0x10d   : > { %842 = vadd.xlane.f32.xlu0 %v841_v46  ;;  %805 = vadd.xlane.f32.xlu1 %v804_v47  ;;  %v835_v61 = vsel %vm794_vm4, %v827_v59, 0.0  ;;  %v838_v0 = vsel %vm794_vm4, %v828_v62, 0.0  ;;  %v847_v1 = vsel %vm794_vm4, %v831_v63, 0.0  ;;  %v833_v7 = vmul.f32 %v6421_v31, %v6418_v28 }
 0x10e   : > { %v850_v4 = vsel %vm794_vm4, %v832_v2, 0.0  ;;  %v798_v5 = vsel %vm794_vm4, %v787_v3, 0.0  ;;  %v856_v8 = vsel %vm794_vm4, %v834_v6, 0.0 }
 0x10f   : > { %v853_v9 = vsel %vm794_vm4, %v833_v7, 0.0 }
 0x111   : > { %817 = vadd.xlane.f32.xlu1 %v816_v51  ;;  %796 = vadd.xlane.f32.xlu0 %v795_v52 }
 0x115   : > { %845 = vadd.xlane.f32.xlu1 %v844_v56  ;;  %808 = vadd.xlane.f32.xlu0 %v807_v57 }
 0x119   : > { %811 = vadd.xlane.f32.xlu1 %v810_v60  ;;  %836 = vadd.xlane.f32.xlu0 %v835_v61 }
 0x11d   : > { %839 = vadd.xlane.f32.xlu1 %v838_v0  ;;  %848 = vadd.xlane.f32.xlu0 %v847_v1 }
 0x121   : > { %851 = vadd.xlane.f32.xlu1 %v850_v4  ;;  %799 = vadd.xlane.f32.xlu0 %v798_v5 }
 0x125   : > { %857 = vadd.xlane.f32.xlu1 %v856_v8  ;;  %854 = vadd.xlane.f32.xlu0 %v853_v9 }
 0x196   : > { %v815_v10 = vpop.xlane.xlu0 %814  ;;  %v803_v11 = vpop.xlane.xlu1 %802 }
 0x197   : > { %v821_v14 = vmul.f32 %v6414_v24, %v803_v11  ;;  %v825_v51 = vmul.f32 %v6414_v24, %v815_v10 }
 0x19a   : > { %v843_v12 = vpop.xlane.xlu0 %842  ;;  %v806_v13 = vpop.xlane.xlu1 %805 }
 0x19b   : > { %v861_v15 = vmul.f32 %v843_v12, %v6421_v31  ;;  %v822_v23 = vmul.f32 %v6414_v24, %v806_v13 }
 0x19d   : > { %v869_v16 = vadd.f32 %v861_v15, %v821_v14 }
 0x19e   : > { %v818_v17 = vpop.xlane.xlu1 %817  ;;  %v797_v18 = vpop.xlane.xlu0 %796 }
 0x19f   : > { %v877_v19 = vmul.f32 0.0625, %v869_v16  ;;  %v819_v49 = vmul.f32 %v6414_v24, %v797_v18  ;;  %v826_v52 = vmul.f32 %v6414_v24, %v818_v17 }
 0x1a1   : > { %v6486_v20 = vsub.f32 %v6416_v27, %v877_v19 }
 0x1a2   : > { %v846_v21 = vpop.xlane.xlu1 %845  ;;  %v809_v22 = vpop.xlane.xlu0 %808 }
 0x1a3   : > { %v862_v25 = vmul.f32 %v846_v21, %v6421_v31  ;;  %v893_v26 = vmul.f32 %v6486_v20, %v6486_v20  ;;  %v823_v62 = vmul.f32 %v6414_v24, %v809_v22 }
 0x1a5   : > { %v870_v29 = vadd.f32 %v862_v25, %v822_v23  ;;  %v901_v30 = vmul.f32 %v6414_v24, %v893_v26  ;;  %v941_v17 = vmul.f32 %v893_v26, %v6421_v31 }
 0x1a6   : > { %v812_v32 = vpop.xlane.xlu1 %811  ;;  %v837_v33 = vpop.xlane.xlu0 %836 }
 0x1a7   : > { %v878_v35 = vmul.f32 0.0625, %v870_v29  ;;  %v913_v36 = vsel %vm794_vm4, %v901_v30, 0.0  ;;  %v859_v43 = vmul.f32 %v837_v33, %v6421_v31  ;;  %v824_v63 = vmul.f32 %v6414_v24, %v812_v32 }
 0x1a8   : > { %914 = vadd.xlane.f32.xlu0 %v913_v36  ;;  %v953_v23 = vsel %vm794_vm4, %v941_v17, 0.0 }
 0x1a9   : > { %v6495_v27 = vsub.f32 %v6423_v34, %v878_v35  ;;  %v867_v53 = vadd.f32 %v859_v43, %v819_v49 }
 0x1aa   : > { %v840_v37 = vpop.xlane.xlu1 %839  ;;  %v849_v38 = vpop.xlane.xlu0 %848 }
 0x1ab   : > { %v894_v41 = vmul.f32 %v6495_v27, %v6495_v27  ;;  %v860_v34 = vmul.f32 %v840_v37, %v6421_v31  ;;  %v863_v54 = vmul.f32 %v849_v38, %v6421_v31  ;;  %v875_v2 = vmul.f32 0.0625, %v867_v53 }
 0x1ad   : > { %v902_v42 = vmul.f32 %v6414_v24, %v894_v41  ;;  %v871_v3 = vadd.f32 %v863_v54, %v823_v62  ;;  %v6520_v10 = vsub.f32 %v6429_v39, %v875_v2  ;;  %v942_v39 = vmul.f32 %v894_v41, %v6421_v31 }
 0x1ae   : > { %v852_v44 = vpop.xlane.xlu1 %851  ;;  %v800_v46 = vpop.xlane.xlu0 %799 }
 0x1af   : > { %v820_v47 = vmul.f32 %v6414_v24, %v800_v46  ;;  %v916_v48 = vsel %vm794_vm4, %v902_v42, 0.0  ;;  %v864_v58 = vmul.f32 %v852_v44, %v6421_v31  ;;  %v879_v11 = vmul.f32 0.0625, %v871_v3 }
 0x1b0   : > { %917 = vadd.xlane.f32.xlu1 %v916_v48 }
 0x1b1   : > { %v868_v59 = vadd.f32 %v860_v34, %v820_v47  ;;  %v872_v4 = vadd.f32 %v864_v58, %v824_v63 }
 0x1b2   : > { %v858_v56 = vpop.xlane.xlu1 %857  ;;  %v855_v57 = vpop.xlane.xlu0 %854 }
 0x1b3   : > { %v866_v60 = vmul.f32 %v858_v56, %v6421_v31  ;;  %v865_v61 = vmul.f32 %v855_v57, %v6421_v31  ;;  %v876_v5 = vmul.f32 0.0625, %v868_v59  ;;  %v880_v12 = vmul.f32 0.0625, %v872_v4 }
 0x1b5   : > { %v874_v0 = vadd.f32 %v866_v60, %v826_v52  ;;  %v873_v1 = vadd.f32 %v865_v61, %v825_v51  ;;  %v6523_v13 = vsub.f32 %v6455_v55, %v876_v5  ;;  %v891_v55 = vmul.f32 %v6520_v10, %v6520_v10 }
 0x1b6   : > { %v6539_v18 = vsub.f32 %v6447_v50, %v880_v12 }
 0x1b7   : > { %v882_v6 = vmul.f32 0.0625, %v874_v0  ;;  %v881_v7 = vmul.f32 0.0625, %v873_v1  ;;  %v892_v22 = vmul.f32 %v6523_v13, %v6523_v13  ;;  %v899_v26 = vmul.f32 %v6414_v24, %v891_v55 }
 0x1b8   : > { %v896_v50 = vmul.f32 %v6539_v18, %v6539_v18  ;;  %v939_v41 = vmul.f32 %v891_v55, %v6421_v31 }
 0x1b9   : > { %v6514_v8 = vsub.f32 %v6431_v40, %v882_v6  ;;  %v6517_v9 = vsub.f32 %v6418_v28, %v881_v7  ;;  %v6532_v28 = vsub.f32 %v6439_v45, %v879_v11  ;;  %v956_v45 = vsel %vm794_vm4, %v942_v39, 0.0 }
 0x1ba   : > { %v900_v25 = vmul.f32 %v6414_v24, %v892_v22  ;;  %v907_v32 = vsel %vm794_vm4, %v899_v26, 0.0  ;;  %v904_v33 = vmul.f32 %v6414_v24, %v896_v50  ;;  %v940_v38 = vmul.f32 %v892_v22, %v6421_v31 }
 0x1bb   : > { %v898_v14 = vmul.f32 %v6514_v8, %v6514_v8  ;;  %v897_v15 = vmul.f32 %v6517_v9, %v6517_v9  ;;  %v895_v29 = vmul.f32 %v6532_v28, %v6532_v28  ;;  %v947_v43 = vsel %vm794_vm4, %v939_v41, 0.0 }
 0x1bc   : > { %v910_v30 = vsel %vm794_vm4, %v900_v25, 0.0  ;;  %v922_v36 = vsel %vm794_vm4, %v904_v33, 0.0  ;;  %v950_v42 = vsel %vm794_vm4, %v940_v38, 0.0  ;;  %v944_v44 = vmul.f32 %v896_v50, %v6421_v31 }
 0x1bd   : > { %v906_v40 = vmul.f32 %v6414_v24, %v898_v14  ;;  %v905_v16 = vmul.f32 %v6414_v24, %v897_v15  ;;  %v903_v35 = vmul.f32 %v6414_v24, %v895_v29  ;;  %v943_v46 = vmul.f32 %v895_v29, %v6421_v31 }
 0x1be   : > { %v962_v47 = vsel %vm794_vm4, %v944_v44, 0.0  ;;  %v946_v49 = vmul.f32 %v898_v14, %v6421_v31  ;;  %v945_v34 = vmul.f32 %v897_v15, %v6421_v31 }
 0x1bf   : > { %v928_v19 = vsel %vm794_vm4, %v906_v40, 0.0  ;;  %v925_v21 = vsel %vm794_vm4, %v905_v16, 0.0  ;;  %v919_v37 = vsel %vm794_vm4, %v903_v35, 0.0  ;;  %v959_v48 = vsel %vm794_vm4, %v943_v46, 0.0 }
 0x1c0   : > { %929 = vadd.xlane.f32.xlu1 %v928_v19  ;;  %926 = vadd.xlane.f32.xlu0 %v925_v21  ;;  %v968_v51 = vsel %vm794_vm4, %v946_v49, 0.0  ;;  %v965_v52 = vsel %vm794_vm4, %v945_v34, 0.0 }
 0x1c4   : > { %957 = vadd.xlane.f32.xlu1 %v956_v45  ;;  %954 = vadd.xlane.f32.xlu0 %v953_v23 }
 0x1c8   : > { %911 = vadd.xlane.f32.xlu1 %v910_v30  ;;  %908 = vadd.xlane.f32.xlu0 %v907_v32  ;;  %v6586_v32 = vld [vmem:[%s7645_s5 + $0x1] ss:$0 sm:$0xff] }
 0x1cc   : > { %923 = vadd.xlane.f32.xlu1 %v922_v36  ;;  %920 = vadd.xlane.f32.xlu0 %v919_v37 }
 0x1d0   : > { %951 = vadd.xlane.f32.xlu1 %v950_v42  ;;  %948 = vadd.xlane.f32.xlu0 %v947_v43 }
 0x1d4   : > { %963 = vadd.xlane.f32.xlu1 %v962_v47  ;;  %960 = vadd.xlane.f32.xlu0 %v959_v48  ;;  %v6594_v47 = vld [vmem:[%s7645_s5 + $0x2] ss:$0 sm:$0xff] }
 0x1d8   : > { %969 = vadd.xlane.f32.xlu1 %v968_v51  ;;  %966 = vadd.xlane.f32.xlu0 %v965_v52 }
 0x235   : > { %v915_v53 = vpop.xlane.xlu0 %914 }
 0x236   : > { %v933_v60 = vmul.f32 %v6414_v24, %v915_v53 }
 0x23d   : > { %v918_v54 = vpop.xlane.xlu1 %917 }
 0x23e   : > { %v934_v61 = vmul.f32 %v6414_v24, %v918_v54 }
 0x24d   : > { %v930_v56 = vpop.xlane.xlu1 %929  ;;  %v927_v57 = vpop.xlane.xlu0 %926 }
 0x24e   : > { %v938_v41 = vmul.f32 %v6414_v24, %v930_v56  ;;  %v937_v42 = vmul.f32 %v6414_v24, %v927_v57  ;;  %v1047_v57 = vld [vmem:[%s7646_s3 + $0x10] sm:$0xff] }
 0x251   : > { %v958_v58 = vpop.xlane.xlu1 %957  ;;  %v955_v59 = vpop.xlane.xlu0 %954 }
 0x252   : > { %v974_v62 = vmul.f32 %v958_v58, %v6421_v31  ;;  %v973_v63 = vmul.f32 %v955_v59, %v6421_v31 }
 0x254   : > { %v982_v0 = vadd.f32 %v974_v62, %v934_v61  ;;  %v981_v1 = vadd.f32 %v973_v63, %v933_v60 }
 0x255   : > { %v912_v2 = vpop.xlane.xlu1 %911  ;;  %v909_v3 = vpop.xlane.xlu0 %908 }
 0x256   : > { %v990_v4 = vmul.f32 0.0625, %v982_v0  ;;  %v989_v5 = vmul.f32 0.0625, %v981_v1  ;;  %v932_v40 = vmul.f32 %v6414_v24, %v912_v2  ;;  %v931_v16 = vmul.f32 %v6414_v24, %v909_v3 }
 0x258   : > { %v998_v6 = vadd.f32 1e-05, %v990_v4  ;;  %v997_v7 = vadd.f32 1e-05, %v989_v5 }
 0x259   : > { %v924_v11 = vpop.xlane.xlu1 %923  ;;  %v921_v12 = vpop.xlane.xlu0 %920 }
 0x25a   : > { %5959 = vrsqrt.f32 %v998_v6  ;;  %v936_v21 = vmul.f32 %v6414_v24, %v924_v11  ;;  %v935_v22 = vmul.f32 %v6414_v24, %v921_v12  ;;  %v1046_v11 = vld [vmem:[%s7646_s3 + $0x8] sm:$0xff] }
 0x25b   : > { %5961 = vrsqrt.f32 %v997_v7 }
 0x25d   : > { %v952_v14 = vpop.xlane.xlu1 %951  ;;  %v949_v15 = vpop.xlane.xlu0 %948 }
 0x25e   : > { %v972_v39 = vmul.f32 %v952_v14, %v6421_v31  ;;  %v971_v17 = vmul.f32 %v949_v15, %v6421_v31 }
 0x260   : > { %v980_v55 = vadd.f32 %v972_v39, %v932_v40  ;;  %v979_v19 = vadd.f32 %v971_v17, %v931_v16  ;;  %v1045_v40 = vld [vmem:[%s7646_s3] sm:$0xff] }
 0x261   : > { %v964_v45 = vpop.xlane.xlu1 %963  ;;  %v961_v23 = vpop.xlane.xlu0 %960 }
 0x262   : > { %v988_v25 = vmul.f32 0.0625, %v980_v55  ;;  %v987_v26 = vmul.f32 0.0625, %v979_v19  ;;  %v976_v50 = vmul.f32 %v964_v45, %v6421_v31  ;;  %v975_v29 = vmul.f32 %v961_v23, %v6421_v31  ;;  %v1050_v19 = vld [vmem:[%s7646_s3 + $0x28] sm:$0xff] }
 0x264   : > { %v5960_v30 = vpop.eup %5959  ;;  %v996_v33 = vadd.f32 1e-05, %v988_v25  ;;  %v995_v35 = vadd.f32 1e-05, %v987_v26  ;;  %v984_v36 = vadd.f32 %v976_v50, %v936_v21  ;;  %v983_v37 = vadd.f32 %v975_v29, %v935_v22 }
 0x265   : > { %v5962_v38 = vpop.eup %5961  ;;  %v1014_v43 = vmul.f32 %v5960_v30, %v6495_v27  ;;  %v970_v44 = vpop.xlane.xlu1 %969  ;;  %v1048_v27 = vld [vmem:[%s7646_s3 + $0x18] sm:$0xff] }
 0x266   : > { %v967_v46 = vpop.xlane.xlu0 %966  ;;  %v1013_v48 = vmul.f32 %v5962_v38, %v6486_v20  ;;  %5963 = vrsqrt.f32 %v996_v33  ;;  %v992_v49 = vmul.f32 0.0625, %v984_v36  ;;  %v991_v34 = vmul.f32 0.0625, %v983_v37  ;;  %v1052_v33 = vld [vmem:[%s7646_s3 + $0x38] sm:$0xff] }
 0x267   : > { %v1027_v51 = vmul.f32 %v6586_v32, %v1014_v43  ;;  %5965 = vrsqrt.f32 %v995_v35  ;;  %v978_v52 = vmul.f32 %v970_v44, %v6421_v31  ;;  %v977_v24 = vmul.f32 %v967_v46, %v6421_v31 }
 0x268   : > { %v1026_v53 = vmul.f32 %v6586_v32, %v1013_v48  ;;  %v1000_v54 = vadd.f32 1e-05, %v992_v49  ;;  %v999_v56 = vadd.f32 1e-05, %v991_v34 }
 0x269   : > { %v1040_v20 = vadd.f32 %v6594_v47, %v1027_v51  ;;  %v986_v58 = vadd.f32 %v978_v52, %v938_v41  ;;  %v985_v59 = vadd.f32 %v977_v24, %v937_v42 }
 0x26a   : > { %v1039_v60 = vadd.f32 %v6594_v47, %v1026_v53  ;;  %5967 = vrsqrt.f32 %v1000_v54 }
 0x26b   : > { %v1056_v31 = vadd.f32 %v1048_v27, %v1040_v20  ;;  %5969 = vrsqrt.f32 %v999_v56  ;;  %v994_v61 = vmul.f32 0.0625, %v986_v58  ;;  %v993_v62 = vmul.f32 0.0625, %v985_v59 }
 0x26c   : > { %v1055_v63 = vadd.f32 %v1047_v57, %v1039_v60 }
 0x26d   : > { %1064 = vst.msk [vmem:[#allocation2 + $0x18] sm:$0xff] %vm794_vm4, %v1056_v31  ;;  %v1002_v0 = vadd.f32 1e-05, %v994_v61  ;;  %v1001_v1 = vadd.f32 1e-05, %v993_v62 }
 0x26e   : > { %1063 = vst.msk [vmem:[#allocation2 + $0x10] sm:$0xff] %vm794_vm4, %v1055_v63 }
 0x26f   : > { %5971 = vrsqrt.f32 %v1002_v0 }
 0x270   : > { %v5964_v2 = vpop.eup %5963  ;;  %5973 = vrsqrt.f32 %v1001_v1 }
 0x271   : > { %v5966_v3 = vpop.eup %5965  ;;  %v1012_v4 = vmul.f32 %v5964_v2, %v6523_v13 }
 0x272   : > { %v1011_v5 = vmul.f32 %v5966_v3, %v6520_v10 }
 0x273   : > { %v1025_v6 = vmul.f32 %v6586_v32, %v1012_v4 }
 0x274   : > { %v5968_v7 = vpop.eup %5967  ;;  %v1024_v12 = vmul.f32 %v6586_v32, %v1011_v5 }
 0x275   : > { %v5970_v14 = vpop.eup %5969  ;;  %v1038_v15 = vadd.f32 %v6594_v47, %v1025_v6  ;;  %v1016_v13 = vmul.f32 %v5968_v7, %v6539_v18  ;;  %v1049_v18 = vld [vmem:[%s7646_s3 + $0x20] sm:$0xff] }
 0x276   : > { %v1037_v10 = vadd.f32 %v6594_v47, %v1024_v12  ;;  %v1015_v16 = vmul.f32 %v5970_v14, %v6532_v28 }
 0x277   : > { %v1054_v39 = vadd.f32 %v1046_v11, %v1038_v15  ;;  %v1029_v17 = vmul.f32 %v6586_v32, %v1016_v13 }
 0x278   : > { %v1053_v55 = vadd.f32 %v1045_v40, %v1037_v10  ;;  %v1028_v21 = vmul.f32 %v6586_v32, %v1015_v16 }
 0x279   : > { %v5972_v22 = vpop.eup %5971  ;;  %1062 = vst.msk [vmem:[#allocation2 + $0x8] sm:$0xff] %vm794_vm4, %v1054_v39  ;;  %v1042_v45 = vadd.f32 %v6594_v47, %v1029_v17 }
 0x27a   : > { %v5974_v28 = vpop.eup %5973  ;;  %1061 = vst.msk [vmem:[#allocation2] sm:$0xff] %vm794_vm4, %v1053_v55  ;;  %v1041_v23 = vadd.f32 %v6594_v47, %v1028_v21  ;;  %v1018_v25 = vmul.f32 %v5972_v22, %v6514_v8  ;;  %v1051_v8 = vld [vmem:[%s7646_s3 + $0x30] sm:$0xff] }
 0x27b   : > { %v1058_v26 = vadd.f32 %v1050_v19, %v1042_v45  ;;  %v1017_v50 = vmul.f32 %v5974_v28, %v6517_v9 }
 0x27c   : > { %v1057_v29 = vadd.f32 %v1049_v18, %v1041_v23  ;;  %v1031_v30 = vmul.f32 %v6586_v32, %v1018_v25 }
 0x27d   : > { %1066 = vst.msk [vmem:[#allocation2 + $0x28] sm:$0xff] %vm794_vm4, %v1058_v26  ;;  %v1030_v35 = vmul.f32 %v6586_v32, %v1017_v50 }
 0x27e   : > { %1065 = vst.msk [vmem:[#allocation2 + $0x20] sm:$0xff] %vm794_vm4, %v1057_v29  ;;  %v1044_v36 = vadd.f32 %v6594_v47, %v1031_v30 }
 0x27f   : > { %v1043_v9 = vadd.f32 %v6594_v47, %v1030_v35 }
 0x280   : > { %v1060_v37 = vadd.f32 %v1052_v33, %v1044_v36 }
 0x281   : > { %v1059_v38 = vadd.f32 %v1051_v8, %v1043_v9 }
 0x282   : > { %1068 = vst.msk [vmem:[#allocation2 + $0x38] sm:$0xff] %vm794_vm4, %v1060_v37 }
 0x283   : > { %1067 = vst.msk [vmem:[#allocation2 + $0x30] sm:$0xff] %vm794_vm4, %v1059_v38 }
 0x284 PF: > { %v1069_v41 = vld [vmem:[#allocation2] sm:$0xff]  ;;  %vm1150_vm5 = vcmask 261120   ;;  %v1071_v32 = vld [vmem:[#allocation2 + $0x10] sm:$0xff]  ;;  %v1070_v42 = vld [vmem:[#allocation2 + $0x8] sm:$0xff]  ;;  %vm6211_vm6 = vmmov 0   ;;  %vm1588_vm7 = vcmask 130048  }
 0x285   : > { %v1151_v43 = vsel %vm1150_vm5, %v1069_v41, 0.0  ;;  %v1157_v44 = vsel %vm1150_vm5, %v1071_v32, 0.0  ;;  %v1072_v46 = vld [vmem:[#allocation2 + $0x18] sm:$0xff]  ;;  %v1073_v48 = vld [vmem:[#allocation2 + $0x20] sm:$0xff]  ;;  %v1074_v49 = vld [vmem:[#allocation2 + $0x28] sm:$0xff]  ;;  %v1154_v47 = vsel %vm1150_vm5, %v1070_v42, 0.0 }
 0x286   : > { %1152 = vadd.xlane.f32.xlu0 %v1151_v43  ;;  %1158 = vadd.xlane.f32.xlu1 %v1157_v44  ;;  %v1160_v34 = vsel %vm1150_vm5, %v1072_v46, 0.0  ;;  %v1163_v51 = vsel %vm1150_vm5, %v1073_v48, 0.0  ;;  %v1166_v52 = vsel %vm1150_vm5, %v1074_v49, 0.0  ;;  %v5975_v30 = vld [vmem:[%s6341_s15] sm:$0xff]   ;;  %v5976_v33 = vld [vmem:[%s6341_s15 + $0x8] sm:$0xff]   ;;  %v6704_v35 = vld [vmem:[%s6341_s15 + $0x10] sm:$0xff]  }
 0x287   : > { %5526 = vmatprep.subr.bf16.mxu0 %v5975_v30  ;;  %5894 = vmatprep.subr.bf16.mxu1 %v6704_v35  ;;  %v6710_v36 = vld [vmem:[%s6341_s15 + $0x18] sm:$0xff]   ;;  %vm2057_vm8 = vcmask 1043456   ;;  %vm1957_vm10 = vcmask 64512   ;;  %p5326_p8 = scmp.ne.s32.totalorder %s6190_s29, 1 }
 0x288   : > { %5527 = vmatpush3.bf16.msra.mxu0 %v5975_v30  ;;  %5896 = vmatpush3.bf16.msra.mxu1 %v6704_v35  ;;  %vm6213_vm11 = vmmov (!%p5326_p8), 0   ;;  %s7649_s21 = sld [smem:[#allocation16_spill]] (!%p5326_p8)  ;;  %vm4984_vm12 = vcmask (!%p5326_p8), 57344  }
 0x289   : > { %v1076_v27 = vld [vmem:[#allocation2 + $0x38] sm:$0xff]  ;;  %5528 = vmatprep.subr.bf16.mxu0 %v5976_v33  ;;  %5895 = vmatprep.subr.bf16.mxu1 %v6710_v36 }
 0x28a   : > { %v1075_v24 = vld [vmem:[#allocation2 + $0x30] sm:$0xff]  ;;  %v1172_v54 = vsel %vm1150_vm5, %v1076_v27, 0.0  ;;  %1155 = vadd.xlane.f32.xlu0 %v1154_v47  ;;  %1161 = vadd.xlane.f32.xlu1 %v1160_v34 }
 0x28b   : > { %v1169_v53 = vsel %vm1150_vm5, %v1075_v24, 0.0 }
 0x28c   : > { %5529 = vmatpush3.bf16.msra.mxu0 %v5976_v33  ;;  %5897 = vmatpush3.bf16.msra.mxu1 %v6710_v36 }
 0x28d   : > { %5538 = vmatprep.subr.bf16.mxu0 %v6704_v35 }
 0x28e   : > { %1164 = vadd.xlane.f32.xlu0 %v1163_v51  ;;  %1167 = vadd.xlane.f32.xlu1 %v1166_v52 }
 0x292   : > { %1170 = vadd.xlane.f32.xlu0 %v1169_v53  ;;  %1173 = vadd.xlane.f32.xlu1 %v1172_v54 }
 0x313   : > { %v1153_v56 = vpop.xlane.xlu0 %1152  ;;  %v1159_v20 = vpop.xlane.xlu1 %1158 }
 0x314   : > { %v1176_v57 = vmul.f32 0.03125, %v1153_v56  ;;  %v1178_v58 = vmul.f32 0.03125, %v1159_v20 }
 0x316   : > { %v6661_v59 = vsub.f32 %v1069_v41, %v1176_v57  ;;  %v6663_v60 = vsub.f32 %v1071_v32, %v1178_v58 }
 0x317   : > { %v1156_v31 = vpop.xlane.xlu0 %1155  ;;  %v1162_v61 = vpop.xlane.xlu1 %1161 }
 0x318   : > { %v1177_v62 = vmul.f32 0.03125, %v1156_v31  ;;  %v1179_v63 = vmul.f32 0.03125, %v1162_v61  ;;  %v1192_v0 = vmul.f32 %v6661_v59, %v6661_v59  ;;  %v1194_v1 = vmul.f32 %v6663_v60, %v6663_v60  ;;  %v5196_v31 = vld [vmem:[%s6370_s7] ss:$0 sm:$0xff] }
 0x31a   : > { %v6669_v2 = vsub.f32 %v1070_v42, %v1177_v62  ;;  %v6671_v3 = vsub.f32 %v1072_v46, %v1179_v63  ;;  %v1200_v4 = vsel %vm1150_vm5, %v1192_v0, 0.0  ;;  %v1206_v7 = vsel %vm1150_vm5, %v1194_v1, 0.0 }
 0x31b   : > { %1201 = vadd.xlane.f32.xlu0 %v1200_v4  ;;  %v1165_v5 = vpop.xlane.xlu0 %1164  ;;  %v1168_v6 = vpop.xlane.xlu1 %1167 }
 0x31c   : > { %v1180_v11 = vmul.f32 0.03125, %v1165_v5  ;;  %v1181_v12 = vmul.f32 0.03125, %v1168_v6  ;;  %v1193_v14 = vmul.f32 %v6669_v2, %v6669_v2  ;;  %v1195_v15 = vmul.f32 %v6671_v3, %v6671_v3  ;;  %v5197_v5 = vld [vmem:[%s6370_s7 + $0x1] ss:$0 sm:$0xff] }
 0x31e   : > { %v6679_v40 = vsub.f32 %v1073_v48, %v1180_v11  ;;  %v6681_v13 = vsub.f32 %v1074_v49, %v1181_v12  ;;  %v1203_v10 = vsel %vm1150_vm5, %v1193_v14, 0.0  ;;  %v1209_v17 = vsel %vm1150_vm5, %v1195_v15, 0.0 }
 0x31f   : > { %1207 = vadd.xlane.f32.xlu0 %v1206_v7  ;;  %1204 = vadd.xlane.f32.xlu1 %v1203_v10  ;;  %v1171_v16 = vpop.xlane.xlu0 %1170  ;;  %v1174_v39 = vpop.xlane.xlu1 %1173 }
 0x320   : > { %v1182_v55 = vmul.f32 0.03125, %v1171_v16  ;;  %v1183_v19 = vmul.f32 0.03125, %v1174_v39  ;;  %v1196_v21 = vmul.f32 %v6679_v40, %v6679_v40  ;;  %v1197_v22 = vmul.f32 %v6681_v13, %v6681_v13 }
 0x322   : > { %v6689_v45 = vsub.f32 %v1075_v24, %v1182_v55  ;;  %v6691_v18 = vsub.f32 %v1076_v27, %v1183_v19  ;;  %v1212_v28 = vsel %vm1150_vm5, %v1196_v21, 0.0  ;;  %v1215_v23 = vsel %vm1150_vm5, %v1197_v22, 0.0 }
 0x323   : > { %1210 = vadd.xlane.f32.xlu1 %v1209_v17  ;;  %1213 = vadd.xlane.f32.xlu0 %v1212_v28 }
 0x324   : > { %v1198_v25 = vmul.f32 %v6689_v45, %v6689_v45  ;;  %v1199_v26 = vmul.f32 %v6691_v18, %v6691_v18 }
 0x326   : > { %v1218_v50 = vsel %vm1150_vm5, %v1198_v25, 0.0  ;;  %v1221_v29 = vsel %vm1150_vm5, %v1199_v26, 0.0 }
 0x327   : > { %1216 = vadd.xlane.f32.xlu1 %v1215_v23  ;;  %1219 = vadd.xlane.f32.xlu0 %v1218_v50 }
 0x32b   : > { %1222 = vadd.xlane.f32.xlu1 %v1221_v29 }
 0x3a8   : > { %v1202_v8 = vpop.xlane.xlu0 %1201 }
 0x3a9   : > { %v1224_v9 = vmul.f32 0.03125, %v1202_v8 }
 0x3ab   : > { %v1232_v37 = vadd.f32 1e-05, %v1224_v9 }
 0x3ac   : > { %v1205_v38 = vpop.xlane.xlu1 %1204  ;;  %v1208_v41 = vpop.xlane.xlu0 %1207 }
 0x3ad   : > { %5999 = vrsqrt.f32 %v1232_v37  ;;  %v1225_v32 = vmul.f32 0.03125, %v1205_v38  ;;  %v1226_v42 = vmul.f32 0.03125, %v1208_v41 }
 0x3af   : > { %v1233_v43 = vadd.f32 1e-05, %v1225_v32  ;;  %v1234_v44 = vadd.f32 1e-05, %v1226_v42 }
 0x3b0   : > { %v1211_v46 = vpop.xlane.xlu1 %1210  ;;  %v1214_v48 = vpop.xlane.xlu0 %1213 }
 0x3b1   : > { %6001 = vrsqrt.f32 %v1233_v43  ;;  %v1227_v49 = vmul.f32 0.03125, %v1211_v46  ;;  %v1228_v47 = vmul.f32 0.03125, %v1214_v48 }
 0x3b2   : > { %6003 = vrsqrt.f32 %v1234_v44 }
 0x3b3   : > { %v1235_v34 = vadd.f32 1e-05, %v1227_v49  ;;  %v1236_v51 = vadd.f32 1e-05, %v1228_v47 }
 0x3b4   : > { %v1217_v52 = vpop.xlane.xlu1 %1216  ;;  %v1220_v24 = vpop.xlane.xlu0 %1219 }
 0x3b5   : > { %6005 = vrsqrt.f32 %v1235_v34  ;;  %v1229_v27 = vmul.f32 0.03125, %v1217_v52  ;;  %v1230_v53 = vmul.f32 0.03125, %v1220_v24  ;;  %v6778_v34 = vld [vmem:[%s6358_s30 + $0x1] ss:$0 sm:$0xff] }
 0x3b6   : > { %6007 = vrsqrt.f32 %v1236_v51 }
 0x3b7   : > { %v6000_v54 = vpop.eup %5999  ;;  %v1237_v56 = vadd.f32 1e-05, %v1229_v27  ;;  %v1238_v20 = vadd.f32 1e-05, %v1230_v53 }
 0x3b8   : > { %v1248_v57 = vmul.f32 %v6000_v54, %v6661_v59  ;;  %v1223_v58 = vpop.xlane.xlu1 %1222 }
 0x3b9   : > { %6009 = vrsqrt.f32 %v1237_v56  ;;  %v1231_v61 = vmul.f32 0.03125, %v1223_v58 }
 0x3ba   : > { %6011 = vrsqrt.f32 %v1238_v20  ;;  %v1260_v1 = vmul.f32 %v5196_v31, %v1248_v57  ;;  %v6783_v20 = vld [vmem:[%s6358_s30] ss:$0 sm:$0xff] }
 0x3bb   : > { %v6002_v62 = vpop.eup %6001  ;;  %v1239_v63 = vadd.f32 1e-05, %v1231_v61 }
 0x3bc   : > { %v6004_v0 = vpop.eup %6003  ;;  %v1249_v4 = vmul.f32 %v6002_v62, %v6669_v2  ;;  %v1272_v14 = vadd.f32 %v5197_v5, %v1260_v1 }
 0x3bd   : > { %v1250_v6 = vmul.f32 %v6004_v0, %v6663_v60  ;;  %6013 = vrsqrt.f32 %v1239_v63  ;;  %v6790_v63 = vld [vmem:[%s6358_s30 + $0x2] ss:$0 sm:$0xff] }
 0x3be   : > { %v1261_v7 = vmul.f32 %v5196_v31, %v1249_v4 }
 0x3bf   : > { %v6006_v11 = vpop.eup %6005  ;;  %v1262_v15 = vmul.f32 %v5196_v31, %v1250_v6 }
 0x3c0   : > { %v6008_v12 = vpop.eup %6007  ;;  %v1273_v59 = vadd.f32 %v5197_v5, %v1261_v7  ;;  %v1251_v10 = vmul.f32 %v6006_v11, %v6671_v3 }
 0x3c1   : > { %v1252_v16 = vmul.f32 %v6008_v12, %v6679_v40  ;;  %v1274_v2 = vadd.f32 %v5197_v5, %v1262_v15 }
 0x3c2   : > { %v1263_v39 = vmul.f32 %v5196_v31, %v1251_v10  ;;  %v6721_v17 = vpack.c.bf16 %v1273_v59, %v1272_v14 }
 0x3c3   : > { %v6010_v55 = vpop.eup %6009  ;;  %v1264_v22 = vmul.f32 %v5196_v31, %v1252_v16 }
 0x3c4   : > { %v6012_v19 = vpop.eup %6011  ;;  %v1275_v21 = vadd.f32 %v5197_v5, %v1263_v39  ;;  %v1253_v60 = vmul.f32 %v6010_v55, %v6681_v13  ;;  %5530 = vmatprep.mubr.msk.bf16.mxu0 %vm1150_vm5, %v6721_v17 }
 0x3c5   : > { %v1254_v28 = vmul.f32 %v6012_v19, %v6689_v45  ;;  %v1276_v25 = vadd.f32 %v5197_v5, %v1264_v22  ;;  %v5979_v45 = vld [vmem:[%s6341_s15 + $0x20] sm:$0xff]  }
 0x3c6   : > { %v1265_v23 = vmul.f32 %v5196_v31, %v1253_v60  ;;  %v6727_v3 = vpack.c.bf16 %v1275_v21, %v1274_v2 }
 0x3c7   : > { %v6014_v40 = vpop.eup %6013  ;;  %v1266_v50 = vmul.f32 %v5196_v31, %v1254_v28 }
 0x3c8   : > { %v1277_v26 = vadd.f32 %v5197_v5, %v1265_v23  ;;  %v1255_v29 = vmul.f32 %v6014_v40, %v6691_v18  ;;  %5531 = vmatmul.mubr.msk.bf16.vlgmr.msra.gmra.mrb[0].mxu0 %vm1150_vm5, %v6727_v3 }
 0x3c9   : > { %5539 = vmatpush3.bf16.msra.mxu0 %v6704_v35  ;;  %v1278_v33 = vadd.f32 %v5197_v5, %v1266_v50  ;;  %v5980_v35 = vld [vmem:[%s6341_s15 + $0x28] sm:$0xff]  }
 0x3ca   : > { %v1267_v13 = vmul.f32 %v5196_v31, %v1255_v29  ;;  %v6733_v30 = vpack.c.bf16 %v1277_v26, %v1276_v25  ;;  %5540 = vmatprep.subr.bf16.mxu0 %v6710_v36 }
 0x3cc   : > { %v1279_v8 = vadd.f32 %v5197_v5, %v1267_v13  ;;  %5534 = vmatprep.mubr.msk.bf16.mxu0 %vm1150_vm5, %v6733_v30  ;;  %5546 = vmatprep.mubr.msk.bf16.mxu1 %vm1150_vm5, %v6733_v30 }
 0x3cd   : > { %5541 = vmatpush3.bf16.msra.mxu0 %v6710_v36  ;;  %v6210_v36 = vmov 0.0  }
 0x3ce   : > { %v6742_v18 = vpack.c.bf16 %v1279_v8, %v1278_v33  ;;  %5550 = vmatprep.subr.bf16.mxu0 %v5979_v45  ;;  %5562 = vmatprep.subr.bf16.mxu1 %v6210_v36 }
 0x3d0   : > { %5535 = vmatmul.mubr.msk.bf16.gmra.mrb[4].mxu0 %vm1150_vm5, %v6742_v18  ;;  %5547 = vmatmul.mubr.msk.bf16.vlgmr.msra.gmra.mrb[0].mxu1 %vm1150_vm5, %v6742_v18 }
 0x3d1   : > { %5542 = vmatprep.mubr.msk.bf16.mxu0 %vm1150_vm5, %v6721_v17  ;;  %5564 = vmatprep.mubr.msk.bf16.mxu1 %vm6211_vm6, %v6210_v36 }
 0x3d8   : > { %5543 = vmatmul.mubr.msk.bf16.vlgmr.msra.gmra.mrb[8].mxu0 %vm1150_vm5, %v6727_v3 }
 0x3d9   : > { %5551 = vmatpush3.bf16.msra.mxu0 %v5979_v45  ;;  %5554 = vmatprep.mubr.msk.bf16.mxu0 %vm1150_vm5, %v6721_v17 }
 0x3da   : > { %5552 = vmatprep.subr.bf16.mxu0 %v5980_v35 }
 0x3dd   : > { %5553 = vmatpush3.bf16.msra.mxu0 %v5980_v35 }
 0x3de   : > { %5574 = vmatprep.subr.bf16.mxu0 %v6210_v36 }
 0x3e0   : > { %5555 = vmatmul.mubr.msk.bf16.vlgmr.msra.gmra.mrb[12].mxu0 %vm1150_vm5, %v6727_v3 }
 0x3e1   : > { %5558 = vmatprep.mubr.msk.bf16.mxu0 %vm1150_vm5, %v6733_v30 }
 0x3e8   : > { %5559 = vmatmul.mubr.msk.bf16.gmra.mrb[16].mxu0 %vm1150_vm5, %v6742_v18 }
 0x3e9   : > { %5576 = vmatprep.mubr.msk.bf16.mxu0 %vm6211_vm6, %v6210_v36 }
 0x49b   : > { %v5532_v9 = vpop.f32.mrb[0].mxu0 }
 0x49c   : > { %v1353_v37 = vpop.f32.mrb[1].mxu0  ;;  %v1362_v0 = vadd.f32 %v5532_v9, %v6783_v20 }
 0x49d   : > { %v6767_v38 = vpop.f32.mrb[2].mxu0  ;;  %v1354_v1 = vadd.f32 %v6783_v20, %v1353_v37 }
 0x49e   : > { %v1356_v41 = vpop.f32.mrb[3].mxu0  ;;  %v1566_v14 = vpack.c.bf16 %v1362_v0, %v1362_v0 }
 0x49f   : > { %v1564_v10 = vpack.c.bf16 %v1354_v1, %v1354_v1  ;;  %v1357_v21 = vadd.f32 %v6783_v20, %v1356_v41 }
 0x4a1   : > { %v1565_v45 = vpack.c.bf16 %v1357_v21, %v1357_v21 }
 0x4a3   : > { %v6769_v32 = vpop.f32.mrb[4].mxu0  ;;  %v5548_v42 = vpop.f32.mrb[0].mxu1 }
 0x4a4   : > { %v1369_v43 = vpop.f32.mrb[5].mxu0  ;;  %v1459_v44 = vpop.f32.mrb[1].mxu1  ;;  %v1468_v16 = vadd.f32 %v5548_v42, %v6778_v34  ;;  %v1378_v41 = vadd.f32 %v6769_v32, %v6783_v20  ;;  %v1365_v42 = vadd.f32 %v6767_v38, %v6783_v20 }
 0x4a5   : > { %v6771_v46 = vpop.f32.mrb[6].mxu0  ;;  %v6773_v48 = vpop.f32.mrb[2].mxu1  ;;  %v1460_v58 = vadd.f32 %v6778_v34, %v1459_v44  ;;  %v1370_v2 = vadd.f32 %v6783_v20, %v1369_v43 }
 0x4a6   : > { %v6775_v49 = vpop.f32.mrb[7].mxu0  ;;  %v1462_v47 = vpop.f32.mrb[3].mxu1  ;;  %v1578_v60 = vpack.c.bf16 %v1468_v16, %v1468_v16 }
 0x4a7   : > { %v1576_v5 = vpack.c.bf16 %v1460_v58, %v1460_v58  ;;  %v1568_v50 = vpack.c.bf16 %v1370_v2, %v1370_v2  ;;  %v1463_v9 = vadd.f32 %v6778_v34, %v1462_v47  ;;  %v1570_v47 = vpack.c.bf16 %v1378_v41, %v1378_v41 }
 0x4a8   : > { %v1869_v8 = vsel %vm1588_vm7, %v1578_v60, 0  ;;  %v1077_v58 = vlaneseq }
 0x4a9   : > { %v1777_v39 = vsel %vm1588_vm7, %v1576_v5, 0  ;;  %v1577_v44 = vpack.c.bf16 %v1463_v9, %v1463_v9 }
 0x4ab   : > { %v5544_v51 = vpop.f32.mrb[8].mxu0  ;;  %v1823_v38 = vsel %vm1588_vm7, %v1577_v44, 0 }
 0x4ac   : > { %v1452_v52 = vadd.f32 %v5544_v51, %v6778_v34  ;;  %v1443_v24 = vpop.f32.mrb[9].mxu0  ;;  %v1567_v51 = vpack.c.bf16 %v1365_v42, %v1365_v42 }
 0x4ad   : > { %v1444_v27 = vadd.f32 %v6778_v34, %v1443_v24  ;;  %v5545_v53 = vpop.f32.mrb[10].mxu0  ;;  %v1373_v24 = vadd.f32 %v6783_v20, %v6775_v49  ;;  %v1381_v49 = vadd.f32 %v6771_v46, %v6783_v20  ;;  %v5188_v20 = vld [vmem:[%s6331_s27] ss:$0 sm:$0xff] }
 0x4ae   : > { %v1574_v54 = vpack.c.bf16 %v1452_v52, %v1452_v52  ;;  %v1446_v56 = vpop.f32.mrb[11].mxu0  ;;  %v1455_v55 = vadd.f32 %v5545_v53, %v6778_v34  ;;  %v1471_v52 = vadd.f32 %v6773_v48, %v6778_v34 }
 0x4af   : > { %v1572_v57 = vpack.c.bf16 %v1444_v27, %v1444_v27  ;;  %v1447_v62 = vadd.f32 %v6778_v34, %v1446_v56  ;;  %v1569_v34 = vpack.c.bf16 %v1373_v24, %v1373_v24  ;;  %v1571_v56 = vpack.c.bf16 %v1381_v49, %v1381_v49 }
 0x4b0   : > { %v1685_v31 = vsel %vm1588_vm7, %v1574_v54, 0  ;;  %v1575_v40 = vpack.c.bf16 %v1455_v55, %v1455_v55  ;;  %v1579_v48 = vpack.c.bf16 %v1471_v52, %v1471_v52 }
 0x4b1   : > { %v1593_v61 = vsel %vm1588_vm7, %v1572_v57, 0  ;;  %5575 = vmatpush3.bf16.xpose.msra.mxu0 %v1685_v31  ;;  %v1573_v11 = vpack.c.bf16 %v1447_v62, %v1447_v62  ;;  %v1078_v31 = vshrl.u32 %v1077_v58, 7  ;;  %v5190_v62 = vld [vmem:[%s6331_s27 + $0x2] ss:$0 sm:$0xff] }
 0x4b2   : > { %5563 = vmatpush3.bf16.xpose.msra.mxu1 %v1593_v61  ;;  %5586 = vmatprep.subr.bf16.mxu0 %v6210_v36  ;;  %v1731_v37 = vsel %vm1588_vm7, %v1575_v40, 0  ;;  %v1915_v27 = vsel %vm1588_vm7, %v1579_v48, 0  ;;  %v1080_v61 = vand.u32 127, %v1077_v58 }
 0x4b3   : > { %v5556_v4 = vpop.f32.mrb[12].mxu0  ;;  %5568 = vmatprep.subr.bf16.mxu1 %v6210_v36  ;;  %v1639_v19 = vsel %vm1588_vm7, %v1573_v11, 0 }
 0x4b4   : > { %v6797_v6 = vadd.f32 %v5556_v4, %v6790_v63  ;;  %v1533_v7 = vpop.f32.mrb[13].mxu0  ;;  %vm6871_vm9 = vcmp.le.s32.totalorder %v1080_v61, %v1078_v31 }
 0x4b5   : > { %v5557_v12 = vpop.f32.mrb[14].mxu0  ;;  %v1534_v35 = vadd.f32 %v6790_v63, %v1533_v7  ;;  %v6883_v1 = vsel %vm6871_vm9, %v5190_v62, -1e+30 }
 0x4b6   : > { %v6800_v59 = vadd.f32 %v5557_v12, %v6790_v63  ;;  %v1536_v15 = vpop.f32.mrb[15].mxu0 }
 0x4b7   : > { %v1580_v43 = vpack.c.bf16 %v1534_v35, %v1534_v35  ;;  %v1537_v53 = vadd.f32 %v6790_v63, %v1536_v15 }
 0x4b8   : > { %5577 = vmatmul.mubr.msk.bf16.vlgmr.msra.gmra.mrb[20].mxu0 %vm1588_vm7, %v1566_v14 }
 0x4b9   : > { %5565 = vmatmul.mubr.msk.bf16.vlgmr.msra.gmra.mrb[4].mxu1 %vm1588_vm7, %v1564_v10  ;;  %5587 = vmatpush3.bf16.xpose.msra.mxu0 %v1777_v39  ;;  %v2059_v32 = vsel %vm2057_vm8, %v1580_v43, 0  ;;  %v1581_v54 = vpack.c.bf16 %v1537_v53, %v1537_v53  ;;  %v5192_v10 = vld [vmem:[%s6331_s27 + $0x4] ss:$0 sm:$0xff]  ;;  %v5191_v43 = vld [vmem:[%s6331_s27 + $0x3] ss:$0 sm:$0xff] }
 0x4ba   : > { %5569 = vmatpush3.bf16.xpose.msra.mxu1 %v1639_v19  ;;  %5588 = vmatprep.mubr.msk.bf16.mxu0 %vm6211_vm6, %v6210_v36  ;;  %v5189_v19 = vld [vmem:[%s6331_s27 + $0x1] ss:$0 sm:$0xff]  ;;  %v6897_v2 = vsel %vm6871_vm9, %v5192_v10, -1e+30 }
 0x4bb   : > { %v5560_v22 = vpop.f32.mrb[16].mxu0  ;;  %5570 = vmatprep.mubr.msk.bf16.mxu1 %vm6211_vm6, %v6210_v36  ;;  %5598 = vmatprep.subr.bf16.mxu0 %v6210_v36  ;;  %v2105_v57 = vsel %vm2057_vm8, %v1581_v54, 0  ;;  %v6901_v21 = vsel %vm6871_vm9, %v5189_v19, -1e+30 }
 0x4bc   : > { %v6816_v28 = vadd.f32 %v5560_v22, %v6790_v63  ;;  %v1549_v23 = vpop.f32.mrb[17].mxu0  ;;  %5580 = vmatprep.subr.bf16.mxu1 %v6210_v36 }
 0x4bd   : > { %v6820_v25 = vadd.f32 %v6790_v63, %v1549_v23  ;;  %v5561_v26 = vpop.f32.mrb[18].mxu0 }
 0x4be   : > { %v6823_v29 = vadd.f32 %v5561_v26, %v6790_v63  ;;  %v1552_v13 = vpop.f32.mrb[19].mxu0 }
 0x4bf   : > { %v6826_v33 = vadd.f32 %v6790_v63, %v1552_v13  ;;  %v6879_v63 = vsel %vm6871_vm9, %v5188_v20, -1e+30 }
 0x4c0   : > { %5589 = vmatmul.mubr.msk.bf16.vlgmr.msra.gmra.mrb[24].mxu0 %vm1588_vm7, %v1568_v50 }
 0x4c1   : > { %5571 = vmatmul.mubr.msk.bf16.vlgmr.msra.gmra.mrb[8].mxu1 %vm1588_vm7, %v1565_v45  ;;  %5599 = vmatpush3.bf16.xpose.msra.mxu0 %v1869_v8 }
 0x4c2   : > { %5581 = vmatpush3.bf16.xpose.msra.mxu1 %v1731_v37  ;;  %5600 = vmatprep.mubr.msk.bf16.mxu0 %vm6211_vm6, %v6210_v36  ;;  %v5194_v37 = vld [vmem:[%s6331_s27 + $0x6] ss:$0 sm:$0xff] }
 0x4c3   : > { %5582 = vmatprep.mubr.msk.bf16.mxu1 %vm6211_vm6, %v6210_v36  ;;  %5610 = vmatprep.subr.bf16.mxu0 %v6210_v36  ;;  %v6916_v44 = vsel %vm6871_vm9, %v5194_v37, -1e+30 }
 0x4c4   : > { %5592 = vmatprep.subr.bf16.mxu1 %v6210_v36 }
 0x4c8   : > { %5601 = vmatmul.mubr.msk.bf16.vlgmr.msra.gmra.mrb[28].mxu0 %vm1588_vm7, %v1570_v47  ;;  %v6920_v47 = vsel %vm6871_vm9, %v5191_v43, -1e+30 }
 0x4c9   : > { %5583 = vmatmul.mubr.msk.bf16.vlgmr.msra.gmra.mrb[12].mxu1 %vm1588_vm7, %v1567_v51  ;;  %5611 = vmatpush3.bf16.msra.mxu0 %v2059_v32 }
 0x4ca   : > { %5593 = vmatpush3.bf16.xpose.msra.mxu1 %v1823_v38  ;;  %5594 = vmatprep.mubr.msk.bf16.mxu1 %vm6211_vm6, %v6210_v36 }
 0x4cb   : > { %5604 = vmatprep.subr.bf16.mxu1 %v6210_v36  ;;  %5612 = vmatprep.mubr.msk.bf16.mxu0 %vm6211_vm6, %v6210_v36 }
 0x4cc   : > { %5622 = vmatprep.subr.bf16.mxu0 %v6210_v36 }
 0x4d1   : > { %5595 = vmatmul.mubr.msk.bf16.vlgmr.msra.gmra.mrb[16].mxu1 %vm1588_vm7, %v1569_v34 }
 0x4d2   : > { %5605 = vmatpush3.bf16.xpose.msra.mxu1 %v1915_v27  ;;  %5606 = vmatprep.mubr.msk.bf16.mxu1 %vm6211_vm6, %v6210_v36 }
 0x4d3   : > { %5616 = vmatprep.subr.bf16.mxu1 %v6210_v36 }
 0x4d9   : > { %5607 = vmatmul.mubr.msk.bf16.vlgmr.msra.gmra.mrb[20].mxu1 %vm1588_vm7, %v1571_v56 }
 0x4da   : > { %5617 = vmatpush3.bf16.msra.mxu1 %v2105_v57  ;;  %5618 = vmatprep.mubr.msk.bf16.mxu1 %vm6211_vm6, %v6210_v36  ;;  %v5193_v57 = vld [vmem:[%s6331_s27 + $0x5] ss:$0 sm:$0xff] }
 0x4db   : > { %5628 = vmatprep.subr.bf16.mxu1 %v6210_v36  ;;  %v6929_v58 = vsel %vm6871_vm9, %v5193_v57, -1e+30 }
 0x58b   : > { %v1721_v0 = vpop.f32.mrb[20].mxu0 }
 0x58c   : > { %v1629_v4 = vpop.f32.mrb[4].mxu1  ;;  %v5578_v5 = vpop.f32.mrb[21].mxu0  ;;  %v6890_v16 = vadd.f32 %v1721_v0, %v6883_v1 }
 0x58d   : > { %v6886_v7 = vadd.f32 %v1629_v4, %v6879_v63  ;;  %v5566_v11 = vpop.f32.mrb[5].mxu1  ;;  %v1724_v12 = vpop.f32.mrb[22].mxu0  ;;  %v5195_v5 = vld [vmem:[%s6331_s27 + $0x7] ss:$0 sm:$0xff] }
 0x58e   : > { %v1632_v14 = vpop.f32.mrb[6].mxu1  ;;  %v5579_v15 = vpop.f32.mrb[23].mxu0  ;;  %v1964_v60 = vsel %vm1957_vm10, %v6890_v16, -inf  ;;  %v6936_v11 = vsel %vm6871_vm9, %v5195_v5, -1e+30 }
 0x58f   : > { %v5567_v39 = vpop.f32.mrb[7].mxu1  ;;  %v1958_v55 = vsel %vm1957_vm10, %v6886_v7, -inf }
 0x590   : > { %1959 = vmax.xlane.f32.xlu1 %v1958_v55 }
 0x593   : > { %v1813_v22 = vpop.f32.mrb[24].mxu0 }
 0x594   : > { %v6906_v23 = vadd.f32 %v1813_v22, %v6897_v2  ;;  %1965 = vmax.xlane.f32.xlu1 %v1964_v60  ;;  %v1675_v40 = vpop.f32.mrb[8].mxu1  ;;  %v5590_v26 = vpop.f32.mrb[25].mxu0 }
 0x595   : > { %v1676_v50 = vadd.f32 %v1675_v40, %v6901_v21  ;;  %v5572_v13 = vpop.f32.mrb[9].mxu1  ;;  %v1816_v45 = vpop.f32.mrb[26].mxu0 }
 0x596   : > { %v1678_v8 = vpop.f32.mrb[10].mxu1  ;;  %v5591_v35 = vpop.f32.mrb[27].mxu0  ;;  %v1970_v9 = vsel %vm1957_vm10, %v6906_v23, -inf }
 0x597   : > { %v5573_v41 = vpop.f32.mrb[11].mxu1  ;;  %v1961_v42 = vsel %vm1957_vm10, %v1676_v50, -inf }
 0x598   : > { %1962 = vmax.xlane.f32.xlu0 %v1961_v42  ;;  %1971 = vmax.xlane.f32.xlu1 %v1970_v9 }
 0x59b   : > { %v1905_v51 = vpop.f32.mrb[28].mxu0 }
 0x59c   : > { %v1906_v32 = vadd.f32 %v1905_v51, %v6916_v44  ;;  %v1767_v52 = vpop.f32.mrb[12].mxu1  ;;  %v5602_v38 = vpop.f32.mrb[29].mxu0 }
 0x59d   : > { %v1768_v24 = vadd.f32 %v1767_v52, %v6920_v47  ;;  %v5584_v48 = vpop.f32.mrb[13].mxu1  ;;  %v1908_v34 = vpop.f32.mrb[30].mxu0 }
 0x59e   : > { %v1770_v27 = vpop.f32.mrb[14].mxu1  ;;  %v5603_v53 = vpop.f32.mrb[31].mxu0  ;;  %v1976_v49 = vsel %vm1957_vm10, %v1906_v32, -inf }
 0x59f   : > { %v5585_v54 = vpop.f32.mrb[15].mxu1  ;;  %1977 = vmax.xlane.f32.xlu1 %v1976_v49  ;;  %v1967_v56 = vsel %vm1957_vm10, %v1768_v24, -inf }
 0x5a0   : > { %1968 = vmax.xlane.f32.xlu0 %v1967_v56 }
 0x5a4   : > { %v1859_v31 = vpop.f32.mrb[16].mxu1 }
 0x5a5   : > { %v1860_v61 = vadd.f32 %v1859_v31, %v6929_v58  ;;  %v5596_v20 = vpop.f32.mrb[17].mxu1 }
 0x5a6   : > { %v1862_v62 = vpop.f32.mrb[18].mxu1 }
 0x5a7   : > { %v5597_v0 = vpop.f32.mrb[19].mxu1  ;;  %v1973_v4 = vsel %vm1957_vm10, %v1860_v61, -inf }
 0x5a8   : > { %1974 = vmax.xlane.f32.xlu0 %v1973_v4 }
 0x5ac   : > { %v1951_v12 = vpop.f32.mrb[20].mxu1 }
 0x5ad   : > { %v1952_v14 = vadd.f32 %v1951_v12, %v6936_v11  ;;  %v5608_v15 = vpop.f32.mrb[21].mxu1 }
 0x5ae   : > { %v1954_v10 = vpop.f32.mrb[22].mxu1 }
 0x5af   : > { %v5609_v39 = vpop.f32.mrb[23].mxu1  ;;  %v1979_v55 = vsel %vm1957_vm10, %v1952_v14, -inf }
 0x5b0   : > { %1980 = vmax.xlane.f32.xlu0 %v1979_v55 }
 0x61d   : > { %v1960_v19 = vpop.xlane.xlu1 %1959 }
 0x61e   : > { %v1982_v22 = vsub.f32 %v6886_v7, %v1960_v19  ;;  %v1582_v19 = vpack.c.bf16 %v6797_v6, %v6797_v6  ;;  %v1583_v6 = vpack.c.bf16 %v6800_v59, %v6800_v59 }
 0x620   : > { %v1990_v60 = vmul.f32 1.442695, %v1982_v22 }
 0x621   : > { %v1966_v40 = vpop.xlane.xlu1 %1965 }
 0x622   : > { %6015 = vpow2.f32 %v1990_v60  ;;  %v1984_v26 = vsub.f32 %v6890_v16, %v1966_v40 }
 0x624   : > { %v1994_v46 = vmul.f32 1.442695, %v1984_v26  ;;  %v2151_v26 = vsel %vm2057_vm8, %v1582_v19, 0 }
 0x625   : > { %v1963_v13 = vpop.xlane.xlu0 %1962  ;;  %v1972_v45 = vpop.xlane.xlu1 %1971 }
 0x626   : > { %6017 = vpow2.f32 %v1994_v46  ;;  %v1983_v8 = vsub.f32 %v1676_v50, %v1963_v13  ;;  %v1986_v35 = vsub.f32 %v6906_v23, %v1972_v45 }
 0x628   : > { %v1992_v9 = vmul.f32 1.442695, %v1983_v8  ;;  %v1998_v37 = vmul.f32 1.442695, %v1986_v35  ;;  %v1584_v35 = vpack.c.bf16 %v6820_v25, %v6820_v25 }
 0x62a   : > { %6019 = vpow2.f32 %v1992_v9 }
 0x62b   : > { %6021 = vpow2.f32 %v1998_v37 }
 0x62c   : > { %v6016_v41 = vpop.eup %6015  ;;  %v1978_v42 = vpop.xlane.xlu1 %1977 }
 0x62d   : > { %v1988_v43 = vsub.f32 %v1906_v32, %v1978_v42  ;;  %v1969_v7 = vpop.xlane.xlu0 %1968  ;;  %v2006_v51 = vsel %vm1957_vm10, %v6016_v41, 0.0 }
 0x62e   : > { %v1985_v52 = vsub.f32 %v1768_v24, %v1969_v7  ;;  %2007 = vadd.xlane.f32.xlu1 %v2006_v51  ;;  %v2243_v7 = vsel %vm2057_vm8, %v1584_v35, 0 }
 0x62f   : > { %v2002_v16 = vmul.f32 1.442695, %v1988_v43  ;;  %v2197_v43 = vsel %vm2057_vm8, %v1583_v6, 0 }
 0x630   : > { %v6018_v38 = vpop.eup %6017  ;;  %v1996_v48 = vmul.f32 1.442695, %v1985_v52  ;;  %v1586_v52 = vpack.c.bf16 %v6816_v28, %v6816_v28 }
 0x631   : > { %6023 = vpow2.f32 %v2002_v16  ;;  %v2012_v50 = vsel %vm1957_vm10, %v6018_v38, 0.0  ;;  %v1585_v16 = vpack.c.bf16 %v6826_v33, %v6826_v33 }
 0x632   : > { %6025 = vpow2.f32 %v1996_v48  ;;  %2013 = vadd.xlane.f32.xlu1 %v2012_v50 }
 0x634   : > { %v6020_v23 = vpop.eup %6019 }
 0x635   : > { %v6945_v34 = vpop.eup %6021  ;;  %v1975_v27 = vpop.xlane.xlu0 %1974  ;;  %v2009_v53 = vsel %vm1957_vm10, %v6020_v23, 0.0 }
 0x636   : > { %v1987_v32 = vsub.f32 %v1860_v61, %v1975_v27  ;;  %2010 = vadd.xlane.f32.xlu0 %v2009_v53  ;;  %v2018_v24 = vsel %vm1957_vm10, %v6945_v34, 0.0  ;;  %v2335_v27 = vsel %vm2057_vm8, %v1586_v52, 0  ;;  %v2289_v53 = vsel %vm2057_vm8, %v1585_v16, 0 }
 0x637   : > { %2019 = vadd.xlane.f32.xlu1 %v2018_v24  ;;  %v1587_v24 = vpack.c.bf16 %v6823_v29, %v6823_v29  ;;  %v5985_v29 = vld [vmem:[%s6341_s15 + $0x50] sm:$0xff]  }
 0x638   : > { %v2000_v49 = vmul.f32 1.442695, %v1987_v32 }
 0x63a   : > { %6027 = vpow2.f32 %v2000_v49 }
 0x63b   : > { %v6950_v54 = vpop.eup %6023 }
 0x63c   : > { %v6026_v56 = vpop.eup %6025  ;;  %v2024_v57 = vsel %vm1957_vm10, %v6950_v54, 0.0 }
 0x63d   : > { %v1981_v31 = vpop.xlane.xlu0 %1980  ;;  %2025 = vadd.xlane.f32.xlu1 %v2024_v57  ;;  %v2015_v20 = vsel %vm1957_vm10, %v6026_v56, 0.0 }
 0x63e   : > { %v1989_v62 = vsub.f32 %v1952_v14, %v1981_v31  ;;  %2016 = vadd.xlane.f32.xlu0 %v2015_v20  ;;  %v5982_v31 = vld [vmem:[%s6341_s15 + $0x38] sm:$0xff]   ;;  %v2381_v20 = vsel %vm2057_vm8, %v1587_v24, 0 }
 0x640   : > { %v2004_v61 = vmul.f32 1.442695, %v1989_v62 }
 0x642   : > { %6029 = vpow2.f32 %v2004_v61 }
 0x644   : > { %v6955_v0 = vpop.eup %6027 }
 0x645   : > { %v2021_v4 = vsel %vm1957_vm10, %v6955_v0, 0.0 }
 0x646   : > { %2022 = vadd.xlane.f32.xlu0 %v2021_v4  ;;  %v5984_v4 = vld [vmem:[%s6341_s15 + $0x48] sm:$0xff]  }
 0x64c   : > { %v6959_v5 = vpop.eup %6029 }
 0x64d   : > { %v2027_v12 = vsel %vm1957_vm10, %v6959_v5, 0.0 }
 0x64e   : > { %2028 = vadd.xlane.f32.xlu0 %v2027_v12  ;;  %v5986_v12 = vld [vmem:[%s6341_s15 + $0x58] sm:$0xff]  }
 0x6bb   : > { %v2008_v15 = vpop.xlane.xlu1 %2007 }
 0x6bc   : > { %6031 = vrcp.f32 %v2008_v15 }
 0x6bf   : > { %v2014_v10 = vpop.xlane.xlu1 %2013 }
 0x6c0   : > { %6033 = vrcp.f32 %v2014_v10 }
 0x6c3   : > { %v2011_v14 = vpop.xlane.xlu0 %2010 }
 0x6c4   : > { %6035 = vrcp.f32 %v2011_v14  ;;  %v2020_v39 = vpop.xlane.xlu1 %2019 }
 0x6c5   : > { %6037 = vrcp.f32 %v2020_v39 }
 0x6c6   : > { %v6032_v55 = vpop.eup %6031 }
 0x6c7   : > { %v2038_v22 = vmul.f32 %v6032_v55, %v6016_v41 }
 0x6c9   : > { %v2046_v60 = vpack.c.bf16 %v2038_v22, %v2038_v22 }
 0x6ca   : > { %v6034_v40 = vpop.eup %6033  ;;  %v2026_v45 = vpop.xlane.xlu1 %2025 }
 0x6cb   : > { %v2017_v46 = vpop.xlane.xlu0 %2016  ;;  %5613 = vmatmul.mubr.msk.bf16.vlgmr.msra.gmra.mrb[32].mxu0 %vm1957_vm10, %v2046_v60  ;;  %v2040_v13 = vmul.f32 %v6034_v40, %v6018_v38 }
 0x6cc   : > { %6039 = vrcp.f32 %v2017_v46  ;;  %5623 = vmatpush3.bf16.msra.mxu0 %v2151_v26  ;;  %5624 = vmatprep.mubr.msk.bf16.mxu0 %vm6211_vm6, %v6210_v36 }
 0x6cd   : > { %5634 = vmatprep.subr.bf16.mxu0 %v6210_v36  ;;  %6041 = vrcp.f32 %v2026_v45  ;;  %v2048_v41 = vpack.c.bf16 %v2040_v13, %v2040_v13 }
 0x6ce   : > { %v6036_v8 = vpop.eup %6035 }
 0x6cf   : > { %v2039_v9 = vmul.f32 %v6036_v8, %v6020_v23  ;;  %v6038_v42 = vpop.eup %6037 }
 0x6d0   : > { %v2042_v59 = vmul.f32 %v6038_v42, %v6945_v34  ;;  %v5981_v34 = vld [vmem:[%s6341_s15 + $0x30] sm:$0xff]  }
 0x6d1   : > { %v2047_v37 = vpack.c.bf16 %v2039_v9, %v2039_v9 }
 0x6d2   : > { %v2050_v50 = vpack.c.bf16 %v2042_v59, %v2042_v59 }
 0x6d3   : > { %5619 = vmatmul.mubr.msk.bf16.vlgmr.msra.gmra.mrb[24].mxu1 %vm1957_vm10, %v2047_v37  ;;  %v2023_v51 = vpop.xlane.xlu0 %2022  ;;  %5625 = vmatmul.mubr.msk.bf16.vlgmr.msra.gmra.mrb[36].mxu0 %vm1957_vm10, %v2048_v41 }
 0x6d4   : > { %5629 = vmatpush3.bf16.msra.mxu1 %v2197_v43  ;;  %6043 = vrcp.f32 %v2023_v51  ;;  %5635 = vmatpush3.bf16.msra.mxu0 %v2243_v7 }
 0x6d5   : > { %5630 = vmatprep.mubr.msk.bf16.mxu1 %vm6211_vm6, %v6210_v36  ;;  %5636 = vmatprep.mubr.msk.bf16.mxu0 %vm6211_vm6, %v6210_v36 }
 0x6d6   : > { %v6040_v25 = vpop.eup %6039  ;;  %5640 = vmatprep.subr.bf16.mxu1 %v6210_v36  ;;  %5646 = vmatprep.subr.bf16.mxu0 %v6210_v36 }
 0x6d7   : > { %v2041_v38 = vmul.f32 %v6040_v25, %v6026_v56  ;;  %v6042_v23 = vpop.eup %6041 }
 0x6d8   : > { %v2044_v28 = vmul.f32 %v6042_v23, %v6950_v54  ;;  %v5983_v54 = vld [vmem:[%s6341_s15 + $0x40] sm:$0xff]  }
 0x6d9   : > { %v2049_v48 = vpack.c.bf16 %v2041_v38, %v2041_v38 }
 0x6da   : > { %v2052_v57 = vpack.c.bf16 %v2044_v28, %v2044_v28  ;;  %v7072_v28 = vld [vmem:[%s6358_s30 + $0x4] ss:$0 sm:$0xff] }
 0x6db   : > { %5631 = vmatmul.mubr.msk.bf16.vlgmr.msra.gmra.mrb[28].mxu1 %vm1957_vm10, %v2049_v48  ;;  %v2029_v32 = vpop.xlane.xlu0 %2028  ;;  %5637 = vmatmul.mubr.msk.bf16.vlgmr.msra.gmra.mrb[40].mxu0 %vm1957_vm10, %v2050_v50 }
 0x6dc   : > { %5641 = vmatpush3.bf16.msra.mxu1 %v2289_v53  ;;  %6045 = vrcp.f32 %v2029_v32  ;;  %5647 = vmatpush3.bf16.msra.mxu0 %v2335_v27 }
 0x6dd   : > { %5642 = vmatprep.mubr.msk.bf16.mxu1 %vm6211_vm6, %v6210_v36  ;;  %5648 = vmatprep.mubr.msk.bf16.mxu0 %vm6211_vm6, %v6210_v36 }
 0x6de   : > { %v6044_v33 = vpop.eup %6043  ;;  %5652 = vmatprep.subr.bf16.mxu1 %v6210_v36  ;;  %5658 = vmatprep.subr.bf16.mxu0 %v5981_v34 }
 0x6df   : > { %v2043_v49 = vmul.f32 %v6044_v33, %v6955_v0 }
 0x6e1   : > { %v2051_v56 = vpack.c.bf16 %v2043_v49, %v2043_v49 }
 0x6e3   : > { %5643 = vmatmul.mubr.msk.bf16.vlgmr.msra.gmra.mrb[32].mxu1 %vm1957_vm10, %v2051_v56  ;;  %5649 = vmatmul.mubr.msk.bf16.vlgmr.msra.gmra.mrb[44].mxu0 %vm1957_vm10, %v2052_v57 }
 0x6e4   : > { %5653 = vmatpush3.bf16.msra.mxu1 %v2381_v20  ;;  %5659 = vmatpush3.bf16.msra.mxu0 %v5981_v34 }
 0x6e5   : > { %5662 = vmatprep.mubr.msk.bf16.mxu0 %vm1150_vm5, %v6721_v17  ;;  %5660 = vmatprep.subr.bf16.mxu0 %v5982_v31 }
 0x6e6   : > { %v6046_v62 = vpop.eup %6045  ;;  %5654 = vmatprep.mubr.msk.bf16.mxu1 %vm6211_vm6, %v6210_v36  ;;  %5670 = vmatprep.subr.bf16.mxu1 %v5983_v54 }
 0x6e7   : > { %v2045_v61 = vmul.f32 %v6046_v62, %v6959_v5 }
 0x6e8   : > { %5661 = vmatpush3.bf16.msra.mxu0 %v5982_v31 }
 0x6e9   : > { %v2053_v0 = vpack.c.bf16 %v2045_v61, %v2045_v61  ;;  %5682 = vmatprep.subr.bf16.mxu0 %v5985_v29 }
 0x6eb   : > { %5655 = vmatmul.mubr.msk.bf16.vlgmr.msra.gmra.mrb[36].mxu1 %vm1957_vm10, %v2053_v0  ;;  %5663 = vmatmul.mubr.msk.bf16.vlgmr.msra.gmra.mrb[48].mxu0 %vm1150_vm5, %v6727_v3  ;;  %v7083_v0 = vld [vmem:[%s6358_s30 + $0x3] ss:$0 sm:$0xff] }
 0x6ec   : > { %5666 = vmatprep.mubr.msk.bf16.mxu0 %vm1150_vm5, %v6733_v30  ;;  %5671 = vmatpush3.bf16.msra.mxu1 %v5983_v54 }
 0x6ed   : > { %5674 = vmatprep.mubr.msk.bf16.mxu1 %vm1150_vm5, %v6721_v17  ;;  %5672 = vmatprep.subr.bf16.mxu1 %v5984_v4 }
 0x6ee   : > { %5683 = vmatpush3.bf16.msra.mxu0 %v5985_v29 }
 0x6ef   : > { %5684 = vmatprep.subr.bf16.mxu0 %v5986_v12 }
 0x6f0   : > { %5673 = vmatpush3.bf16.msra.mxu1 %v5984_v4 }
 0x6f1   : > { %5694 = vmatprep.subr.bf16.mxu1 %v6210_v36 }
 0x6f2   : > { %5685 = vmatpush3.bf16.msra.mxu0 %v5986_v12 }
 0x6f3   : > { %5667 = vmatmul.mubr.msk.bf16.gmra.mrb[52].mxu0 %vm1150_vm5, %v6742_v18  ;;  %5675 = vmatmul.mubr.msk.bf16.vlgmr.msra.gmra.mrb[40].mxu1 %vm1150_vm5, %v6727_v3 }
 0x6f4   : > { %5678 = vmatprep.mubr.msk.bf16.mxu1 %vm1150_vm5, %v6733_v30  ;;  %5686 = vmatprep.mubr.msk.bf16.mxu0 %vm1150_vm5, %v6721_v17 }
 0x6f5   : > { %5706 = vmatprep.subr.bf16.mxu0 %v6210_v36 }
 0x6fb   : > { %5679 = vmatmul.mubr.msk.bf16.gmra.mrb[44].mxu1 %vm1150_vm5, %v6742_v18  ;;  %5687 = vmatmul.mubr.msk.bf16.vlgmr.msra.gmra.mrb[56].mxu0 %vm1150_vm5, %v6727_v3 }
 0x6fc   : > { %5690 = vmatprep.mubr.msk.bf16.mxu0 %vm1150_vm5, %v6733_v30  ;;  %5696 = vmatprep.mubr.msk.bf16.mxu1 %vm6211_vm6, %v6210_v36 }
 0x703   : > { %5691 = vmatmul.mubr.msk.bf16.gmra.mrb[60].mxu0 %vm1150_vm5, %v6742_v18 }
 0x704   : > { %5708 = vmatprep.mubr.msk.bf16.mxu0 %vm6211_vm6, %v6210_v36 }
 0x79e   : > { %v7045_v17 = vpop.f32.mrb[32].mxu0 }
 0x79f   : > { %v5614_v5 = vpop.f32.mrb[33].mxu0 }
 0x7a0   : > { %v2098_v15 = vpop.f32.mrb[34].mxu0 }
 0x7a1   : > { %v5615_v10 = vpop.f32.mrb[35].mxu0 }
 0x7a2   : > { %v7089_v10 = vld [vmem:[%s6358_s30 + $0x5] ss:$0 sm:$0xff] }
 0x7a6   : > { %v7047_v14 = vpop.f32.mrb[24].mxu1  ;;  %v7049_v3 = vpop.f32.mrb[36].mxu0 }
 0x7a7   : > { %v2423_v30 = vpack.c.bf16 %v7047_v14, %v7045_v17  ;;  %v5620_v39 = vpop.f32.mrb[25].mxu1  ;;  %v5626_v55 = vpop.f32.mrb[37].mxu0  ;;  %v6111_v14 = vld [vmem:[#allocation2 + $0x10] sm:$0xff] }
 0x7a8   : > { %v2144_v19 = vpop.f32.mrb[26].mxu1  ;;  %v2190_v22 = vpop.f32.mrb[38].mxu0 }
 0x7a9   : > { %v5621_v18 = vpop.f32.mrb[27].mxu1  ;;  %v5627_v60 = vpop.f32.mrb[39].mxu0 }
 0x7ae   : > { %v7053_v40 = vpop.f32.mrb[28].mxu1  ;;  %v7055_v26 = vpop.f32.mrb[40].mxu0 }
 0x7af   : > { %v2424_v46 = vpack.c.bf16 %v7053_v40, %v7049_v3  ;;  %v5632_v13 = vpop.f32.mrb[29].mxu1  ;;  %v5638_v45 = vpop.f32.mrb[41].mxu0 }
 0x7b0   : > { %v2236_v8 = vpop.f32.mrb[30].mxu1  ;;  %v2282_v6 = vpop.f32.mrb[42].mxu0 }
 0x7b1   : > { %v5633_v35 = vpop.f32.mrb[31].mxu1  ;;  %v5639_v9 = vpop.f32.mrb[43].mxu0 }
 0x7b6   : > { %v7059_v37 = vpop.f32.mrb[32].mxu1  ;;  %v7061_v41 = vpop.f32.mrb[44].mxu0 }
 0x7b7   : > { %v2425_v42 = vpack.c.bf16 %v7059_v37, %v7055_v26  ;;  %v5644_v43 = vpop.f32.mrb[33].mxu1  ;;  %v5650_v7 = vpop.f32.mrb[45].mxu0  ;;  %v6114_v37 = vld [vmem:[#allocation2 + $0x8] sm:$0xff] }
 0x7b8   : > { %v2328_v51 = vpop.f32.mrb[34].mxu1  ;;  %v2374_v59 = vpop.f32.mrb[46].mxu0 }
 0x7b9   : > { %v5645_v25 = vpop.f32.mrb[35].mxu1  ;;  %v5651_v52 = vpop.f32.mrb[47].mxu0 }
 0x7be   : > { %v7065_v16 = vpop.f32.mrb[36].mxu1  ;;  %v5664_v38 = vpop.f32.mrb[48].mxu0 }
 0x7bf   : > { %v2426_v48 = vpack.c.bf16 %v7065_v16, %v7061_v41  ;;  %v5656_v50 = vpop.f32.mrb[37].mxu1  ;;  %v2488_v23 = vpop.f32.mrb[49].mxu0  ;;  %v2497_v39 = vadd.f32 %v5664_v38, %v7083_v0 }
 0x7c0   : > { %v2420_v34 = vpop.f32.mrb[38].mxu1  ;;  %v7069_v27 = vpop.f32.mrb[50].mxu0  ;;  %v2489_v55 = vadd.f32 %v7083_v0, %v2488_v23 }
 0x7c1   : > { %v5657_v53 = vpop.f32.mrb[39].mxu1  ;;  %v2491_v32 = vpop.f32.mrb[51].mxu0  ;;  %v2701_v9 = vpack.c.bf16 %v2497_v39, %v2497_v39 }
 0x7c2   : > { %v2699_v59 = vpack.c.bf16 %v2489_v55, %v2489_v55  ;;  %v2492_v34 = vadd.f32 %v7083_v0, %v2491_v32 }
 0x7c6   : > { %v7074_v33 = vpop.f32.mrb[52].mxu0  ;;  %v5676_v24 = vpop.f32.mrb[40].mxu1 }
 0x7c7   : > { %v2587_v49 = vadd.f32 %v5676_v24, %v7072_v28  ;;  %v2504_v56 = vpop.f32.mrb[53].mxu0  ;;  %v2578_v57 = vpop.f32.mrb[41].mxu1 }
 0x7c8   : > { %v2579_v31 = vadd.f32 %v7072_v28, %v2578_v57  ;;  %v7078_v54 = vpop.f32.mrb[54].mxu0  ;;  %v5677_v20 = vpop.f32.mrb[42].mxu1  ;;  %v2505_v53 = vadd.f32 %v7083_v0, %v2504_v56 }
 0x7c9   : > { %v2709_v29 = vpack.c.bf16 %v2587_v49, %v2587_v49  ;;  %v7080_v62 = vpop.f32.mrb[55].mxu0  ;;  %v2581_v61 = vpop.f32.mrb[43].mxu1  ;;  %v2590_v52 = vadd.f32 %v5677_v20, %v7072_v28 }
 0x7ca   : > { %v2707_v4 = vpack.c.bf16 %v2579_v31, %v2579_v31  ;;  %v2582_v15 = vadd.f32 %v7072_v28, %v2581_v61 }
 0x7cb   : > { %v2819_v12 = vsel %vm1588_vm7, %v2709_v29, 0  ;;  %v2710_v31 = vpack.c.bf16 %v2590_v52, %v2590_v52 }
 0x7cc   : > { %v2727_v5 = vsel %vm1588_vm7, %v2707_v4, 0  ;;  %5707 = vmatpush3.bf16.xpose.msra.mxu0 %v2819_v12  ;;  %v2708_v45 = vpack.c.bf16 %v2582_v15, %v2582_v15  ;;  %v2700_v4 = vpack.c.bf16 %v2492_v34, %v2492_v34  ;;  %v2703_v12 = vpack.c.bf16 %v2505_v53, %v2505_v53 }
 0x7cd   : > { %5695 = vmatpush3.bf16.xpose.msra.mxu1 %v2727_v5  ;;  %5718 = vmatprep.subr.bf16.mxu0 %v6210_v36  ;;  %v2865_v15 = vsel %vm1588_vm7, %v2710_v31, 0 }
 0x7ce   : > { %v5680_v19 = vpop.f32.mrb[44].mxu1  ;;  %v5688_v22 = vpop.f32.mrb[56].mxu0  ;;  %5700 = vmatprep.subr.bf16.mxu1 %v6210_v36  ;;  %v2773_v38 = vsel %vm1588_vm7, %v2708_v45, 0 }
 0x7cf   : > { %v7096_v18 = vadd.f32 %v5688_v22, %v7089_v10  ;;  %v2594_v60 = vpop.f32.mrb[45].mxu1  ;;  %v2668_v13 = vpop.f32.mrb[57].mxu0  ;;  %v2603_v50 = vadd.f32 %v5680_v19, %v7072_v28  ;;  %v2500_v22 = vadd.f32 %v7069_v27, %v7083_v0 }
 0x7d0   : > { %v2595_v8 = vadd.f32 %v7072_v28, %v2594_v60  ;;  %v5681_v6 = vpop.f32.mrb[46].mxu1  ;;  %v5689_v35 = vpop.f32.mrb[58].mxu0  ;;  %v2669_v55 = vadd.f32 %v7089_v10, %v2668_v13  ;;  %v2513_v60 = vadd.f32 %v7074_v33, %v7083_v0 }
 0x7d1   : > { %v7100_v43 = vadd.f32 %v5689_v35, %v7089_v10  ;;  %v2597_v7 = vpop.f32.mrb[47].mxu1  ;;  %v2671_v51 = vpop.f32.mrb[59].mxu0  ;;  %v2713_v20 = vpack.c.bf16 %v2603_v50, %v2603_v50  ;;  %v2606_v27 = vadd.f32 %v5681_v6, %v7072_v28 }
 0x7d2   : > { %v2711_v25 = vpack.c.bf16 %v2595_v8, %v2595_v8  ;;  %v2598_v19 = vadd.f32 %v7072_v28, %v2597_v7  ;;  %v2715_v13 = vpack.c.bf16 %v2669_v55, %v2669_v55  ;;  %v2702_v8 = vpack.c.bf16 %v2500_v22, %v2500_v22 }
 0x7d3   : > { %5709 = vmatmul.mubr.msk.bf16.vlgmr.msra.gmra.mrb[64].mxu0 %vm1588_vm7, %v2701_v9  ;;  %v3003_v39 = vsel %vm1588_vm7, %v2713_v20, 0  ;;  %v2705_v35 = vpack.c.bf16 %v2513_v60, %v2513_v60  ;;  %v2508_v7 = vadd.f32 %v7083_v0, %v7080_v62  ;;  %v2714_v28 = vpack.c.bf16 %v2606_v27, %v2606_v27 }
 0x7d4   : > { %v2911_v23 = vsel %vm1588_vm7, %v2711_v25, 0  ;;  %5697 = vmatmul.mubr.msk.bf16.vlgmr.msra.gmra.mrb[48].mxu1 %vm1588_vm7, %v2699_v59  ;;  %5720 = vmatprep.mubr.msk.bf16.mxu0 %vm6211_vm6, %v6210_v36  ;;  %v2712_v45 = vpack.c.bf16 %v2598_v19, %v2598_v19  ;;  %v3191_v9 = vsel %vm2057_vm8, %v2715_v13, 0  ;;  %v2672_v25 = vadd.f32 %v7089_v10, %v2671_v51 }
 0x7d5   : > { %5701 = vmatpush3.bf16.xpose.msra.mxu1 %v2773_v38  ;;  %5719 = vmatpush3.bf16.xpose.msra.mxu0 %v2911_v23  ;;  %v2704_v6 = vpack.c.bf16 %v2508_v7, %v2508_v7  ;;  %v3049_v59 = vsel %vm1588_vm7, %v2714_v28, 0  ;;  %v2516_v62 = vadd.f32 %v7078_v54, %v7083_v0 }
 0x7d6   : > { %v5692_v24 = vpop.f32.mrb[60].mxu0  ;;  %5702 = vmatprep.mubr.msk.bf16.mxu1 %vm6211_vm6, %v6210_v36  ;;  %5712 = vmatprep.subr.bf16.mxu1 %v6210_v36  ;;  %v2957_v33 = vsel %vm1588_vm7, %v2712_v45, 0  ;;  %v2716_v52 = vpack.c.bf16 %v2672_v25, %v2672_v25 }
 0x7d7   : > { %v7116_v49 = vadd.f32 %v5692_v24, %v7089_v10  ;;  %v2684_v57 = vpop.f32.mrb[61].mxu0  ;;  %5730 = vmatprep.subr.bf16.mxu0 %v6210_v36  ;;  %v2706_v38 = vpack.c.bf16 %v2516_v62, %v2516_v62 }
 0x7d8   : > { %v7120_v29 = vadd.f32 %v7089_v10, %v2684_v57  ;;  %v5693_v32 = vpop.f32.mrb[62].mxu0  ;;  %v3237_v50 = vsel %vm2057_vm8, %v2716_v52, 0 }
 0x7d9   : > { %v7123_v56 = vadd.f32 %v5693_v32, %v7089_v10  ;;  %v2687_v61 = vpop.f32.mrb[63].mxu0 }
 0x7da   : > { %v7126_v5 = vadd.f32 %v7089_v10, %v2687_v61 }
 0x7dc   : > { %5703 = vmatmul.mubr.msk.bf16.vlgmr.msra.gmra.mrb[52].mxu1 %vm1588_vm7, %v2700_v4  ;;  %5721 = vmatmul.mubr.msk.bf16.vlgmr.msra.gmra.mrb[68].mxu0 %vm1588_vm7, %v2703_v12 }
 0x7dd   : > { %5713 = vmatpush3.bf16.xpose.msra.mxu1 %v2865_v15  ;;  %5731 = vmatpush3.bf16.xpose.msra.mxu0 %v3003_v39 }
 0x7de   : > { %5714 = vmatprep.mubr.msk.bf16.mxu1 %vm6211_vm6, %v6210_v36  ;;  %5732 = vmatprep.mubr.msk.bf16.mxu0 %vm6211_vm6, %v6210_v36 }
 0x7df   : > { %5724 = vmatprep.subr.bf16.mxu1 %v6210_v36  ;;  %5742 = vmatprep.subr.bf16.mxu0 %v6210_v36 }
 0x7e4   : > { %5715 = vmatmul.mubr.msk.bf16.vlgmr.msra.gmra.mrb[56].mxu1 %vm1588_vm7, %v2702_v8  ;;  %5733 = vmatmul.mubr.msk.bf16.vlgmr.msra.gmra.mrb[72].mxu0 %vm1588_vm7, %v2705_v35 }
 0x7e5   : > { %5725 = vmatpush3.bf16.xpose.msra.mxu1 %v2957_v33  ;;  %5743 = vmatpush3.bf16.msra.mxu0 %v3191_v9 }
 0x7e6   : > { %5726 = vmatprep.mubr.msk.bf16.mxu1 %vm6211_vm6, %v6210_v36  ;;  %5736 = vmatprep.subr.bf16.mxu1 %v6210_v36 }
 0x7e7   : > { %5744 = vmatprep.mubr.msk.bf16.mxu0 %vm6211_vm6, %v6210_v36  ;;  %5754 = vmatprep.subr.bf16.mxu0 %v6210_v36 }
 0x7ec   : > { %5727 = vmatmul.mubr.msk.bf16.vlgmr.msra.gmra.mrb[60].mxu1 %vm1588_vm7, %v2704_v6 }
 0x7ed   : > { %5737 = vmatpush3.bf16.xpose.msra.mxu1 %v3049_v59  ;;  %5738 = vmatprep.mubr.msk.bf16.mxu1 %vm6211_vm6, %v6210_v36 }
 0x7ee   : > { %5748 = vmatprep.subr.bf16.mxu1 %v6210_v36 }
 0x7f4   : > { %5739 = vmatmul.mubr.msk.bf16.vlgmr.msra.gmra.mrb[64].mxu1 %vm1588_vm7, %v2706_v38 }
 0x7f5   : > { %5749 = vmatpush3.bf16.msra.mxu1 %v3237_v50  ;;  %5750 = vmatprep.mubr.msk.bf16.mxu1 %vm6211_vm6, %v6210_v36 }
 0x7f6   : > { %5760 = vmatprep.subr.bf16.mxu1 %v6210_v36 }
 0x8a6   : > { %v2855_v10 = vpop.f32.mrb[64].mxu0 }
 0x8a7   : > { %v2763_v51 = vpop.f32.mrb[48].mxu1  ;;  %v5710_v23 = vpop.f32.mrb[65].mxu0  ;;  %v2856_v57 = vadd.f32 %v2855_v10, %v6883_v1 }
 0x8a8   : > { %v2764_v34 = vadd.f32 %v2763_v51, %v6879_v63  ;;  %v5698_v54 = vpop.f32.mrb[49].mxu1  ;;  %v2858_v0 = vpop.f32.mrb[66].mxu0 }
 0x8a9   : > { %v2766_v53 = vpop.f32.mrb[50].mxu1  ;;  %v5711_v24 = vpop.f32.mrb[67].mxu0  ;;  %v3097_v32 = vsel %vm1957_vm10, %v2856_v57, -inf }
 0x8aa   : > { %v5699_v31 = vpop.f32.mrb[51].mxu1  ;;  %v3091_v20 = vsel %vm1957_vm10, %v2764_v34, -inf }
 0x8ab   : > { %3092 = vmax.xlane.f32.xlu0 %v3091_v20 }
 0x8af   : > { %v2947_v61 = vpop.f32.mrb[68].mxu0  ;;  %3098 = vmax.xlane.f32.xlu0 %v3097_v32  ;;  %v2809_v4 = vpop.f32.mrb[52].mxu1 }
 0x8b0   : > { %v2948_v12 = vadd.f32 %v2947_v61, %v6897_v2  ;;  %v2810_v15 = vadd.f32 %v2809_v4, %v6901_v21  ;;  %v5704_v63 = vpop.f32.mrb[53].mxu1  ;;  %v5722_v39 = vpop.f32.mrb[69].mxu0 }
 0x8b1   : > { %v2812_v55 = vpop.f32.mrb[54].mxu1  ;;  %v2950_v19 = vpop.f32.mrb[70].mxu0 }
 0x8b2   : > { %v5705_v22 = vpop.f32.mrb[55].mxu1  ;;  %v5723_v60 = vpop.f32.mrb[71].mxu0  ;;  %v3103_v1 = vsel %vm1957_vm10, %v2948_v12, -inf  ;;  %v3094_v13 = vsel %vm1957_vm10, %v2810_v15, -inf }
 0x8b3   : > { %3104 = vmax.xlane.f32.xlu0 %v3103_v1  ;;  %3095 = vmax.xlane.f32.xlu1 %v3094_v13 }
 0x8b7   : > { %v2901_v45 = vpop.f32.mrb[56].mxu1  ;;  %v3039_v8 = vpop.f32.mrb[72].mxu0 }
 0x8b8   : > { %v2902_v35 = vadd.f32 %v2901_v45, %v6920_v47  ;;  %v3040_v2 = vadd.f32 %v3039_v8, %v6916_v44  ;;  %v5716_v9 = vpop.f32.mrb[57].mxu1  ;;  %v5734_v21 = vpop.f32.mrb[73].mxu0 }
 0x8b9   : > { %v2904_v27 = vpop.f32.mrb[58].mxu1  ;;  %v3042_v33 = vpop.f32.mrb[74].mxu0 }
 0x8ba   : > { %v5717_v7 = vpop.f32.mrb[59].mxu1  ;;  %v5735_v28 = vpop.f32.mrb[75].mxu0  ;;  %v3109_v6 = vsel %vm1957_vm10, %v3040_v2, -inf  ;;  %v3100_v59 = vsel %vm1957_vm10, %v2902_v35, -inf }
 0x8bb   : > { %3110 = vmax.xlane.f32.xlu0 %v3109_v6  ;;  %3101 = vmax.xlane.f32.xlu1 %v3100_v59 }
 0x8bf   : > { %v2993_v25 = vpop.f32.mrb[60].mxu1 }
 0x8c0   : > { %v2994_v62 = vadd.f32 %v2993_v25, %v6929_v58  ;;  %v5728_v52 = vpop.f32.mrb[61].mxu1 }
 0x8c1   : > { %v2996_v38 = vpop.f32.mrb[62].mxu1 }
 0x8c2   : > { %v5729_v47 = vpop.f32.mrb[63].mxu1  ;;  %v3106_v44 = vsel %vm1957_vm10, %v2994_v62, -inf }
 0x8c3   : > { %3107 = vmax.xlane.f32.xlu1 %v3106_v44 }
 0x8c7   : > { %v3085_v50 = vpop.f32.mrb[64].mxu1 }
 0x8c8   : > { %v3086_v10 = vadd.f32 %v3085_v50, %v6936_v11  ;;  %v5740_v51 = vpop.f32.mrb[65].mxu1 }
 0x8c9   : > { %v3088_v23 = vpop.f32.mrb[66].mxu1 }
 0x8ca   : > { %v5741_v54 = vpop.f32.mrb[67].mxu1  ;;  %v3112_v0 = vsel %vm1957_vm10, %v3086_v10, -inf }
 0x8cb   : > { %3113 = vmax.xlane.f32.xlu1 %v3112_v0 }
 0x938   : > { %v3093_v53 = vpop.xlane.xlu0 %3092 }
 0x939   : > { %v3115_v24 = vsub.f32 %v2764_v34, %v3093_v53  ;;  %v2717_v53 = vpack.c.bf16 %v7096_v18, %v7096_v18  ;;  %v2719_v18 = vpack.c.bf16 %v7120_v29, %v7120_v29 }
 0x93b   : > { %v3123_v31 = vmul.f32 1.442695, %v3115_v24 }
 0x93c   : > { %v3099_v20 = vpop.xlane.xlu0 %3098 }
 0x93d   : > { %6047 = vpow2.f32 %v3123_v31  ;;  %v3117_v58 = vsub.f32 %v2856_v57, %v3099_v20 }
 0x93f   : > { %v3127_v32 = vmul.f32 1.442695, %v3117_v58  ;;  %v3283_v58 = vsel %vm2057_vm8, %v2717_v53, 0 }
 0x940   : > { %v3105_v61 = vpop.xlane.xlu0 %3104  ;;  %v3096_v4 = vpop.xlane.xlu1 %3095 }
 0x941   : > { %6049 = vpow2.f32 %v3127_v32  ;;  %v3119_v63 = vsub.f32 %v2948_v12, %v3105_v61  ;;  %v3116_v39 = vsub.f32 %v2810_v15, %v3096_v4 }
 0x943   : > { %v3131_v55 = vmul.f32 1.442695, %v3119_v63  ;;  %v3125_v11 = vmul.f32 1.442695, %v3116_v39  ;;  %v2718_v39 = vpack.c.bf16 %v7100_v43, %v7100_v43 }
 0x945   : > { %6051 = vpow2.f32 %v3131_v55 }
 0x946   : > { %6053 = vpow2.f32 %v3125_v11 }
 0x947   : > { %v6048_v19 = vpop.eup %6047 }
 0x948   : > { %v3111_v22 = vpop.xlane.xlu0 %3110  ;;  %v3102_v60 = vpop.xlane.xlu1 %3101  ;;  %v3139_v1 = vsel %vm1957_vm10, %v6048_v19, 0.0 }
 0x949   : > { %v3121_v34 = vsub.f32 %v3040_v2, %v3111_v22  ;;  %v3118_v13 = vsub.f32 %v2902_v35, %v3102_v60  ;;  %3140 = vadd.xlane.f32.xlu0 %v3139_v1  ;;  %v3375_v60 = vsel %vm2057_vm8, %v2719_v18, 0 }
 0x94b   : > { %v6050_v45 = vpop.eup %6049  ;;  %v3135_v57 = vmul.f32 1.442695, %v3121_v34  ;;  %v3129_v8 = vmul.f32 1.442695, %v3118_v13  ;;  %v3329_v34 = vsel %vm2057_vm8, %v2718_v39, 0  ;;  %v2721_v13 = vpack.c.bf16 %v7116_v49, %v7116_v49 }
 0x94c   : > { %v3145_v9 = vsel %vm1957_vm10, %v6050_v45, 0.0 }
 0x94d   : > { %6055 = vpow2.f32 %v3135_v57  ;;  %3146 = vadd.xlane.f32.xlu0 %v3145_v9 }
 0x94e   : > { %6057 = vpow2.f32 %v3129_v8 }
 0x94f   : > { %v7188_v12 = vpop.eup %6051 }
 0x950   : > { %v6054_v15 = vpop.eup %6053  ;;  %v3108_v21 = vpop.xlane.xlu1 %3107  ;;  %v3151_v27 = vsel %vm1957_vm10, %v7188_v12, 0.0 }
 0x951   : > { %v3120_v33 = vsub.f32 %v2994_v62, %v3108_v21  ;;  %3152 = vadd.xlane.f32.xlu0 %v3151_v27  ;;  %v3142_v35 = vsel %vm1957_vm10, %v6054_v15, 0.0 }
 0x952   : > { %3143 = vadd.xlane.f32.xlu1 %v3142_v35  ;;  %v2722_v35 = vpack.c.bf16 %v7123_v56, %v7123_v56  ;;  %v5988_v56 = vld [vmem:[%s6347_s4] sm:$0xff]  }
 0x953   : > { %v3133_v2 = vmul.f32 1.442695, %v3120_v33 }
 0x955   : > { %6059 = vpow2.f32 %v3133_v2 }
 0x957   : > { %v7193_v7 = vpop.eup %6055 }
 0x958   : > { %v6058_v28 = vpop.eup %6057  ;;  %v3114_v6 = vpop.xlane.xlu1 %3113  ;;  %v3157_v59 = vsel %vm1957_vm10, %v7193_v7, 0.0 }
 0x959   : > { %v3122_v25 = vsub.f32 %v3086_v10, %v3114_v6  ;;  %3158 = vadd.xlane.f32.xlu0 %v3157_v59  ;;  %v3148_v52 = vsel %vm1957_vm10, %v6058_v28, 0.0 }
 0x95a   : > { %3149 = vadd.xlane.f32.xlu1 %v3148_v52  ;;  %v5987_v52 = vld [vmem:[%s6347_s4 + $0x8] sm:$0xff]  }
 0x95b   : > { %v3137_v38 = vmul.f32 1.442695, %v3122_v25 }
 0x95d   : > { %6061 = vpow2.f32 %v3137_v38 }
 0x95f   : > { %v7198_v62 = vpop.eup %6059 }
 0x960   : > { %v3154_v47 = vsel %vm1957_vm10, %v7198_v62, 0.0 }
 0x961   : > { %3155 = vadd.xlane.f32.xlu1 %v3154_v47 }
 0x967   : > { %v7202_v44 = vpop.eup %6061 }
 0x968   : > { %v3160_v50 = vsel %vm1957_vm10, %v7202_v44, 0.0 }
 0x969   : > { %3161 = vadd.xlane.f32.xlu1 %v3160_v50 }
 0x9d6   : > { %v3141_v51 = vpop.xlane.xlu0 %3140 }
 0x9d7   : > { %6063 = vrcp.f32 %v3141_v51 }
 0x9da   : > { %v3147_v10 = vpop.xlane.xlu0 %3146 }
 0x9db   : > { %6065 = vrcp.f32 %v3147_v10 }
 0x9de   : > { %v3153_v54 = vpop.xlane.xlu0 %3152 }
 0x9df   : > { %v3144_v23 = vpop.xlane.xlu1 %3143 }
 0x9e0   : > { %6067 = vrcp.f32 %v3144_v23 }
 0x9e1   : > { %v6064_v0 = vpop.eup %6063  ;;  %6069 = vrcp.f32 %v3153_v54 }
 0x9e2   : > { %v3171_v24 = vmul.f32 %v6064_v0, %v6048_v19 }
 0x9e4   : > { %v3179_v31 = vpack.c.bf16 %v3171_v24, %v3171_v24 }
 0x9e5   : > { %v6066_v20 = vpop.eup %6065 }
 0x9e6   : > { %5745 = vmatmul.mubr.msk.bf16.vlgmr.msra.gmra.mrb[76].mxu0 %vm1957_vm10, %v3179_v31  ;;  %v3173_v61 = vmul.f32 %v6066_v20, %v6050_v45  ;;  %v3159_v4 = vpop.xlane.xlu0 %3158  ;;  %v2720_v45 = vpack.c.bf16 %v7126_v5, %v7126_v5 }
 0x9e7   : > { %5755 = vmatpush3.bf16.msra.mxu0 %v3283_v58  ;;  %v3150_v32 = vpop.xlane.xlu1 %3149  ;;  %5756 = vmatprep.mubr.msk.bf16.mxu0 %vm6211_vm6, %v6210_v36 }
 0x9e8   : > { %6071 = vrcp.f32 %v3150_v32  ;;  %5766 = vmatprep.subr.bf16.mxu0 %v6210_v36  ;;  %v3181_v11 = vpack.c.bf16 %v3173_v61, %v3173_v61  ;;  %v3421_v27 = vsel %vm2057_vm8, %v2720_v45, 0 }
 0x9e9   : > { %6073 = vrcp.f32 %v3159_v4 }
 0x9ea   : > { %v6068_v63 = vpop.eup %6067 }
 0x9eb   : > { %v3172_v55 = vmul.f32 %v6068_v63, %v6054_v15  ;;  %v6070_v19 = vpop.eup %6069  ;;  %v3467_v15 = vsel %vm2057_vm8, %v2721_v13, 0 }
 0x9ec   : > { %v3175_v29 = vmul.f32 %v6070_v19, %v7188_v12 }
 0x9ed   : > { %v3180_v22 = vpack.c.bf16 %v3172_v55, %v3172_v55 }
 0x9ee   : > { %5757 = vmatmul.mubr.msk.bf16.vlgmr.msra.gmra.mrb[80].mxu0 %vm1957_vm10, %v3181_v11  ;;  %v3156_v1 = vpop.xlane.xlu1 %3155  ;;  %v3183_v8 = vpack.c.bf16 %v3175_v29, %v3175_v29 }
 0x9ef   : > { %5751 = vmatmul.mubr.msk.bf16.vlgmr.msra.gmra.mrb[68].mxu1 %vm1957_vm10, %v3180_v22  ;;  %5767 = vmatpush3.bf16.msra.mxu0 %v3375_v60  ;;  %6075 = vrcp.f32 %v3156_v1 }
 0x9f0   : > { %5761 = vmatpush3.bf16.msra.mxu1 %v3329_v34  ;;  %5762 = vmatprep.mubr.msk.bf16.mxu1 %vm6211_vm6, %v6210_v36 }
 0x9f1   : > { %5768 = vmatprep.mubr.msk.bf16.mxu0 %vm6211_vm6, %v6210_v36  ;;  %5772 = vmatprep.subr.bf16.mxu1 %v6210_v36 }
 0x9f2   : > { %v6072_v43 = vpop.eup %6071  ;;  %5778 = vmatprep.subr.bf16.mxu0 %v6210_v36 }
 0x9f3   : > { %v3174_v57 = vmul.f32 %v6072_v43, %v6058_v28  ;;  %v6074_v9 = vpop.eup %6073 }
 0x9f4   : > { %v3177_v49 = vmul.f32 %v6074_v9, %v7193_v7  ;;  %v3513_v7 = vsel %vm2057_vm8, %v2722_v35, 0 }
 0x9f5   : > { %v3182_v12 = vpack.c.bf16 %v3174_v57, %v3174_v57 }
 0x9f6   : > { %5769 = vmatmul.mubr.msk.bf16.vlgmr.msra.gmra.mrb[84].mxu0 %vm1957_vm10, %v3183_v8  ;;  %v3162_v21 = vpop.xlane.xlu1 %3161  ;;  %v3185_v28 = vpack.c.bf16 %v3177_v49, %v3177_v49  ;;  %v6113_v49 = vld [vmem:[#allocation2 + $0x18] sm:$0xff] }
 0x9f7   : > { %5763 = vmatmul.mubr.msk.bf16.vlgmr.msra.gmra.mrb[72].mxu1 %vm1957_vm10, %v3182_v12  ;;  %5779 = vmatpush3.bf16.msra.mxu0 %v3467_v15  ;;  %6077 = vrcp.f32 %v3162_v21  ;;  %v5307_v15 = vld [vmem:[%s6375_s25] ss:$0 sm:$0xff] }
 0x9f8   : > { %5773 = vmatpush3.bf16.msra.mxu1 %v3421_v27  ;;  %5774 = vmatprep.mubr.msk.bf16.mxu1 %vm6211_vm6, %v6210_v36  ;;  %v6112_v21 = vld [vmem:[#allocation2] sm:$0xff] }
 0x9f9   : > { %v6076_v5 = vpop.eup %6075  ;;  %5780 = vmatprep.mubr.msk.bf16.mxu0 %vm6211_vm6, %v6210_v36  ;;  %5784 = vmatprep.subr.bf16.mxu1 %v6210_v36 }
 0x9fa   : > { %v3176_v33 = vmul.f32 %v6076_v5, %v7198_v62  ;;  %5790 = vmatprep.subr.bf16.mxu0 %v5987_v52 }
 0x9fc   : > { %v3184_v2 = vpack.c.bf16 %v3176_v33, %v3176_v33 }
 0x9fe   : > { %5781 = vmatmul.mubr.msk.bf16.vlgmr.msra.gmra.mrb[88].mxu0 %vm1957_vm10, %v3185_v28  ;;  %v6115_v28 = vld [vmem:[#allocation2 + $0x30] sm:$0xff] }
 0x9ff   : > { %5775 = vmatmul.mubr.msk.bf16.vlgmr.msra.gmra.mrb[76].mxu1 %vm1957_vm10, %v3184_v2  ;;  %5791 = vmatpush3.bf16.msra.mxu0 %v5987_v52 }
 0xa00   : > { %5785 = vmatpush3.bf16.msra.mxu1 %v3513_v7  ;;  %5786 = vmatprep.mubr.msk.bf16.mxu1 %vm6211_vm6, %v6210_v36 }
 0xa01   : > { %v6078_v6 = vpop.eup %6077  ;;  %5800 = vmatprep.subr.bf16.mxu0 %v5988_v56 }
 0xa02   : > { %v3178_v59 = vmul.f32 %v6078_v6, %v7202_v44  ;;  %v6116_v6 = vld [vmem:[#allocation2 + $0x20] sm:$0xff] }
 0xa04   : > { %v3186_v25 = vpack.c.bf16 %v3178_v59, %v3178_v59 }
 0xa07   : > { %5787 = vmatmul.mubr.msk.bf16.vlgmr.msra.gmra.mrb[80].mxu1 %vm1957_vm10, %v3186_v25 }
 0xab9   : > { %v3227_v38 = vpop.f32.mrb[76].mxu0 }
 0xaba   : > { %v5746_v62 = vpop.f32.mrb[77].mxu0 }
 0xabb   : > { %v3230_v47 = vpop.f32.mrb[78].mxu0  ;;  %v6117_v62 = vld [vmem:[#allocation2 + $0x38] sm:$0xff] }
 0xabc   : > { %v5747_v50 = vpop.f32.mrb[79].mxu0 }
 0xabd   : > { %v6118_v50 = vld [vmem:[#allocation2 + $0x28] sm:$0xff] }
 0xac1   : > { %v3319_v51 = vpop.f32.mrb[80].mxu0 }
 0xac2   : > { %v3273_v10 = vpop.f32.mrb[68].mxu1  ;;  %v5758_v23 = vpop.f32.mrb[81].mxu0 }
 0xac3   : > { %v3555_v54 = vpack.c.bf16 %v3273_v10, %v3227_v38  ;;  %v5752_v36 = vpop.f32.mrb[69].mxu1  ;;  %v3322_v0 = vpop.f32.mrb[82].mxu0 }
 0xac4   : > { %v3276_v53 = vpop.f32.mrb[70].mxu1  ;;  %v5759_v44 = vpop.f32.mrb[83].mxu0 }
 0xac5   : > { %v5753_v24 = vpop.f32.mrb[71].mxu1  ;;  %5792 = vmatprep.mubr.msk.bf16.mxu0 %vm1588_vm7, %v3555_v54 }
 0xac9   : > { %v3411_v31 = vpop.f32.mrb[84].mxu0 }
 0xaca   : > { %v3365_v20 = vpop.f32.mrb[72].mxu1  ;;  %v5770_v58 = vpop.f32.mrb[85].mxu0 }
 0xacb   : > { %v3556_v32 = vpack.c.bf16 %v3365_v20, %v3319_v51  ;;  %v5764_v61 = vpop.f32.mrb[73].mxu1  ;;  %v3414_v4 = vpop.f32.mrb[86].mxu0 }
 0xacc   : > { %v3368_v63 = vpop.f32.mrb[74].mxu1  ;;  %v5771_v18 = vpop.f32.mrb[87].mxu0 }
 0xacd   : > { %v5765_v39 = vpop.f32.mrb[75].mxu1  ;;  %5793 = vmatmul.mubr.msk.bf16.vlgmr.msra.gmra.mrb[92].mxu0 %vm1588_vm7, %v3556_v32 }
 0xace   : > { %5801 = vmatpush3.bf16.msra.mxu0 %v5988_v56 }
 0xad1   : > { %v3503_v55 = vpop.f32.mrb[88].mxu0 }
 0xad2   : > { %v3457_v11 = vpop.f32.mrb[76].mxu1  ;;  %v5782_v19 = vpop.f32.mrb[89].mxu0 }
 0xad3   : > { %v3557_v22 = vpack.c.bf16 %v3457_v11, %v3411_v31  ;;  %v5776_v60 = vpop.f32.mrb[77].mxu1  ;;  %v3506_v1 = vpop.f32.mrb[90].mxu0 }
 0xad4   : > { %v3460_v34 = vpop.f32.mrb[78].mxu1  ;;  %v5783_v29 = vpop.f32.mrb[91].mxu0 }
 0xad5   : > { %v5777_v43 = vpop.f32.mrb[79].mxu1  ;;  %5796 = vmatprep.mubr.msk.bf16.mxu0 %vm1588_vm7, %v3557_v22 }
 0xada   : > { %v3549_v13 = vpop.f32.mrb[80].mxu1 }
 0xadb   : > { %v3558_v45 = vpack.c.bf16 %v3549_v13, %v3503_v55  ;;  %v5788_v57 = vpop.f32.mrb[81].mxu1 }
 0xadc   : > { %v3552_v8 = vpop.f32.mrb[82].mxu1 }
 0xadd   : > { %v5789_v9 = vpop.f32.mrb[83].mxu1  ;;  %5797 = vmatmul.mubr.msk.bf16.gmra.mrb[96].mxu0 %vm1588_vm7, %v3558_v45 }
 0xade   : > { %5802 = vmatprep.mubr.msk.bf16.mxu0 %vm1588_vm7, %v2423_v30 }
 0xae5   : > { %5803 = vmatmul.mubr.msk.bf16.vlgmr.msra.gmra.mrb[92].mxu0 %vm1588_vm7, %v2424_v46 }
 0xae6   : > { %5806 = vmatprep.mubr.msk.bf16.mxu0 %vm1588_vm7, %v2425_v42 }
 0xaed   : > { %5807 = vmatmul.mubr.msk.bf16.gmra.mrb[96].mxu0 %vm1588_vm7, %v2426_v48 }
 0xbb8   : > { %v5804_v12 = vpop.f32.mrb[92].mxu0 }
 0xbb9   : > { %v3696_v17 = vpop.f32.mrb[93].mxu0  ;;  %v3729_v30 = vadd.f32 %v6111_v14, %v5804_v12 }
 0xbba   : > { %v3727_v27 = vadd.f32 %v6112_v21, %v3696_v17  ;;  %v5805_v3 = vpop.f32.mrb[94].mxu0 }
 0xbbb   : > { %v3699_v40 = vpop.f32.mrb[95].mxu0  ;;  %v3730_v26 = vadd.f32 %v6113_v49, %v5805_v3  ;;  %v7277_v5 = vadd.f32 %v5307_v15, %v3729_v30 }
 0xbbc   : > { %v7275_v46 = vadd.f32 %v5307_v15, %v3727_v27  ;;  %v3728_v42 = vadd.f32 %v6114_v37, %v3699_v40 }
 0xbbd   : > { %v7283_v48 = vadd.f32 %v5307_v15, %v3730_v26  ;;  %v3756_v52 = vsel %vm1150_vm5, %v7277_v5, 0.0 }
 0xbbe   : > { %v7279_v41 = vadd.f32 %v5307_v15, %v3728_v42  ;;  %v3750_v16 = vsel %vm1150_vm5, %v7275_v46, 0.0 }
 0xbbf   : > { %3751 = vadd.xlane.f32.xlu0 %v3750_v16  ;;  %v3759_v10 = vsel %vm1150_vm5, %v7283_v48, 0.0 }
 0xbc0   : > { %v5808_v33 = vpop.f32.mrb[96].mxu0  ;;  %v3753_v35 = vsel %vm1150_vm5, %v7279_v41, 0.0 }
 0xbc1   : > { %3754 = vadd.xlane.f32.xlu1 %v3753_v35  ;;  %v3712_v2 = vpop.f32.mrb[97].mxu0  ;;  %v3733_v7 = vadd.f32 %v6115_v28, %v5808_v33  ;;  %v5989_v28 = vld [vmem:[%s6352_s26] sm:$0xff]  }
 0xbc2   : > { %v3731_v59 = vadd.f32 %v6116_v6, %v3712_v2  ;;  %v5809_v25 = vpop.f32.mrb[98].mxu0  ;;  %5810 = vmatprep.subr.bf16.mxu1 %v5989_v28 }
 0xbc3   : > { %3757 = vadd.xlane.f32.xlu0 %v3756_v52  ;;  %v3715_v56 = vpop.f32.mrb[99].mxu0  ;;  %v3734_v47 = vadd.f32 %v6117_v62, %v5809_v25  ;;  %v7293_v23 = vadd.f32 %v5307_v15, %v3733_v7  ;;  %5811 = vmatpush3.bf16.msra.mxu1 %v5989_v28  ;;  %v5990_v7 = vld [vmem:[%s6352_s26 + $0x8] sm:$0xff]  }
 0xbc4   : > { %v7289_v38 = vadd.f32 %v5307_v15, %v3731_v59  ;;  %v3732_v51 = vadd.f32 %v6118_v50, %v3715_v56  ;;  %5812 = vmatprep.subr.bf16.mxu1 %v5990_v7 }
 0xbc5   : > { %3760 = vadd.xlane.f32.xlu1 %v3759_v10  ;;  %v7299_v0 = vadd.f32 %v5307_v15, %v3734_v47  ;;  %v3768_v44 = vsel %vm1150_vm5, %v7293_v23, 0.0 }
 0xbc6   : > { %v7295_v54 = vadd.f32 %v5307_v15, %v3732_v51  ;;  %v3762_v36 = vsel %vm1150_vm5, %v7289_v38, 0.0 }
 0xbc7   : > { %3763 = vadd.xlane.f32.xlu0 %v3762_v36  ;;  %v3771_v24 = vsel %vm1150_vm5, %v7299_v0, 0.0  ;;  %5813 = vmatpush3.bf16.msra.mxu1 %v5990_v7 }
 0xbc8   : > { %v3765_v53 = vsel %vm1150_vm5, %v7295_v54, 0.0 }
 0xbc9   : > { %3766 = vadd.xlane.f32.xlu1 %v3765_v53 }
 0xbcb   : > { %3769 = vadd.xlane.f32.xlu0 %v3768_v44 }
 0xbcd   : > { %3772 = vadd.xlane.f32.xlu1 %v3771_v24 }
 0xc4c   : > { %v3752_v31 = vpop.xlane.xlu0 %3751 }
 0xc4d   : > { %v3774_v20 = vmul.f32 0.03125, %v3752_v31 }
 0xc4e   : > { %v3755_v58 = vpop.xlane.xlu1 %3754 }
 0xc4f   : > { %v7308_v32 = vsub.f32 %v7275_v46, %v3774_v20  ;;  %v3775_v61 = vmul.f32 0.03125, %v3755_v58 }
 0xc50   : > { %v3758_v4 = vpop.xlane.xlu0 %3757 }
 0xc51   : > { %v7311_v63 = vsub.f32 %v7279_v41, %v3775_v61  ;;  %v3776_v18 = vmul.f32 0.03125, %v3758_v4  ;;  %v3790_v39 = vmul.f32 %v7308_v32, %v7308_v32 }
 0xc52   : > { %v3761_v55 = vpop.xlane.xlu1 %3760 }
 0xc53   : > { %v7316_v11 = vsub.f32 %v7277_v5, %v3776_v18  ;;  %v3777_v19 = vmul.f32 0.03125, %v3761_v55  ;;  %v3798_v22 = vsel %vm1150_vm5, %v3790_v39, 0.0  ;;  %v3791_v60 = vmul.f32 %v7311_v63, %v7311_v63 }
 0xc54   : > { %3799 = vadd.xlane.f32.xlu0 %v3798_v22  ;;  %v3764_v1 = vpop.xlane.xlu0 %3763 }
 0xc55   : > { %v7322_v34 = vsub.f32 %v7283_v48, %v3777_v19  ;;  %v3778_v29 = vmul.f32 0.03125, %v3764_v1  ;;  %v3801_v43 = vsel %vm1150_vm5, %v3791_v60, 0.0  ;;  %v3792_v13 = vmul.f32 %v7316_v11, %v7316_v11  ;;  %v5308_v19 = vld [vmem:[%s6370_s7 + $0x2] ss:$0 sm:$0xff] }
 0xc56   : > { %3802 = vadd.xlane.f32.xlu1 %v3801_v43  ;;  %v3767_v45 = vpop.xlane.xlu1 %3766 }
 0xc57   : > { %v7328_v57 = vsub.f32 %v7289_v38, %v3778_v29  ;;  %v3779_v8 = vmul.f32 0.03125, %v3767_v45  ;;  %v3804_v9 = vsel %vm1150_vm5, %v3792_v13, 0.0  ;;  %v3793_v12 = vmul.f32 %v7322_v34, %v7322_v34 }
 0xc58   : > { %3805 = vadd.xlane.f32.xlu0 %v3804_v9  ;;  %v3770_v15 = vpop.xlane.xlu0 %3769  ;;  %v5309_v9 = vld [vmem:[%s6370_s7 + $0x3] ss:$0 sm:$0xff] }
 0xc59   : > { %v7334_v17 = vsub.f32 %v7295_v54, %v3779_v8  ;;  %v3780_v14 = vmul.f32 0.03125, %v3770_v15  ;;  %v3807_v30 = vsel %vm1150_vm5, %v3793_v12, 0.0  ;;  %v3794_v21 = vmul.f32 %v7328_v57, %v7328_v57 }
 0xc5a   : > { %3808 = vadd.xlane.f32.xlu1 %v3807_v30  ;;  %v3773_v27 = vpop.xlane.xlu1 %3772 }
 0xc5b   : > { %v7340_v3 = vsub.f32 %v7293_v23, %v3780_v14  ;;  %v3781_v40 = vmul.f32 0.03125, %v3773_v27  ;;  %v3810_v49 = vsel %vm1150_vm5, %v3794_v21, 0.0  ;;  %v3795_v26 = vmul.f32 %v7334_v17, %v7334_v17 }
 0xc5c   : > { %3811 = vadd.xlane.f32.xlu0 %v3810_v49 }
 0xc5d   : > { %v7346_v37 = vsub.f32 %v7299_v0, %v3781_v40  ;;  %v3813_v42 = vsel %vm1150_vm5, %v3795_v26, 0.0  ;;  %v3796_v16 = vmul.f32 %v7340_v3, %v7340_v3 }
 0xc5e   : > { %3814 = vadd.xlane.f32.xlu1 %v3813_v42 }
 0xc5f   : > { %v3816_v33 = vsel %vm1150_vm5, %v3796_v16, 0.0  ;;  %v3797_v35 = vmul.f32 %v7346_v37, %v7346_v37 }
 0xc60   : > { %3817 = vadd.xlane.f32.xlu0 %v3816_v33 }
 0xc61   : > { %v3819_v2 = vsel %vm1150_vm5, %v3797_v35, 0.0 }
 0xc62   : > { %3820 = vadd.xlane.f32.xlu1 %v3819_v2 }
 0xce1   : > { %v3800_v6 = vpop.xlane.xlu0 %3799 }
 0xce2   : > { %v3822_v59 = vmul.f32 0.03125, %v3800_v6 }
 0xce3   : > { %v3803_v25 = vpop.xlane.xlu1 %3802 }
 0xce4   : > { %v3830_v52 = vadd.f32 1e-05, %v3822_v59  ;;  %v3823_v56 = vmul.f32 0.03125, %v3803_v25 }
 0xce5   : > { %v3806_v62 = vpop.xlane.xlu0 %3805 }
 0xce6   : > { %6079 = vrsqrt.f32 %v3830_v52  ;;  %v3831_v47 = vadd.f32 1e-05, %v3823_v56  ;;  %v3824_v50 = vmul.f32 0.03125, %v3806_v62 }
 0xce7   : > { %v3809_v51 = vpop.xlane.xlu1 %3808 }
 0xce8   : > { %6081 = vrsqrt.f32 %v3831_v47  ;;  %v3832_v10 = vadd.f32 1e-05, %v3824_v50  ;;  %v3825_v36 = vmul.f32 0.03125, %v3809_v51  ;;  %v5991_v50 = vld [vmem:[%s6363_s22] sm:$0xff]   ;;  %v5993_v51 = vld [vmem:[%s6363_s22 + $0x10] sm:$0xff]  }
 0xce9   : > { %v3812_v53 = vpop.xlane.xlu0 %3811  ;;  %5822 = vmatprep.subr.bf16.mxu1 %v5991_v50 }
 0xcea   : > { %6083 = vrsqrt.f32 %v3832_v10  ;;  %v3833_v44 = vadd.f32 1e-05, %v3825_v36  ;;  %v3826_v24 = vmul.f32 0.03125, %v3812_v53  ;;  %v5994_v10 = vld [vmem:[%s6363_s22 + $0x18] sm:$0xff]   ;;  %v5995_v36 = vld [vmem:[%s6363_s22 + $0x20] sm:$0xff]   ;;  %v5996_v53 = vld [vmem:[%s6363_s22 + $0x28] sm:$0xff]  }
 0xceb   : > { %v3815_v31 = vpop.xlane.xlu1 %3814 }
 0xcec   : > { %6085 = vrsqrt.f32 %v3833_v44  ;;  %v3834_v20 = vadd.f32 1e-05, %v3826_v24  ;;  %v3827_v58 = vmul.f32 0.03125, %v3815_v31  ;;  %v5997_v44 = vld [vmem:[%s6363_s22 + $0x30] sm:$0xff]   ;;  %v5998_v24 = vld [vmem:[%s6363_s22 + $0x38] sm:$0xff]  }
 0xced   : > { %v3818_v61 = vpop.xlane.xlu0 %3817  ;;  %v5310_v31 = vld [vmem:[%s639_s24] ss:$0 sm:$0xff] }
 0xcee   : > { %6087 = vrsqrt.f32 %v3834_v20  ;;  %v3835_v4 = vadd.f32 1e-05, %v3827_v58  ;;  %v3828_v18 = vmul.f32 0.03125, %v3818_v61 }
 0xcef   : > { %v3821_v39 = vpop.xlane.xlu1 %3820 }
 0xcf0   : > { %v6080_v55 = vpop.eup %6079  ;;  %6089 = vrsqrt.f32 %v3835_v4  ;;  %v3836_v22 = vadd.f32 1e-05, %v3828_v18  ;;  %v3829_v60 = vmul.f32 0.03125, %v3821_v39 }
 0xcf1   : > { %v3846_v1 = vmul.f32 %v6080_v55, %v7308_v32 }
 0xcf2   : > { %v6082_v29 = vpop.eup %6081  ;;  %6091 = vrsqrt.f32 %v3836_v22  ;;  %v3837_v43 = vadd.f32 1e-05, %v3829_v60 }
 0xcf3   : > { %v3847_v13 = vmul.f32 %v6082_v29, %v7311_v63  ;;  %v3858_v45 = vmul.f32 %v5308_v19, %v3846_v1 }
 0xcf4   : > { %v6084_v8 = vpop.eup %6083  ;;  %6093 = vrsqrt.f32 %v3837_v43 }
 0xcf5   : > { %v3848_v12 = vmul.f32 %v6084_v8, %v7316_v11  ;;  %v3859_v15 = vmul.f32 %v5308_v19, %v3847_v13  ;;  %v3870_v27 = vadd.f32 %v5309_v9, %v3858_v45 }
 0xcf6   : > { %v6086_v14 = vpop.eup %6085 }
 0xcf7   : > { %v3860_v30 = vmul.f32 %v5308_v19, %v3848_v12  ;;  %v3849_v21 = vmul.f32 %v6086_v14, %v7322_v34  ;;  %v3871_v40 = vadd.f32 %v5309_v9, %v3859_v15 }
 0xcf8   : > { %v6088_v49 = vpop.eup %6087 }
 0xcf9   : > { %v3861_v32 = vmul.f32 %v5308_v19, %v3849_v21  ;;  %v3850_v26 = vmul.f32 %v6088_v49, %v7328_v57  ;;  %v3878_v42 = vpack.c.bf16 %v3871_v40, %v3870_v27  ;;  %v3872_v33 = vadd.f32 %v5309_v9, %v3860_v30 }
 0xcfa   : > { %v6090_v16 = vpop.eup %6089 }
 0xcfb   : > { %v3851_v63 = vmul.f32 %v6090_v16, %v7334_v17  ;;  %5814 = vmatprep.mubr.msk.bf16.mxu1 %vm1150_vm5, %v3878_v42  ;;  %v3873_v35 = vadd.f32 %v5309_v9, %v3861_v32  ;;  %v3862_v11 = vmul.f32 %v5308_v19, %v3850_v26 }
 0xcfc   : > { %v6092_v2 = vpop.eup %6091 }
 0xcfd   : > { %v3852_v28 = vmul.f32 %v6092_v2, %v7340_v3  ;;  %v3879_v34 = vpack.c.bf16 %v3873_v35, %v3872_v33  ;;  %v3863_v7 = vmul.f32 %v5308_v19, %v3851_v63  ;;  %v3874_v57 = vadd.f32 %v5309_v9, %v3862_v11 }
 0xcfe   : > { %v6094_v6 = vpop.eup %6093 }
 0xcff   : > { %v3853_v59 = vmul.f32 %v6094_v6, %v7346_v37  ;;  %5815 = vmatmul.mubr.msk.bf16.vlgmr.msra.gmra.mrb[84].mxu1 %vm1150_vm5, %v3879_v34  ;;  %v3875_v17 = vadd.f32 %v5309_v9, %v3863_v7  ;;  %v3864_v25 = vmul.f32 %v5308_v19, %v3852_v28  ;;  %v5992_v37 = vld [vmem:[%s6363_s22 + $0x8] sm:$0xff]  }
 0xd00   : > { %5823 = vmatpush3.bf16.msra.mxu1 %v5991_v50 }
 0xd01   : > { %v3880_v52 = vpack.c.bf16 %v3875_v17, %v3874_v57  ;;  %v3865_v56 = vmul.f32 %v5308_v19, %v3853_v59  ;;  %v3876_v62 = vadd.f32 %v5309_v9, %v3864_v25  ;;  %5824 = vmatprep.subr.bf16.mxu1 %v5992_v37 }
 0xd03   : > { %5818 = vmatprep.mubr.msk.bf16.mxu1 %vm1150_vm5, %v3880_v52  ;;  %v3877_v3 = vadd.f32 %v5309_v9, %v3865_v56 }
 0xd04   : > { %5825 = vmatpush3.bf16.msra.mxu1 %v5992_v37 }
 0xd05   : > { %v3881_v47 = vpack.c.bf16 %v3877_v3, %v3876_v62  ;;  %5826 = vmatprep.subr.bf16.mxu1 %v5993_v51 }
 0xd07   : > { %5819 = vmatmul.mubr.msk.bf16.gmra.mrb[88].mxu1 %vm1150_vm5, %v3881_v47 }
 0xd08   : > { %5827 = vmatpush3.bf16.msra.mxu1 %v5993_v51 }
 0xd09   : > { %5828 = vmatprep.subr.bf16.mxu1 %v5994_v10 }
 0xd0c   : > { %5829 = vmatpush3.bf16.msra.mxu1 %v5994_v10 }
 0xd0d   : > { %5830 = vmatprep.subr.bf16.mxu1 %v5995_v36 }
 0xd10   : > { %5831 = vmatpush3.bf16.msra.mxu1 %v5995_v36 }
 0xd11   : > { %5832 = vmatprep.subr.bf16.mxu1 %v5996_v53 }
 0xd14   : > { %5833 = vmatpush3.bf16.msra.mxu1 %v5996_v53 }
 0xd15   : > { %5834 = vmatprep.subr.bf16.mxu1 %v5997_v44 }
 0xd18   : > { %5835 = vmatpush3.bf16.msra.mxu1 %v5997_v44 }
 0xd19   : > { %5836 = vmatprep.subr.bf16.mxu1 %v5998_v24 }
 0xd1c   : > { %5837 = vmatpush3.bf16.msra.mxu1 %v5998_v24 }
 0xdd2   : > { %v5816_v20 = vpop.f32.mrb[84].mxu1 }
 0xdd3   : > { %v7384_v58 = vadd.f32 %v5816_v20, %v5310_v31  ;;  %v3951_v61 = vpop.f32.mrb[85].mxu1 }
 0xdd4   : > { %v7386_v4 = vadd.f32 %v5310_v31, %v3951_v61  ;;  %v5817_v18 = vpop.f32.mrb[86].mxu1 }
 0xdd5   : > { %v3984_v39 = vmul.f32 %v7384_v58, %v7384_v58  ;;  %v7390_v55 = vadd.f32 %v5817_v18, %v5310_v31  ;;  %v3954_v19 = vpop.f32.mrb[87].mxu1 }
 0xdd6   : > { %v3982_v22 = vmul.f32 %v7386_v4, %v7386_v4  ;;  %v7394_v60 = vadd.f32 %v5310_v31, %v3954_v19 }
 0xdd7   : > { %v3992_v1 = vmul.f32 %v3984_v39, %v7384_v58  ;;  %v3985_v29 = vmul.f32 %v7390_v55, %v7390_v55 }
 0xdd8   : > { %v3990_v43 = vmul.f32 %v3982_v22, %v7386_v4  ;;  %v3983_v13 = vmul.f32 %v7394_v60, %v7394_v60 }
 0xdd9   : > { %v4000_v45 = vmul.f32 0.044715, %v3992_v1  ;;  %v3993_v8 = vmul.f32 %v3985_v29, %v7390_v55 }
 0xdda   : > { %v3998_v9 = vmul.f32 0.044715, %v3990_v43  ;;  %v3991_v12 = vmul.f32 %v3983_v13, %v7394_v60  ;;  %v5820_v15 = vpop.f32.mrb[88].mxu1 }
 0xddb   : > { %v4008_v14 = vadd.f32 %v4000_v45, %v7384_v58  ;;  %v4001_v30 = vmul.f32 0.044715, %v3993_v8  ;;  %v7405_v21 = vadd.f32 %v5820_v15, %v5310_v31  ;;  %v3967_v27 = vpop.f32.mrb[89].mxu1 }
 0xddc   : > { %v4006_v40 = vadd.f32 %v3998_v9, %v7386_v4  ;;  %v3999_v49 = vmul.f32 0.044715, %v3991_v12  ;;  %v7408_v32 = vadd.f32 %v5310_v31, %v3967_v27  ;;  %v5821_v26 = vpop.f32.mrb[90].mxu1 }
 0xddd   : > { %v4016_v42 = vmul.f32 0.7978846, %v4008_v14  ;;  %v4009_v16 = vadd.f32 %v4001_v30, %v7390_v55  ;;  %v3988_v63 = vmul.f32 %v7405_v21, %v7405_v21  ;;  %v7413_v33 = vadd.f32 %v5821_v26, %v5310_v31  ;;  %v3970_v35 = vpop.f32.mrb[91].mxu1 }
 0xdde   : > { %v4014_v11 = vmul.f32 0.7978846, %v4006_v40  ;;  %v4007_v2 = vadd.f32 %v3999_v49, %v7394_v60  ;;  %v3986_v28 = vmul.f32 %v7408_v32, %v7408_v32  ;;  %v7418_v34 = vadd.f32 %v5310_v31, %v3970_v35 }
 0xddf   : > { %6095 = vtanh.f32 %v4016_v42  ;;  %v4017_v7 = vmul.f32 0.7978846, %v4009_v16  ;;  %v3996_v6 = vmul.f32 %v3988_v63, %v7405_v21  ;;  %v3989_v59 = vmul.f32 %v7413_v33, %v7413_v33 }
 0xde0   : > { %6097 = vtanh.f32 %v4014_v11  ;;  %v4015_v57 = vmul.f32 0.7978846, %v4007_v2  ;;  %v3994_v17 = vmul.f32 %v3986_v28, %v7408_v32  ;;  %v3987_v25 = vmul.f32 %v7418_v34, %v7418_v34 }
 0xde1   : > { %6099 = vtanh.f32 %v4017_v7  ;;  %v4004_v52 = vmul.f32 0.044715, %v3996_v6  ;;  %v3997_v56 = vmul.f32 %v3989_v59, %v7413_v33 }
 0xde2   : > { %6101 = vtanh.f32 %v4015_v57  ;;  %v4002_v62 = vmul.f32 0.044715, %v3994_v17  ;;  %v3995_v3 = vmul.f32 %v3987_v25, %v7418_v34  ;;  %v5317_v17 = vld [vmem:[%s6375_s25 + $0x1] ss:$0 sm:$0xff] }
 0xde3   : > { %v4012_v47 = vadd.f32 %v4004_v52, %v7405_v21  ;;  %v4005_v50 = vmul.f32 0.044715, %v3997_v56 }
 0xde4   : > { %v4010_v37 = vadd.f32 %v4002_v62, %v7408_v32  ;;  %v4003_v51 = vmul.f32 0.044715, %v3995_v3 }
 0xde5   : > { %v4020_v10 = vmul.f32 0.7978846, %v4012_v47  ;;  %v4013_v36 = vadd.f32 %v4005_v50, %v7413_v33 }
 0xde6   : > { %v4018_v53 = vmul.f32 0.7978846, %v4010_v37  ;;  %v4011_v44 = vadd.f32 %v4003_v51, %v7418_v34 }
 0xde7   : > { %6103 = vtanh.f32 %v4020_v10  ;;  %v4021_v24 = vmul.f32 0.7978846, %v4013_v36 }
 0xde8   : > { %6105 = vtanh.f32 %v4018_v53  ;;  %v4019_v31 = vmul.f32 0.7978846, %v4011_v44 }
 0xde9   : > { %v6096_v20 = vpop.eup %6095  ;;  %6107 = vtanh.f32 %v4021_v24 }
 0xdea   : > { %v6098_v61 = vpop.eup %6097  ;;  %v4032_v18 = vadd.f32 1.0, %v6096_v20  ;;  %6109 = vtanh.f32 %v4019_v31 }
 0xdeb   : > { %v6100_v39 = vpop.eup %6099  ;;  %v4030_v19 = vadd.f32 1.0, %v6098_v61 }
 0xdec   : > { %v6102_v22 = vpop.eup %6101  ;;  %v4040_v1 = vmul.f32 0.5, %v4032_v18  ;;  %v4033_v29 = vadd.f32 1.0, %v6100_v39 }
 0xded   : > { %v4031_v43 = vadd.f32 1.0, %v6102_v22  ;;  %v4038_v13 = vmul.f32 0.5, %v4030_v19 }
 0xdee   : > { %v4041_v45 = vmul.f32 0.5, %v4033_v29  ;;  %v4048_v9 = vmul.f32 %v4040_v1, %v7384_v58 }
 0xdef   : > { %v4039_v8 = vmul.f32 0.5, %v4031_v43  ;;  %v4046_v14 = vmul.f32 %v4038_v13, %v7386_v4 }
 0xdf0   : > { %v4049_v12 = vmul.f32 %v4041_v45, %v7390_v55 }
 0xdf1   : > { %v6104_v15 = vpop.eup %6103  ;;  %v4047_v30 = vmul.f32 %v4039_v8, %v7394_v60 }
 0xdf2   : > { %v6106_v27 = vpop.eup %6105  ;;  %v4055_v40 = vpack.c.bf16 %v4049_v12, %v4048_v9  ;;  %v4036_v49 = vadd.f32 1.0, %v6104_v15 }
 0xdf3   : > { %v6108_v26 = vpop.eup %6107  ;;  %v4054_v42 = vpack.c.bf16 %v4047_v30, %v4046_v14  ;;  %v4034_v16 = vadd.f32 1.0, %v6106_v27 }
 0xdf4   : > { %v6110_v63 = vpop.eup %6109  ;;  %v4037_v35 = vadd.f32 1.0, %v6108_v26  ;;  %v4044_v11 = vmul.f32 0.5, %v4036_v49 }
 0xdf5   : > { %5838 = vmatprep.mubr.bf16.mxu1 %v4054_v42  ;;  %v4035_v2 = vadd.f32 1.0, %v6110_v63  ;;  %v4042_v58 = vmul.f32 0.5, %v4034_v16 }
 0xdf6   : > { %5839 = vmatmul.mubr.bf16.vlgmr.msra.gmra.mrb[92].mxu1 %v4055_v40  ;;  %v4045_v55 = vmul.f32 0.5, %v4037_v35  ;;  %v4052_v4 = vmul.f32 %v4044_v11, %v7405_v21 }
 0xdf7   : > { %v4043_v28 = vmul.f32 0.5, %v4035_v2  ;;  %v4050_v7 = vmul.f32 %v4042_v58, %v7408_v32 }
 0xdf8   : > { %v4053_v60 = vmul.f32 %v4045_v55, %v7413_v33 }
 0xdf9   : > { %v4051_v6 = vmul.f32 %v4043_v28, %v7418_v34 }
 0xdfa   : > { %v4057_v59 = vpack.c.bf16 %v4053_v60, %v4052_v4 }
 0xdfb   : > { %v4056_v57 = vpack.c.bf16 %v4051_v6, %v4050_v7 }
 0xdfd   : > { %5842 = vmatprep.mubr.bf16.mxu1 %v4056_v57 }
 0xdfe   : > { %5843 = vmatmul.mubr.bf16.gmra.mrb[96].mxu1 %v4057_v59 }
 0xec9   : > { %v5840_v25 = vpop.f32.mrb[92].mxu1 }
 0xeca   : > { %v4170_v52 = vadd.f32 %v5840_v25, %v5317_v17  ;;  %v4161_v56 = vpop.f32.mrb[93].mxu1 }
 0xecb   : > { %v4162_v62 = vadd.f32 %v5317_v17, %v4161_v56  ;;  %v5841_v3 = vpop.f32.mrb[94].mxu1 }
 0xecc   : > { %v4194_v47 = vadd.f32 %v4170_v52, %v7277_v5  ;;  %v4173_v50 = vadd.f32 %v5841_v3, %v5317_v17  ;;  %v4164_v21 = vpop.f32.mrb[95].mxu1 }
 0xecd   : > { %v4192_v33 = vadd.f32 %v4162_v62, %v7275_v46  ;;  %v4165_v37 = vadd.f32 %v5317_v17, %v4164_v21 }
 0xece   : > { %4202 = vst.msk [vmem:[#allocation2 + $0x10] sm:$0xff] %vm1150_vm5, %v4194_v47  ;;  %v4195_v32 = vadd.f32 %v4173_v50, %v7283_v48 }
 0xecf   : > { %4200 = vst.msk [vmem:[#allocation2] sm:$0xff] %vm1150_vm5, %v4192_v33  ;;  %v4193_v34 = vadd.f32 %v4165_v37, %v7279_v41  ;;  %v4343_v37 = vld [vmem:[%s7649_s21 + $0x3] sm:$0x1] (!%p5326_p8) }
 0xed0   : > { %4203 = vst.msk [vmem:[#allocation2 + $0x18] sm:$0xff] %vm1150_vm5, %v4195_v32 }
 0xed1   : > { %4201 = vst.msk [vmem:[#allocation2 + $0x8] sm:$0xff] %vm1150_vm5, %v4193_v34  ;;  %v5844_v51 = vpop.f32.mrb[96].mxu1  ;;  %v4217_v61 = vsel (!%p5326_p8), %vm1150_vm5, %v4193_v34, 0.0 }
 0xed2   : > { %v4186_v10 = vadd.f32 %v5844_v51, %v5317_v17  ;;  %v4177_v5 = vpop.f32.mrb[97].mxu1 }
 0xed3   : > { %v4178_v36 = vadd.f32 %v5317_v17, %v4177_v5  ;;  %v5845_v53 = vpop.f32.mrb[98].mxu1  ;;  %4211 = sbr.rel (%p5326_p8) target bundleno = 4369 (0x1111), region = 84 }
 0xed4   : > { %v7450_v46 = vadd.f32 %v4186_v10, %v7293_v23  ;;  %v4189_v44 = vadd.f32 %v5845_v53, %v5317_v17  ;;  %v4180_v24 = vpop.f32.mrb[99].mxu1  ;;  %v4214_v23 = vsel (!%p5326_p8), %vm1150_vm5, %v4192_v33, 0.0 }
 0xed5   : > { %v4196_v48 = vadd.f32 %v4178_v36, %v7289_v38  ;;  %v4181_v31 = vadd.f32 %v5317_v17, %v4180_v24  ;;  %v4220_v38 = vsel (!%p5326_p8), %vm1150_vm5, %v4194_v47, 0.0  ;;  %4215 = vadd.xlane.f32.xlu0 (!%p5326_p8), %v4214_v23 }
 0xed6   : > { %4206 = vst.msk [vmem:[#allocation2 + $0x30] sm:$0xff] %vm1150_vm5, %v7450_v46  ;;  %v4199_v41 = vadd.f32 %v4189_v44, %v7299_v0  ;;  %4221 = vadd.xlane.f32.xlu1 (!%p5326_p8), %v4220_v38  ;;  %v4223_v0 = vsel (!%p5326_p8), %vm1150_vm5, %v4195_v32, 0.0  ;;  %v4232_v39 = vsel (!%p5326_p8), %vm1150_vm5, %v7450_v46, 0.0 }
 0xed7   : > { %4204 = vst.msk [vmem:[#allocation2 + $0x20] sm:$0xff] %vm1150_vm5, %v4196_v48  ;;  %v4197_v20 = vadd.f32 %v4181_v31, %v7295_v54  ;;  %v4226_v54 = vsel (!%p5326_p8), %vm1150_vm5, %v4196_v48, 0.0 }
 0xed8   : > { %4207 = vst.msk [vmem:[#allocation2 + $0x38] sm:$0xff] %vm1150_vm5, %v4199_v41  ;;  %v4235_v19 = vsel (!%p5326_p8), %vm1150_vm5, %v4199_v41, 0.0 }
 0xed9   : > { %4205 = vst.msk [vmem:[#allocation2 + $0x28] sm:$0xff] %vm1150_vm5, %v4197_v20  ;;  %4218 = vadd.xlane.f32.xlu0 (!%p5326_p8), %v4217_v61  ;;  %v4229_v18 = vsel (!%p5326_p8), %vm1150_vm5, %v4197_v20, 0.0 }
 0xeda   : > { %4224 = vadd.xlane.f32.xlu1 %v4223_v0 }
 0xedd   : > { %4227 = vadd.xlane.f32.xlu0 %v4226_v54 }
 0xede   : > { %4230 = vadd.xlane.f32.xlu1 %v4229_v18 }
 0xee1   : > { %4233 = vadd.xlane.f32.xlu0 %v4232_v39 }
 0xee2   : > { %4236 = vadd.xlane.f32.xlu1 %v4235_v19 }
 0xf62   : > { %v4216_v22 = vpop.xlane.xlu0 %4215 }
 0xf63   : > { %v4222_v1 = vpop.xlane.xlu1 %4221  ;;  %v4238_v29 = vmul.f32 0.03125, %v4216_v22 }
 0xf64   : > { %v4240_v43 = vmul.f32 0.03125, %v4222_v1  ;;  %v5327_v1 = vld [vmem:[%s7649_s21] ss:$0 sm:$0xff] }
 0xf65   : > { %v7470_v13 = vsub.f32 %v4192_v33, %v4238_v29  ;;  %v6212_v33 = vmov 0.0  }
 0xf66   : > { %v7472_v45 = vsub.f32 %v4194_v47, %v4240_v43  ;;  %v4219_v8 = vpop.xlane.xlu0 %4218  ;;  %5846 = vmatprep.subr.mxu0 %v6212_v33  ;;  %5851 = vmatprep.subr.mxu1 %v6212_v33 }
 0xf67   : > { %v4225_v9 = vpop.xlane.xlu1 %4224  ;;  %v4239_v12 = vmul.f32 0.03125, %v4219_v8  ;;  %v4254_v14 = vmul.f32 %v7470_v13, %v7470_v13  ;;  %5848 = vmatprep.mubr.msk.f32.mxu0 %vm6213_vm11, %v6212_v33  ;;  %5853 = vmatprep.mubr.msk.f32.mxu1 %vm6213_vm11, %v6212_v33 }
 0xf68   : > { %v4241_v15 = vmul.f32 0.03125, %v4225_v9  ;;  %v4256_v30 = vmul.f32 %v7472_v45, %v7472_v45  ;;  %v5328_v9 = vld [vmem:[%s7649_s21 + $0x1] ss:$0 sm:$0xff] }
 0xf69   : > { %v7478_v27 = vsub.f32 %v4193_v34, %v4239_v12  ;;  %v4262_v49 = vsel %vm1150_vm5, %v4254_v14, 0.0 }
 0xf6a   : > { %v7480_v40 = vsub.f32 %v4195_v32, %v4241_v15  ;;  %4263 = vadd.xlane.f32.xlu0 %v4262_v49  ;;  %v4228_v26 = vpop.xlane.xlu0 %4227  ;;  %v4268_v16 = vsel %vm1150_vm5, %v4256_v30, 0.0  ;;  %v6214_v32 = vmov 0  }
 0xf6b   : > { %v4231_v42 = vpop.xlane.xlu1 %4230  ;;  %v4242_v63 = vmul.f32 0.03125, %v4228_v26  ;;  %v4255_v11 = vmul.f32 %v7478_v27, %v7478_v27  ;;  %6119 = vset.pattern.permute.xlu0 %v6214_v32 }
 0xf6c   : > { %v4243_v35 = vmul.f32 0.03125, %v4231_v42  ;;  %v4257_v2 = vmul.f32 %v7480_v40, %v7480_v40 }
 0xf6d   : > { %v7488_v58 = vsub.f32 %v4196_v48, %v4242_v63  ;;  %v4265_v28 = vsel %vm1150_vm5, %v4255_v11, 0.0 }
 0xf6e   : > { %v7490_v55 = vsub.f32 %v4197_v20, %v4243_v35  ;;  %4269 = vadd.xlane.f32.xlu0 %v4268_v16  ;;  %4266 = vadd.xlane.f32.xlu1 %v4265_v28  ;;  %v4234_v4 = vpop.xlane.xlu0 %4233  ;;  %v4271_v7 = vsel %vm1150_vm5, %v4257_v2, 0.0 }
 0xf6f   : > { %v4237_v60 = vpop.xlane.xlu1 %4236  ;;  %v4244_v6 = vmul.f32 0.03125, %v4234_v4  ;;  %v4258_v57 = vmul.f32 %v7488_v58, %v7488_v58 }
 0xf70   : > { %v4245_v59 = vmul.f32 0.03125, %v4237_v60  ;;  %v4259_v17 = vmul.f32 %v7490_v55, %v7490_v55 }
 0xf71   : > { %v7499_v25 = vsub.f32 %v7450_v46, %v4244_v6  ;;  %v4274_v56 = vsel %vm1150_vm5, %v4258_v57, 0.0 }
 0xf72   : > { %v7501_v52 = vsub.f32 %v4199_v41, %v4245_v59  ;;  %4272 = vadd.xlane.f32.xlu1 %v4271_v7  ;;  %4275 = vadd.xlane.f32.xlu0 %v4274_v56  ;;  %v4277_v62 = vsel %vm1150_vm5, %v4259_v17, 0.0 }
 0xf73   : > { %v4260_v3 = vmul.f32 %v7499_v25, %v7499_v25 }
 0xf74   : > { %v4261_v47 = vmul.f32 %v7501_v52, %v7501_v52 }
 0xf75   : > { %v4280_v50 = vsel %vm1150_vm5, %v4260_v3, 0.0 }
 0xf76   : > { %4278 = vadd.xlane.f32.xlu1 %v4277_v62  ;;  %4281 = vadd.xlane.f32.xlu0 %v4280_v50  ;;  %v4283_v21 = vsel %vm1150_vm5, %v4261_v47, 0.0 }
 0xf7a   : > { %4284 = vadd.xlane.f32.xlu1 %v4283_v21 }
 0xf8c   : > { %4346 = vperm.xlu0 %6119, %v4343_v37  }
 0xff7   : > { %v4264_v34 = vpop.xlane.xlu0 %4263 }
 0xff8   : > { %v4286_v51 = vmul.f32 0.03125, %v4264_v34 }
 0xffa   : > { %v4294_v10 = vadd.f32 1e-05, %v4286_v51 }
 0xffb   : > { %v4267_v5 = vpop.xlane.xlu1 %4266  ;;  %v4270_v36 = vpop.xlane.xlu0 %4269 }
 0xffc   : > { %6120 = vrsqrt.f32 %v4294_v10  ;;  %v4287_v53 = vmul.f32 0.03125, %v4267_v5  ;;  %v4288_v46 = vmul.f32 0.03125, %v4270_v36 }
 0xffe   : > { %v4295_v44 = vadd.f32 1e-05, %v4287_v53  ;;  %v4296_v24 = vadd.f32 1e-05, %v4288_v46 }
 0xfff   : > { %v4273_v48 = vpop.xlane.xlu1 %4272  ;;  %v4276_v31 = vpop.xlane.xlu0 %4275 }
0x1000   : > { %6122 = vrsqrt.f32 %v4295_v44  ;;  %v4289_v41 = vmul.f32 0.03125, %v4273_v48  ;;  %v4290_v20 = vmul.f32 0.03125, %v4276_v31 }
0x1001   : > { %6124 = vrsqrt.f32 %v4296_v24 }
0x1002   : > { %v4297_v23 = vadd.f32 1e-05, %v4289_v41  ;;  %v4298_v38 = vadd.f32 1e-05, %v4290_v20 }
0x1003   : > { %v4279_v61 = vpop.xlane.xlu1 %4278  ;;  %v4282_v0 = vpop.xlane.xlu0 %4281 }
0x1004   : > { %6126 = vrsqrt.f32 %v4297_v23  ;;  %v4291_v54 = vmul.f32 0.03125, %v4279_v61  ;;  %v4292_v18 = vmul.f32 0.03125, %v4282_v0 }
0x1005   : > { %6128 = vrsqrt.f32 %v4298_v38 }
0x1006   : > { %v6121_v39 = vpop.eup %6120  ;;  %v4299_v19 = vadd.f32 1e-05, %v4291_v54  ;;  %v4300_v22 = vadd.f32 1e-05, %v4292_v18 }
0x1007   : > { %v4285_v29 = vpop.xlane.xlu1 %4284  ;;  %v4310_v43 = vmul.f32 %v6121_v39, %v7470_v13  ;;  %v4342_v13 = vld [vmem:[%s7649_s21 + $0x2] sm:$0x1] }
0x1008   : > { %6130 = vrsqrt.f32 %v4299_v19  ;;  %v4293_v8 = vmul.f32 0.03125, %v4285_v29 }
0x1009   : > { %6132 = vrsqrt.f32 %v4300_v22  ;;  %v4322_v12 = vmul.f32 %v5327_v1, %v4310_v43 }
0x100a   : > { %v6123_v15 = vpop.eup %6122  ;;  %v4301_v14 = vadd.f32 1e-05, %v4293_v8 }
0x100b   : > { %v6125_v30 = vpop.eup %6124  ;;  %v4334_v49 = vadd.f32 %v5328_v9, %v4322_v12  ;;  %v4311_v26 = vmul.f32 %v6123_v15, %v7478_v27 }
0x100c   : > { %6134 = vrsqrt.f32 %v4301_v14  ;;  %v4312_v42 = vmul.f32 %v6125_v30, %v7472_v45 }
0x100d   : > { %5847 = vmatpush3.xpose.msk.msra.mxu0 %vm1150_vm5, %v4334_v49  ;;  %v4323_v16 = vmul.f32 %v5327_v1, %v4311_v26 }
0x100e   : > { %v6127_v63 = vpop.eup %6126  ;;  %5856 = vmatprep.subr.mxu0 %v6212_v33  ;;  %v4324_v35 = vmul.f32 %v5327_v1, %v4312_v42 }
0x100f   : > { %v6129_v11 = vpop.eup %6128  ;;  %v4335_v2 = vadd.f32 %v5328_v9, %v4323_v16  ;;  %v4313_v28 = vmul.f32 %v6127_v63, %v7480_v40 }
0x1010   : > { %5849 = vmatmul.mubr.msk.f32.vlgmr.msra.gmra.mrb[0].mxu0 %vm1150_vm5, %v4342_v13  ;;  %v4336_v27 = vadd.f32 %v5328_v9, %v4324_v35  ;;  %v4314_v45 = vmul.f32 %v6129_v11, %v7488_v58 }
0x1011   : > { %5852 = vmatpush3.xpose.msk.msra.mxu1 %vm1150_vm5, %v4335_v2  ;;  %5858 = vmatprep.mubr.msk.f32.mxu0 %vm6213_vm11, %v6212_v33  ;;  %v4325_v4 = vmul.f32 %v5327_v1, %v4313_v28 }
0x1012   : > { %v6131_v60 = vpop.eup %6130  ;;  %5857 = vmatpush3.xpose.msk.msra.mxu0 %vm1150_vm5, %v4336_v27  ;;  %5861 = vmatprep.subr.mxu1 %v6212_v33  ;;  %v4326_v7 = vmul.f32 %v5327_v1, %v4314_v45 }
0x1013   : > { %v6133_v6 = vpop.eup %6132  ;;  %5866 = vmatprep.subr.mxu0 %v6212_v33  ;;  %v4337_v40 = vadd.f32 %v5328_v9, %v4325_v4  ;;  %v4315_v59 = vmul.f32 %v6131_v60, %v7490_v55 }
0x1014   : > { %5854 = vmatmul.mubr.msk.f32.vlgmr.msra.gmra.mrb[0].mxu1 %vm1150_vm5, %v4342_v13  ;;  %v4338_v58 = vadd.f32 %v5328_v9, %v4326_v7  ;;  %v4316_v57 = vmul.f32 %v6133_v6, %v7499_v25 }
0x1015   : > { %5859 = vmatmul.mubr.msk.f32.vlgmr.msra.gmra.mrb[2].mxu0 %vm1150_vm5, %v4342_v13  ;;  %5862 = vmatpush3.xpose.msk.msra.mxu1 %vm1150_vm5, %v4337_v40  ;;  %v4327_v17 = vmul.f32 %v5327_v1, %v4315_v59 }
0x1016   : > { %v6135_v56 = vpop.eup %6134  ;;  %5867 = vmatpush3.xpose.msk.msra.mxu0 %vm1150_vm5, %v4338_v58  ;;  %5863 = vmatprep.mubr.msk.f32.mxu1 %vm6213_vm11, %v6212_v33  ;;  %v4328_v62 = vmul.f32 %v5327_v1, %v4316_v57 }
0x1017   : > { %5868 = vmatprep.mubr.msk.f32.mxu0 %vm6213_vm11, %v6212_v33  ;;  %5871 = vmatprep.subr.mxu1 %v6212_v33  ;;  %v4339_v55 = vadd.f32 %v5328_v9, %v4327_v17  ;;  %v4317_v25 = vmul.f32 %v6135_v56, %v7501_v52  ;;  %v4347_v52 = vpop.permute.xlu0 %4346 }
0x1018   : > { %5864 = vmatmul.mubr.msk.f32.vlgmr.msra.gmra.mrb[2].mxu1 %vm1150_vm5, %v4342_v13  ;;  %5876 = vmatprep.subr.mxu0 %v6212_v33  ;;  %v4340_v3 = vadd.f32 %v5328_v9, %v4328_v62 }
0x1019   : > { %5869 = vmatmul.mubr.msk.f32.vlgmr.msra.gmra.mrb[4].mxu0 %vm1150_vm5, %v4342_v13  ;;  %5872 = vmatpush3.xpose.msk.msra.mxu1 %vm1150_vm5, %v4339_v55  ;;  %v4329_v47 = vmul.f32 %v5327_v1, %v4317_v25 }
0x101a   : > { %5877 = vmatpush3.xpose.msk.msra.mxu0 %vm1150_vm5, %v4340_v3  ;;  %5873 = vmatprep.mubr.msk.f32.mxu1 %vm6213_vm11, %v6212_v33 }
0x101b   : > { %5881 = vmatprep.subr.mxu1 %v6212_v33  ;;  %v4341_v50 = vadd.f32 %v5328_v9, %v4329_v47  ;;  %5878 = vmatprep.mubr.msk.f32.mxu0 %vm6213_vm11, %v6212_v33 }
0x101c   : > { %5874 = vmatmul.mubr.msk.f32.vlgmr.msra.gmra.mrb[4].mxu1 %vm1150_vm5, %v4342_v13 }
0x101d   : > { %5882 = vmatpush3.xpose.msk.msra.mxu1 %vm1150_vm5, %v4341_v50  ;;  %5883 = vmatprep.mubr.msk.f32.mxu1 %vm6213_vm11, %v6212_v33 }
0x101e   : > { %5879 = vmatmul.mubr.msk.f32.vlgmr.msra.gmra.mrb[6].mxu0 %vm1150_vm5, %v4342_v13 }
0x1020   : > { %5884 = vmatmul.mubr.msk.f32.vlgmr.msra.gmra.mrb[6].mxu1 %vm1150_vm5, %v4342_v13 }
0x10e3   : > { %v4421_v21 = vpop.f32.mrb[0].mxu0 }
0x10e4   : > { %v4422_v37 = vadd.f32 %v4421_v21, %v4347_v52  ;;  %v5850_v32 = vpop.f32.mrb[1].mxu0 }
0x10e6   : > { %v5345_v34 = vmul.f32 -1.442695, %v4422_v37 }
0x10e7   : > { %v4494_v51 = vpop.f32.mrb[0].mxu1 }
0x10e8   : > { %v4495_v10 = vadd.f32 %v4494_v51, %v4347_v52  ;;  %6136 = vpow2.f32 %v5345_v34  ;;  %v5855_v5 = vpop.f32.mrb[1].mxu1  ;;  %v4567_v36 = vpop.f32.mrb[2].mxu0 }
0x10e9   : > { %v4568_v53 = vadd.f32 %v4567_v36, %v4347_v52  ;;  %v5860_v46 = vpop.f32.mrb[3].mxu0 }
0x10ea   : > { %v5346_v44 = vmul.f32 -1.442695, %v4495_v10 }
0x10eb   : > { %v5347_v24 = vmul.f32 -1.442695, %v4568_v53  ;;  %v4640_v48 = vpop.f32.mrb[2].mxu1 }
0x10ec   : > { %6138 = vpow2.f32 %v5346_v44  ;;  %v4641_v33 = vadd.f32 %v4640_v48, %v4347_v52  ;;  %v5865_v31 = vpop.f32.mrb[3].mxu1  ;;  %v4713_v41 = vpop.f32.mrb[4].mxu0 }
0x10ed   : > { %6140 = vpow2.f32 %v5347_v24  ;;  %v4714_v20 = vadd.f32 %v4713_v41, %v4347_v52  ;;  %v5870_v23 = vpop.f32.mrb[5].mxu0 }
0x10ee   : > { %v5348_v38 = vmul.f32 -1.442695, %v4641_v33 }
0x10ef   : > { %v5349_v61 = vmul.f32 -1.442695, %v4714_v20  ;;  %v4786_v0 = vpop.f32.mrb[4].mxu1 }
0x10f0   : > { %6142 = vpow2.f32 %v5348_v38  ;;  %v4787_v54 = vadd.f32 %v4786_v0, %v4347_v52  ;;  %v5875_v18 = vpop.f32.mrb[5].mxu1 }
0x10f1   : > { %6144 = vpow2.f32 %v5349_v61  ;;  %v4859_v39 = vpop.f32.mrb[6].mxu0 }
0x10f2   : > { %v6137_v19 = vpop.eup %6136  ;;  %v5350_v22 = vmul.f32 -1.442695, %v4787_v54  ;;  %v4860_v1 = vadd.f32 %v4859_v39, %v4347_v52  ;;  %v5880_v29 = vpop.f32.mrb[7].mxu0 }
0x10f3   : > { %v4960_v43 = vadd.f32 1.0, %v6137_v19  ;;  %v4932_v8 = vpop.f32.mrb[6].mxu1 }
0x10f4   : > { %6146 = vpow2.f32 %v5350_v22  ;;  %v5351_v9 = vmul.f32 -1.442695, %v4860_v1  ;;  %v4933_v12 = vadd.f32 %v4932_v8, %v4347_v52  ;;  %v5885_v15 = vpop.f32.mrb[7].mxu1 }
0x10f5   : > { %6148 = vrcp.f32 %v4960_v43 }
0x10f6   : > { %v6139_v14 = vpop.eup %6138  ;;  %6150 = vpow2.f32 %v5351_v9  ;;  %v5352_v30 = vmul.f32 -1.442695, %v4933_v12 }
0x10f7   : > { %v6141_v49 = vpop.eup %6140  ;;  %v4961_v26 = vadd.f32 1.0, %v6139_v14 }
0x10f8   : > { %v4962_v42 = vadd.f32 1.0, %v6141_v49  ;;  %6152 = vpow2.f32 %v5352_v30 }
0x10f9   : > { %6154 = vrcp.f32 %v4961_v26 }
0x10fa   : > { %v6143_v13 = vpop.eup %6142  ;;  %6156 = vrcp.f32 %v4962_v42 }
0x10fb   : > { %v6145_v16 = vpop.eup %6144  ;;  %v4963_v63 = vadd.f32 1.0, %v6143_v13 }
0x10fc   : > { %v4964_v35 = vadd.f32 1.0, %v6145_v16 }
0x10fd   : > { %6158 = vrcp.f32 %v4963_v63 }
0x10fe   : > { %v6147_v11 = vpop.eup %6146  ;;  %6160 = vrcp.f32 %v4964_v35 }
0x10ff   : > { %v6149_v2 = vpop.eup %6148  ;;  %v4965_v28 = vadd.f32 1.0, %v6147_v11 }
0x1100   : > { %v6151_v27 = vpop.eup %6150  ;;  %4985 = vst.msk [vmem:[%s6384_s1] sm:$0x1] %vm4984_vm12, %v6149_v2 }
0x1101   : > { %6162 = vrcp.f32 %v4965_v28  ;;  %v4966_v45 = vadd.f32 1.0, %v6151_v27 }
0x1102   : > { %v6153_v4 = vpop.eup %6152 }
0x1103   : > { %v6155_v60 = vpop.eup %6154  ;;  %6164 = vrcp.f32 %v4966_v45  ;;  %v4967_v7 = vadd.f32 1.0, %v6153_v4 }
0x1104   : > { %v6157_v6 = vpop.eup %6156  ;;  %4986 = vst.msk [vmem:[%s6384_s1 + $0x1] sm:$0x1] %vm4984_vm12, %v6155_v60 }
0x1105   : > { %4987 = vst.msk [vmem:[%s6384_s1 + $0x2] sm:$0x1] %vm4984_vm12, %v6157_v6  ;;  %6166 = vrcp.f32 %v4967_v7 }
0x1107   : > { %v6159_v40 = vpop.eup %6158 }
0x1108   : > { %v6161_v59 = vpop.eup %6160  ;;  %4988 = vst.msk [vmem:[%s6384_s1 + $0x3] sm:$0x1] %vm4984_vm12, %v6159_v40 }
0x1109   : > { %4989 = vst.msk [vmem:[%s6384_s1 + $0x4] sm:$0x1] %vm4984_vm12, %v6161_v59 }
0x110b   : > { %v6163_v58 = vpop.eup %6162 }
0x110c   : > { %4990 = vst.msk [vmem:[%s6384_s1 + $0x5] sm:$0x1] %vm4984_vm12, %v6163_v58 }
0x110d   : > { %v6165_v57 = vpop.eup %6164 }
0x110e   : > { %4991 = vst.msk [vmem:[%s6384_s1 + $0x6] sm:$0x1] %vm4984_vm12, %v6165_v57 }
0x110f   : > { %v6167_v17 = vpop.eup %6166 }
0x1110   : > { %4992 = vst.msk [vmem:[%s6384_s1 + $0x7] sm:$0x1] %vm4984_vm12, %v6167_v17 }
0x1111 PF: > { %s7650_s19 = sld [smem:[#allocation5_spill]]  ;;  %s7651_s29 = sld [smem:[#allocation3_spill]] }
0x1112   : > { %s7652_s30 = sld [smem:[#allocation4_spill]]  ;;  %s7653_s15 = sld [smem:[#allocation6_spill]] }
0x1113   : > { %s7654_s16 = sld [smem:[#allocation7_spill]] }
0x1117   : > { %s24_s17 = sadd.s32 1, %s7650_s19  }
0x1118   : > { %p21_p9 = scmp.ge.s32.totalorder %s24_s17, 6  }
0x111a   :  { %23 = sbr.rel (!%p21_p9) target bundleno = 10 (0xa), region = 151 }

</bundles_post_ra>
